<compile_context>
chip_gen: v7x
topology: tpu7x:2x2x1
jax: 0.10.0
libtpu: 0.0.40
codegen_flags: <defaults>
</compile_context>

<pallas_src>
import numpy as np

import jax
import jax.numpy as jnp
from jax.experimental import pallas as pl
from jax.experimental.pallas import tpu as pltpu

# ----------------------------- constants -----------------------------------
HID = 128            # image_dim = memory_dim = comm_encoder_dim
VOCAB_SIZE = 16
MSG_LEN = 8
N_ACTIONS = 7
IMG_HW = 7           # babyai 7x7 egocentric view
IMG_C = 3
IMG_FLAT = IMG_HW * IMG_HW * IMG_C        # 147
IMG_PAD = 160                             # 147 padded to a bf16-tile multiple
POOL_BLOCK = 256                          # lanes per pool-position block (padded)
CONV1_COLS = 4 * POOL_BLOCK               # 1024
CONV2_COLS = 4 * 32                       # 128 = conv2 pixel(4) * ch(32)
HEAD_OUT = 128                            # packed [logp(7) | value(1) | 0...]

VMEM = pltpu.MemorySpace.VMEM


# ----------------------------- fused kernel ---------------------------------
def student_fused_kernel(
        # inputs (VMEM)
        comm_ref, img_ref, mem_ref, embwih_ref, gwhh_ref, bias_ref,
        # inputs (HBM, manually DMA'd)
        c1w_hbm, c2w_hbm, c3w_hbm, lstmw_hbm, hw1_hbm, hw2_hbm,
        # outputs
        head_ref, mem_out_ref,
        # scratch
        c1w, c2w, c3w, lstmw, hw1, hw2, dma_sem, gi_buf):
    """Entire Student.forward on a batch padded to a multiple of 8.

    comm_ref : (L*B, V)   time-major flattened soft tokens
    img_ref  : (B, 160)   row-major flattened 7x7x3 image (lane-padded)
    mem_ref  : (B, 2H)    [h | c]
    bias_ref : (8, 1024)  packed biases: rows = c1b, c2b, c3b, lstm_b, hb1, hb2
    head_ref : (B, 128)   packed [log_probs(7) | value(1) | zeros(120)]
    mem_out  : (B, 2H)    [h_new | c_new]
    """
    B = mem_ref.shape[0]
    H = HID
    L = comm_ref.shape[0] // B

    def mm(a, b):
        return jnp.dot(a, b, preferred_element_type=jnp.float32)

    def sigm(x):
        # exact identity sigmoid(x) = (1 + tanh(x/2)) / 2 -> single EUP op
        return 0.5 * jnp.tanh(0.5 * x) + 0.5

    # ---- kick off all late-use weight DMAs; the serial GRU hides them ------
    cp_c1 = pltpu.make_async_copy(c1w_hbm, c1w, dma_sem.at[0]); cp_c1.start()
    cp_c2 = pltpu.make_async_copy(c2w_hbm, c2w, dma_sem.at[1]); cp_c2.start()
    cp_c3 = pltpu.make_async_copy(c3w_hbm, c3w, dma_sem.at[2]); cp_c3.start()
    cp_lw = pltpu.make_async_copy(lstmw_hbm, lstmw, dma_sem.at[3]); cp_lw.start()
    cp_h1 = pltpu.make_async_copy(hw1_hbm, hw1, dma_sem.at[4]); cp_h1.start()
    cp_h2 = pltpu.make_async_copy(hw2_hbm, hw2, dma_sem.at[5]); cp_h2.start()

    # ---------------- comm encoder (folded embed@Wih + GRU) -----------------
    # GRU biases are structurally zero (initialize_parameters) -> omitted.
    gi_buf[...] = mm(comm_ref[...], embwih_ref[...])            # (L*B, 3H)

    h = jnp.zeros((B, H), jnp.float32)
    for t in range(L):                                          # unrolled recurrence
        gi = gi_buf[t * B:(t + 1) * B, :]                       # (B, 3H) aligned slice
        gh = mm(h.astype(jnp.bfloat16), gwhh_ref[...])          # bf16 MXU, f32 acc
        r = sigm(gi[:, :H] + gh[:, :H])
        z = sigm(gi[:, H:2 * H] + gh[:, H:2 * H])
        n = jnp.tanh(gi[:, 2 * H:] + r * gh[:, 2 * H:])
        h = (1.0 - z) * n + z * h
    message_encoded = h                                         # (B, H)

    # ---------------- image_conv (cnn1) as 3 structured matmuls -------------
    # conv1 (2x2, 3->16) + relu; output lane = k*256 + window*16 + ch where
    # k = position inside the 2x2 maxpool window, window = pooled pixel.
    cp_c1.wait()
    y1 = jnp.maximum(mm(img_ref[...].astype(jnp.bfloat16), c1w[...])
                     + bias_ref[0:1, :], 0.0)                   # (B, 1024)
    # MaxPool2d(2,2): max over the 4 pool-position blocks (aligned 256-lane slices)
    pooled = jnp.maximum(
        jnp.maximum(y1[:, 0:POOL_BLOCK], y1[:, POOL_BLOCK:2 * POOL_BLOCK]),
        jnp.maximum(y1[:, 2 * POOL_BLOCK:3 * POOL_BLOCK],
                    y1[:, 3 * POOL_BLOCK:4 * POOL_BLOCK]))      # (B, 256)
    # conv2 (2x2, 16->32) + relu; output lane = pixel*32 + ch.
    cp_c2.wait()
    y2 = jnp.maximum(mm(pooled.astype(jnp.bfloat16), c2w[...])
                     + bias_ref[1:2, :CONV2_COLS], 0.0)         # (B, 128)
    # conv3 (2x2, 32->128) + relu -> FiLM embedding.
    cp_c3.wait()
    film = jnp.maximum(mm(y2.astype(jnp.bfloat16), c3w[...])
                       + bias_ref[2:3, :H], 0.0)                # (B, 128)

    # ---------------- memory LSTM cell (fused ih|hh weights) ----------------
    h_prev = mem_ref[:, :H]
    c_prev = mem_ref[:, H:]
    cp_lw.wait()
    gates = mm(jnp.concatenate([film, h_prev], axis=1).astype(jnp.bfloat16),
               lstmw[...]) + bias_ref[3:4, :4 * H]              # (B, 4H)
    i = sigm(gates[:, 0:H])
    f = sigm(gates[:, H:2 * H])
    g = jnp.tanh(gates[:, 2 * H:3 * H])
    o = sigm(gates[:, 3 * H:4 * H])
    c_new = f * c_prev + i * g
    h_new = o * jnp.tanh(c_new)
    mem_out_ref[...] = jnp.concatenate([h_new, c_new], axis=1)  # lane-dense 256

    # ---------------- actor / critic heads (fused, lane-dense output) -------
    pi = jnp.concatenate([h_new, message_encoded], axis=1)      # (B, 2H)
    cp_h1.wait()
    hh = jnp.tanh(mm(pi.astype(jnp.bfloat16), hw1[...])
                  + bias_ref[4:5, :HEAD_OUT])                   # (B, 128)
    cp_h2.wait()
    y = mm(hh.astype(jnp.bfloat16), hw2[...]) + bias_ref[5:6, :HEAD_OUT]
    # cols 0..6 = actor logits, col 7 = value, cols 8..127 = 0 (zero weights).
    lane = jax.lax.broadcasted_iota(jnp.int32, (B, HEAD_OUT), 1)
    act_mask = lane < N_ACTIONS
    logits_m = jnp.where(act_mask, y, -jnp.inf)
    m = jnp.max(logits_m, axis=1, keepdims=True)
    s = jnp.sum(jnp.exp(logits_m - m), axis=1, keepdims=True)
    corr = m + jnp.log(s)
    # single aligned select + unmasked lane-dense store
    head_ref[...] = y - jnp.where(act_mask, corr, 0.0)


# ----------------------------- parameter setup -------------------------------
def _row_norm_normal(key, shape):
    # initialize_parameters(): N(0,1) rows rescaled to unit L2 norm, bias = 0.
    w = jax.random.normal(key, shape, dtype=jnp.float32)
    return w / jnp.sqrt(jnp.sum(w * w, axis=1, keepdims=True))


def _build_conv1_big(conv1_w, conv1_b):
    """Fold conv1 im2col + pool-friendly, lane-padded output layout.

    conv1_w: (12, 16) with row = (di*2+dj)*3 + ci (HWIO flattened).
    Returns W (160, 1024), b (1024,); output lane = k*256 + window*16 + co,
    lanes 144..255 of each 256-block are zero padding.
    """
    w = np.asarray(conv1_w)
    b = np.asarray(conv1_b).reshape(-1)
    W = np.zeros((IMG_PAD, CONV1_COLS), np.float32)
    bb = np.zeros((CONV1_COLS,), np.float32)
    for i in range(6):
        for j in range(6):
            win = (i // 2) * 3 + (j // 2)     # pooled pixel index
            k = (i % 2) * 2 + (j % 2)         # position inside pool window
            c0 = k * POOL_BLOCK + win * 16
            for di in range(2):
                for dj in range(2):
                    for ci in range(IMG_C):
                        row = (i + di) * (IMG_HW * IMG_C) + (j + dj) * IMG_C + ci
                        W[row, c0:c0 + 16] = w[(di * 2 + dj) * IMG_C + ci]
            bb[c0:c0 + 16] = b
    return W, bb


def _build_conv2_big(conv2_w, conv2_b):
    """conv2 (2x2, 16->32) on the (3,3,16) pooled map as one dense matrix.

    conv2_w: (64, 32) with row = (di*2+dj)*16 + ci.
    Returns W (256, 128), b (128,); output lane = pixel*32 + co.
    Input rows 144..255 are zero (pool-block lane padding).
    """
    w = np.asarray(conv2_w)
    b = np.asarray(conv2_b).reshape(-1)
    W = np.zeros((POOL_BLOCK, CONV2_COLS), np.float32)
    bb = np.zeros((CONV2_COLS,), np.float32)
    for i2 in range(2):
        for j2 in range(2):
            q = i2 * 2 + j2
            for di in range(2):
                for dj in range(2):
                    win = (i2 + di) * 3 + (j2 + dj)
                    for ci in range(16):
                        W[win * 16 + ci, q * 32:(q + 1) * 32] = \
                            w[(di * 2 + dj) * 16 + ci]
            bb[q * 32:(q + 1) * 32] = b
    return W, bb


def init_student_params(key):
    """Returns (kernel params with fused/structured weights, raw weights)."""
    ks = iter(jax.random.split(key, 24))
    H, V, A = HID, VOCAB_SIZE, N_ACTIONS
    bf16 = jnp.bfloat16
    p, raw = {}, {}

    # comm_embed (Embedding) + comm_encoder_rnn (GRU) -- row-normalized, bias 0
    raw["comm_embed"] = _row_norm_normal(next(ks), (V, H))
    raw["gru_wih_t"] = _row_norm_normal(next(ks), (3 * H, H)).T      # (H, 3H)
    raw["gru_whh_t"] = _row_norm_normal(next(ks), (3 * H, H)).T
    raw["gru_bih"] = jnp.zeros((1, 3 * H), jnp.float32)
    raw["gru_bhh"] = jnp.zeros((1, 3 * H), jnp.float32)
    # Fold embedding @ W_ih at init -> one (16, 384) matrix, drops a matmul.
    p["emb_wih"] = raw["comm_embed"] @ raw["gru_wih_t"]              # f32
    p["gru_whh"] = raw["gru_whh_t"].astype(bf16)

    # image_conv (cnn1): deterministic scaled-normal stand-in for PyTorch
    # default Conv2d init (not touched by initialize_parameters).
    def conv_w(k, cin, cout):
        w = jax.random.normal(k, (2, 2, cin, cout), jnp.float32)
        return (w / jnp.sqrt(4.0 * cin)).reshape(4 * cin, cout)

    raw["conv1_w"] = conv_w(next(ks), IMG_C, 16)
    raw["conv1_b"] = 0.01 * jax.random.normal(next(ks), (16,), jnp.float32)
    raw["conv2_w"] = conv_w(next(ks), 16, 32)
    raw["conv2_b"] = 0.01 * jax.random.normal(next(ks), (32,), jnp.float32)
    raw["conv3_w"] = conv_w(next(ks), 32, H)
    raw["conv3_b"] = 0.01 * jax.random.normal(next(ks), (H,), jnp.float32)

    c1W, c1b = _build_conv1_big(raw["conv1_w"], raw["conv1_b"])
    c2W, c2b = _build_conv2_big(raw["conv2_w"], raw["conv2_b"])
    p["conv1_wbig"] = jnp.asarray(c1W).astype(bf16)                  # (160, 1024)
    p["conv2_wbig"] = jnp.asarray(c2W).astype(bf16)                  # (256, 128)
    p["conv3_w"] = raw["conv3_w"].astype(bf16)                       # (128, 128)

    # memory_rnn (LSTMCell) -- stand-in for PyTorch default init.
    # NOTE: PyTorch has bias_ih + bias_hh; they are folded into one bias here.
    sc = 1.0 / jnp.sqrt(jnp.float32(H))
    raw["lstm_wih_t"] = (sc * jax.random.normal(next(ks), (4 * H, H),
                                                jnp.float32)).T
    raw["lstm_whh_t"] = (sc * jax.random.normal(next(ks), (4 * H, H),
                                                jnp.float32)).T
    raw["lstm_b"] = 0.01 * jax.random.normal(next(ks), (1, 4 * H), jnp.float32)
    p["lstm_w"] = jnp.concatenate([raw["lstm_wih_t"], raw["lstm_whh_t"]],
                                  axis=0).astype(bf16)               # (256, 512)

    # actor / critic (Linear -> row-normalized, bias 0), fused for the kernel.
    raw["actor_w1"] = _row_norm_normal(next(ks), (64, 2 * H)).T      # (2H, 64)
    raw["critic_w1"] = _row_norm_normal(next(ks), (64, 2 * H)).T
    raw["actor_w2"] = _row_norm_normal(next(ks), (A, 64)).T          # (64, A)
    raw["critic_w2"] = _row_norm_normal(next(ks), (1, 64)).T         # (64, 1)
    raw["actor_b1"] = jnp.zeros((1, 64), jnp.float32)
    raw["critic_b1"] = jnp.zeros((1, 64), jnp.float32)
    raw["actor_b2"] = jnp.zeros((1, A), jnp.float32)
    raw["critic_b2"] = jnp.zeros((1, 1), jnp.float32)

    p["head_w1"] = jnp.concatenate([raw["actor_w1"], raw["critic_w1"]],
                                   axis=1).astype(bf16)              # (256, 128)
    hw2 = np.zeros((128, 128), np.float32)
    hw2[:64, :A] = np.asarray(raw["actor_w2"])
    hw2[64:, A:A + 1] = np.asarray(raw["critic_w2"])
    p["head_w2"] = jnp.asarray(hw2).astype(bf16)                     # (128, 128)

    # Packed biases: one (8, 1024) f32 array, one bias per sublane row.
    # rows: 0=conv1, 1=conv2, 2=conv3, 3=lstm, 4=head1 (0), 5=head2 (0), 6-7 pad.
    bias = np.zeros((8, CONV1_COLS), np.float32)
    bias[0, :] = c1b
    bias[1, :CONV2_COLS] = c2b
    bias[2, :H] = np.asarray(raw["conv3_b"])
    bias[3, :4 * H] = np.asarray(raw["lstm_b"]).reshape(-1)
    p["bias_pack"] = jnp.asarray(bias)
    return p, raw


# ----------------------------- forward ---------------------------------------
def student_forward(params, comm, image_nhwc, memory):
    """comm: (B, L, V) soft tokens; image_nhwc: (B, 7, 7, 3); memory: (B, 2H)."""
    B, L, V = comm.shape
    Bp = ((B + 7) // 8) * 8                       # pad batch to f32 sublane
    pad = Bp - B

    # Pure input formatting (fused by XLA into input formation for the single
    # pallas_call): batch pad, time-major comm, row-major lane-padded image.
    comm_tb = jnp.transpose(comm.astype(jnp.float32), (1, 0, 2))
    comm_flat = jnp.pad(comm_tb, ((0, 0), (0, pad), (0, 0))).reshape(L * Bp, V)
    img_flat = jnp.pad(image_nhwc.astype(jnp.float32).reshape(B, IMG_FLAT),
                       ((0, pad), (0, IMG_PAD - IMG_FLAT)))
    mem_pad = jnp.pad(memory.astype(jnp.float32), ((0, pad), (0, 0)))

    head_out, mem_out = pl.pallas_call(
        student_fused_kernel,
        out_shape=(jax.ShapeDtypeStruct((Bp, HEAD_OUT), jnp.float32),
                   jax.ShapeDtypeStruct((Bp, 2 * HID), jnp.float32)),
        in_specs=(
            [pl.BlockSpec(memory_space=VMEM)] * 6          # small, DMA'd up front
            + [pl.BlockSpec(memory_space=pl.ANY)] * 6),    # big weights, manual DMA
        out_specs=(pl.BlockSpec(memory_space=VMEM),
                   pl.BlockSpec(memory_space=VMEM)),
        scratch_shapes=[
            pltpu.VMEM((IMG_PAD, CONV1_COLS), jnp.bfloat16),     # conv1 W
            pltpu.VMEM((POOL_BLOCK, CONV2_COLS), jnp.bfloat16),  # conv2 W
            pltpu.VMEM((HID, HID), jnp.bfloat16),                # conv3 W
            pltpu.VMEM((2 * HID, 4 * HID), jnp.bfloat16),        # lstm W
            pltpu.VMEM((2 * HID, HEAD_OUT), jnp.bfloat16),       # head W1
            pltpu.VMEM((HEAD_OUT, HEAD_OUT), jnp.bfloat16),      # head W2
            pltpu.SemaphoreType.DMA((6,)),                       # one sem per copy
            pltpu.VMEM((L * Bp, 3 * HID), jnp.float32),          # GRU gi staging
        ],
    )(comm_flat, img_flat, mem_pad,
      params["emb_wih"], params["gru_whh"], params["bias_pack"],
      params["conv1_wbig"], params["conv2_wbig"], params["conv3_w"],
      params["lstm_w"], params["head_w1"], params["head_w2"])

    return {
        "dist_logits": head_out[:B, :N_ACTIONS],
        "value": head_out[:B, N_ACTIONS],
        "memory_student": mem_out[:B],
        "extra_predictions": {},
    }


# ----------------------------- pure-JAX reference ----------------------------
def reference_forward(raw, comm, image, memory):
    """Direct translation of Student.forward with the raw weights."""
    B, L, _ = comm.shape
    H = HID
    x = comm @ raw["comm_embed"]
    h = jnp.zeros((B, H), jnp.float32)
    for t in range(L):
        gi = x[:, t, :] @ raw["gru_wih_t"] + raw["gru_bih"]
        gh = h @ raw["gru_whh_t"] + raw["gru_bhh"]
        r = jax.nn.sigmoid(gi[:, :H] + gh[:, :H])
        z = jax.nn.sigmoid(gi[:, H:2 * H] + gh[:, H:2 * H])
        n = jnp.tanh(gi[:, 2 * H:] + r * gh[:, 2 * H:])
        h = (1.0 - z) * n + z * h
    msg = h

    def patches(a):   # 2x2 im2col, tap order (0,0),(0,1),(1,0),(1,1)
        return jnp.concatenate([a[:, :-1, :-1, :], a[:, :-1, 1:, :],
                                a[:, 1:, :-1, :], a[:, 1:, 1:, :]], axis=-1)

    h1 = jax.nn.relu(patches(image) @ raw["conv1_w"] + raw["conv1_b"])
    h1 = jnp.max(h1.reshape(B, 3, 2, 3, 2, 16), axis=(2, 4))
    h2 = jax.nn.relu(patches(h1) @ raw["conv2_w"] + raw["conv2_b"])
    film = jax.nn.relu(patches(h2).reshape(B, 128) @ raw["conv3_w"]
                       + raw["conv3_b"])

    hp, cp = memory[:, :H], memory[:, H:]
    gates = film @ raw["lstm_wih_t"] + hp @ raw["lstm_whh_t"] + raw["lstm_b"]
    i = jax.nn.sigmoid(gates[:, :H])
    f = jax.nn.sigmoid(gates[:, H:2 * H])
    g = jnp.tanh(gates[:, 2 * H:3 * H])
    o = jax.nn.sigmoid(gates[:, 3 * H:])
    c_new = f * cp + i * g
    h_new = o * jnp.tanh(c_new)

    pi = jnp.concatenate([h_new, msg], axis=1)
    ha = jnp.tanh(pi @ raw["actor_w1"] + raw["actor_b1"])
    logp = jax.nn.log_softmax(ha @ raw["actor_w2"] + raw["actor_b2"], axis=1)
    hc = jnp.tanh(pi @ raw["critic_w1"] + raw["critic_b1"])
    value = (hc @ raw["critic_w2"] + raw["critic_b2"])[:, 0]
    return logp, value, jnp.concatenate([h_new, c_new], axis=1)


# ----------------------------- main -------------------------------------------
if __name__ == "__main__":
    B = 2
    key = jax.random.PRNGKey(0)
    k_param, k_comm, k_img, k_mem = jax.random.split(key, 4)

    params, raw = init_student_params(k_param)

    comm = jax.nn.softmax(
        jax.random.normal(k_comm, (B, MSG_LEN, VOCAB_SIZE), jnp.float32), axis=-1)
    image = jax.random.uniform(k_img, (B, IMG_HW, IMG_HW, IMG_C),
                               dtype=jnp.float32)
    memory = 0.1 * jax.random.normal(k_mem, (B, 2 * HID), jnp.float32)

    fwd = jax.jit(student_forward)
    out = jax.block_until_ready(fwd(params, comm, image, memory))

    assert out["dist_logits"].shape == (B, N_ACTIONS)
    assert out["value"].shape == (B,)
    assert out["memory_student"].shape == (B, 2 * HID)
    assert bool(jnp.all(jnp.isfinite(out["dist_logits"])))
    assert bool(jnp.all(jnp.isfinite(out["value"])))
    assert bool(jnp.allclose(jnp.sum(jnp.exp(out["dist_logits"]), axis=1),
                             1.0, atol=1e-4))

    # cross-check the fused/structured/bf16-weight kernel against a plain-JAX
    # f32 reference of the same forward pass (loose tol: bf16 matmul noise).
    with jax.default_matmul_precision("highest"):
        ref_logp, ref_value, ref_mem = reference_forward(raw, comm, image, memory)
    assert bool(jnp.allclose(out["dist_logits"], ref_logp, atol=5e-2, rtol=5e-2))
    assert bool(jnp.allclose(out["value"], ref_value, atol=5e-2, rtol=5e-2))
    assert bool(jnp.allclose(out["memory_student"], ref_mem, atol=5e-2, rtol=5e-2))

    print("KERNEL_OK")
</pallas_src>

<mosaic_0001>
module attributes {stable_mosaic.version = 11 : i64} {
  func.func @student_fused_kernel(%arg0: memref<64x16xf32, #tpu.memory_space<vmem>>, %arg1: memref<8x160xf32, #tpu.memory_space<vmem>>, %arg2: memref<8x256xf32, #tpu.memory_space<vmem>>, %arg3: memref<16x384xf32, #tpu.memory_space<vmem>>, %arg4: memref<128x384xbf16, #tpu.memory_space<vmem>>, %arg5: memref<8x1024xf32, #tpu.memory_space<vmem>>, %arg6: memref<160x1024xbf16, #tpu.memory_space<any>>, %arg7: memref<256x128xbf16, #tpu.memory_space<any>>, %arg8: memref<128x128xbf16, #tpu.memory_space<any>>, %arg9: memref<256x512xbf16, #tpu.memory_space<any>>, %arg10: memref<256x128xbf16, #tpu.memory_space<any>>, %arg11: memref<128x128xbf16, #tpu.memory_space<any>>, %arg12: memref<8x128xf32, #tpu.memory_space<vmem>>, %arg13: memref<8x256xf32, #tpu.memory_space<vmem>>, %arg14: memref<160x1024xbf16, #tpu.memory_space<vmem>>, %arg15: memref<256x128xbf16, #tpu.memory_space<vmem>>, %arg16: memref<128x128xbf16, #tpu.memory_space<vmem>>, %arg17: memref<256x512xbf16, #tpu.memory_space<vmem>>, %arg18: memref<256x128xbf16, #tpu.memory_space<vmem>>, %arg19: memref<128x128xbf16, #tpu.memory_space<vmem>>, %arg20: memref<6x!tpu.dma_semaphore, #tpu.memory_space<semaphore_mem>>, %arg21: memref<64x384xf32, #tpu.memory_space<vmem>>) attributes {dimension_semantics = [], scalar_prefetch = 0 : i64, scratch_operands = 8 : i64, tpu.core_type = #tpu.core_type<tc>} {
    %c0_i32 = arith.constant 0 : i32
    %0 = tpu.memref_slice %arg20[%c0_i32] : memref<6x!tpu.dma_semaphore, #tpu.memory_space<semaphore_mem>> -> memref<1x!tpu.dma_semaphore, #tpu.memory_space<semaphore_mem>>
    %1 = tpu.memref_squeeze %0 : memref<1x!tpu.dma_semaphore, #tpu.memory_space<semaphore_mem>> -> memref<!tpu.dma_semaphore, #tpu.memory_space<semaphore_mem>>
    tpu.enqueue_dma source(%arg6 : memref<160x1024xbf16, #tpu.memory_space<any>>) target(%arg14 : memref<160x1024xbf16, #tpu.memory_space<vmem>>) target_semaphore(%1 : memref<!tpu.dma_semaphore, #tpu.memory_space<semaphore_mem>>)
    %c1_i32 = arith.constant 1 : i32
    %2 = tpu.memref_slice %arg20[%c1_i32] : memref<6x!tpu.dma_semaphore, #tpu.memory_space<semaphore_mem>> -> memref<1x!tpu.dma_semaphore, #tpu.memory_space<semaphore_mem>>
    %3 = tpu.memref_squeeze %2 : memref<1x!tpu.dma_semaphore, #tpu.memory_space<semaphore_mem>> -> memref<!tpu.dma_semaphore, #tpu.memory_space<semaphore_mem>>
    tpu.enqueue_dma source(%arg7 : memref<256x128xbf16, #tpu.memory_space<any>>) target(%arg15 : memref<256x128xbf16, #tpu.memory_space<vmem>>) target_semaphore(%3 : memref<!tpu.dma_semaphore, #tpu.memory_space<semaphore_mem>>)
    %c2_i32 = arith.constant 2 : i32
    %4 = tpu.memref_slice %arg20[%c2_i32] : memref<6x!tpu.dma_semaphore, #tpu.memory_space<semaphore_mem>> -> memref<1x!tpu.dma_semaphore, #tpu.memory_space<semaphore_mem>>
    %5 = tpu.memref_squeeze %4 : memref<1x!tpu.dma_semaphore, #tpu.memory_space<semaphore_mem>> -> memref<!tpu.dma_semaphore, #tpu.memory_space<semaphore_mem>>
    tpu.enqueue_dma source(%arg8 : memref<128x128xbf16, #tpu.memory_space<any>>) target(%arg16 : memref<128x128xbf16, #tpu.memory_space<vmem>>) target_semaphore(%5 : memref<!tpu.dma_semaphore, #tpu.memory_space<semaphore_mem>>)
    %c3_i32 = arith.constant 3 : i32
    %6 = tpu.memref_slice %arg20[%c3_i32] : memref<6x!tpu.dma_semaphore, #tpu.memory_space<semaphore_mem>> -> memref<1x!tpu.dma_semaphore, #tpu.memory_space<semaphore_mem>>
    %7 = tpu.memref_squeeze %6 : memref<1x!tpu.dma_semaphore, #tpu.memory_space<semaphore_mem>> -> memref<!tpu.dma_semaphore, #tpu.memory_space<semaphore_mem>>
    tpu.enqueue_dma source(%arg9 : memref<256x512xbf16, #tpu.memory_space<any>>) target(%arg17 : memref<256x512xbf16, #tpu.memory_space<vmem>>) target_semaphore(%7 : memref<!tpu.dma_semaphore, #tpu.memory_space<semaphore_mem>>)
    %c4_i32 = arith.constant 4 : i32
    %8 = tpu.memref_slice %arg20[%c4_i32] : memref<6x!tpu.dma_semaphore, #tpu.memory_space<semaphore_mem>> -> memref<1x!tpu.dma_semaphore, #tpu.memory_space<semaphore_mem>>
    %9 = tpu.memref_squeeze %8 : memref<1x!tpu.dma_semaphore, #tpu.memory_space<semaphore_mem>> -> memref<!tpu.dma_semaphore, #tpu.memory_space<semaphore_mem>>
    tpu.enqueue_dma source(%arg10 : memref<256x128xbf16, #tpu.memory_space<any>>) target(%arg18 : memref<256x128xbf16, #tpu.memory_space<vmem>>) target_semaphore(%9 : memref<!tpu.dma_semaphore, #tpu.memory_space<semaphore_mem>>)
    %c5_i32 = arith.constant 5 : i32
    %10 = tpu.memref_slice %arg20[%c5_i32] : memref<6x!tpu.dma_semaphore, #tpu.memory_space<semaphore_mem>> -> memref<1x!tpu.dma_semaphore, #tpu.memory_space<semaphore_mem>>
    %11 = tpu.memref_squeeze %10 : memref<1x!tpu.dma_semaphore, #tpu.memory_space<semaphore_mem>> -> memref<!tpu.dma_semaphore, #tpu.memory_space<semaphore_mem>>
    tpu.enqueue_dma source(%arg11 : memref<128x128xbf16, #tpu.memory_space<any>>) target(%arg19 : memref<128x128xbf16, #tpu.memory_space<vmem>>) target_semaphore(%11 : memref<!tpu.dma_semaphore, #tpu.memory_space<semaphore_mem>>)
    %c0 = arith.constant 0 : index
    %c0_0 = arith.constant 0 : index
    %12 = vector.load %arg0[%c0, %c0_0] : memref<64x16xf32, #tpu.memory_space<vmem>>, vector<64x16xf32>
    %c0_1 = arith.constant 0 : index
    %c0_2 = arith.constant 0 : index
    %13 = vector.load %arg3[%c0_1, %c0_2] : memref<16x384xf32, #tpu.memory_space<vmem>>, vector<16x384xf32>
    %cst = arith.constant dense<0.000000e+00> : vector<64x384xf32>
    %14 = tpu.matmul %12, %13, %cst {dimension_numbers = #tpu.dot_dimension_numbers<[1], [0], [0], [1], [0, 0, 1, 1], [], []>} : vector<64x16xf32>, vector<16x384xf32>, vector<64x384xf32> -> vector<64x384xf32>
    %c0_3 = arith.constant 0 : index
    %c0_4 = arith.constant 0 : index
    %15 = vector.load %arg21[%c0_3, %c0_4] : memref<64x384xf32, #tpu.memory_space<vmem>>, vector<64x384xf32>
    tpu.vector_store %arg21[%c0_3, %c0_4], %14 {strides = array<i32>} : memref<64x384xf32, #tpu.memory_space<vmem>>, vector<64x384xf32>,
    %cst_5 = arith.constant 0.000000e+00 : f32
    %16 = vector.broadcast %cst_5 : f32 to vector<8x128xf32>
    %c0_6 = arith.constant 0 : index
    %c0_7 = arith.constant 0 : index
    %17 = vector.load %arg21[%c0_6, %c0_7] : memref<64x384xf32, #tpu.memory_space<vmem>>, vector<8x384xf32>
    %18 = arith.truncf %16 : vector<8x128xf32> to vector<8x128xbf16>
    %c0_8 = arith.constant 0 : index
    %c0_9 = arith.constant 0 : index
    %19 = vector.load %arg4[%c0_8, %c0_9] : memref<128x384xbf16, #tpu.memory_space<vmem>>, vector<128x384xbf16>
    %cst_10 = arith.constant dense<0.000000e+00> : vector<8x384xf32>
    %20 = tpu.matmul %18, %19, %cst_10 {dimension_numbers = #tpu.dot_dimension_numbers<[1], [0], [0], [1], [0, 0, 1, 1], [], []>} : vector<8x128xbf16>, vector<128x384xbf16>, vector<8x384xf32> -> vector<8x384xf32>
    %21 = vector.extract_strided_slice %17 {offsets = [0, 0], sizes = [8, 128], strides = [1, 1]} : vector<8x384xf32> to vector<8x128xf32>
    %22 = vector.extract_strided_slice %20 {offsets = [0, 0], sizes = [8, 128], strides = [1, 1]} : vector<8x384xf32> to vector<8x128xf32>
    %23 = arith.addf %21, %22 : vector<8x128xf32>
    %cst_11 = arith.constant 5.000000e-01 : f32
    %24 = vector.broadcast %cst_11 : f32 to vector<8x128xf32>
    %25 = arith.mulf %24, %23 : vector<8x128xf32>
    %26 = math.tanh %25 : vector<8x128xf32>
    %cst_12 = arith.constant 5.000000e-01 : f32
    %27 = vector.broadcast %cst_12 : f32 to vector<8x128xf32>
    %28 = arith.mulf %27, %26 : vector<8x128xf32>
    %cst_13 = arith.constant 5.000000e-01 : f32
    %29 = vector.broadcast %cst_13 : f32 to vector<8x128xf32>
    %30 = arith.addf %28, %29 : vector<8x128xf32>
    %31 = vector.extract_strided_slice %17 {offsets = [0, 128], sizes = [8, 128], strides = [1, 1]} : vector<8x384xf32> to vector<8x128xf32>
    %32 = vector.extract_strided_slice %20 {offsets = [0, 128], sizes = [8, 128], strides = [1, 1]} : vector<8x384xf32> to vector<8x128xf32>
    %33 = arith.addf %31, %32 : vector<8x128xf32>
    %cst_14 = arith.constant 5.000000e-01 : f32
    %34 = vector.broadcast %cst_14 : f32 to vector<8x128xf32>
    %35 = arith.mulf %34, %33 : vector<8x128xf32>
    %36 = math.tanh %35 : vector<8x128xf32>
    %cst_15 = arith.constant 5.000000e-01 : f32
    %37 = vector.broadcast %cst_15 : f32 to vector<8x128xf32>
    %38 = arith.mulf %37, %36 : vector<8x128xf32>
    %cst_16 = arith.constant 5.000000e-01 : f32
    %39 = vector.broadcast %cst_16 : f32 to vector<8x128xf32>
    %40 = arith.addf %38, %39 : vector<8x128xf32>
    %41 = vector.extract_strided_slice %17 {offsets = [0, 256], sizes = [8, 128], strides = [1, 1]} : vector<8x384xf32> to vector<8x128xf32>
    %42 = vector.extract_strided_slice %20 {offsets = [0, 256], sizes = [8, 128], strides = [1, 1]} : vector<8x384xf32> to vector<8x128xf32>
    %43 = arith.mulf %30, %42 : vector<8x128xf32>
    %44 = arith.addf %41, %43 : vector<8x128xf32>
    %45 = math.tanh %44 : vector<8x128xf32>
    %cst_17 = arith.constant 1.000000e+00 : f32
    %46 = vector.broadcast %cst_17 : f32 to vector<8x128xf32>
    %47 = arith.subf %46, %40 : vector<8x128xf32>
    %48 = arith.mulf %47, %45 : vector<8x128xf32>
    %49 = arith.mulf %40, %16 : vector<8x128xf32>
    %50 = arith.addf %48, %49 : vector<8x128xf32>
    %c8 = arith.constant 8 : index
    %c0_18 = arith.constant 0 : index
    %51 = vector.load %arg21[%c8, %c0_18] : memref<64x384xf32, #tpu.memory_space<vmem>>, vector<8x384xf32>
    %52 = arith.truncf %50 : vector<8x128xf32> to vector<8x128xbf16>
    %c0_19 = arith.constant 0 : index
    %c0_20 = arith.constant 0 : index
    %53 = vector.load %arg4[%c0_19, %c0_20] : memref<128x384xbf16, #tpu.memory_space<vmem>>, vector<128x384xbf16>
    %cst_21 = arith.constant dense<0.000000e+00> : vector<8x384xf32>
    %54 = tpu.matmul %52, %53, %cst_21 {dimension_numbers = #tpu.dot_dimension_numbers<[1], [0], [0], [1], [0, 0, 1, 1], [], []>} : vector<8x128xbf16>, vector<128x384xbf16>, vector<8x384xf32> -> vector<8x384xf32>
    %55 = vector.extract_strided_slice %51 {offsets = [0, 0], sizes = [8, 128], strides = [1, 1]} : vector<8x384xf32> to vector<8x128xf32>
    %56 = vector.extract_strided_slice %54 {offsets = [0, 0], sizes = [8, 128], strides = [1, 1]} : vector<8x384xf32> to vector<8x128xf32>
    %57 = arith.addf %55, %56 : vector<8x128xf32>
    %cst_22 = arith.constant 5.000000e-01 : f32
    %58 = vector.broadcast %cst_22 : f32 to vector<8x128xf32>
    %59 = arith.mulf %58, %57 : vector<8x128xf32>
    %60 = math.tanh %59 : vector<8x128xf32>
    %cst_23 = arith.constant 5.000000e-01 : f32
    %61 = vector.broadcast %cst_23 : f32 to vector<8x128xf32>
    %62 = arith.mulf %61, %60 : vector<8x128xf32>
    %cst_24 = arith.constant 5.000000e-01 : f32
    %63 = vector.broadcast %cst_24 : f32 to vector<8x128xf32>
    %64 = arith.addf %62, %63 : vector<8x128xf32>
    %65 = vector.extract_strided_slice %51 {offsets = [0, 128], sizes = [8, 128], strides = [1, 1]} : vector<8x384xf32> to vector<8x128xf32>
    %66 = vector.extract_strided_slice %54 {offsets = [0, 128], sizes = [8, 128], strides = [1, 1]} : vector<8x384xf32> to vector<8x128xf32>
    %67 = arith.addf %65, %66 : vector<8x128xf32>
    %cst_25 = arith.constant 5.000000e-01 : f32
    %68 = vector.broadcast %cst_25 : f32 to vector<8x128xf32>
    %69 = arith.mulf %68, %67 : vector<8x128xf32>
    %70 = math.tanh %69 : vector<8x128xf32>
    %cst_26 = arith.constant 5.000000e-01 : f32
    %71 = vector.broadcast %cst_26 : f32 to vector<8x128xf32>
    %72 = arith.mulf %71, %70 : vector<8x128xf32>
    %cst_27 = arith.constant 5.000000e-01 : f32
    %73 = vector.broadcast %cst_27 : f32 to vector<8x128xf32>
    %74 = arith.addf %72, %73 : vector<8x128xf32>
    %75 = vector.extract_strided_slice %51 {offsets = [0, 256], sizes = [8, 128], strides = [1, 1]} : vector<8x384xf32> to vector<8x128xf32>
    %76 = vector.extract_strided_slice %54 {offsets = [0, 256], sizes = [8, 128], strides = [1, 1]} : vector<8x384xf32> to vector<8x128xf32>
    %77 = arith.mulf %64, %76 : vector<8x128xf32>
    %78 = arith.addf %75, %77 : vector<8x128xf32>
    %79 = math.tanh %78 : vector<8x128xf32>
    %cst_28 = arith.constant 1.000000e+00 : f32
    %80 = vector.broadcast %cst_28 : f32 to vector<8x128xf32>
    %81 = arith.subf %80, %74 : vector<8x128xf32>
    %82 = arith.mulf %81, %79 : vector<8x128xf32>
    %83 = arith.mulf %74, %50 : vector<8x128xf32>
    %84 = arith.addf %82, %83 : vector<8x128xf32>
    %c16 = arith.constant 16 : index
    %c0_29 = arith.constant 0 : index
    %85 = vector.load %arg21[%c16, %c0_29] : memref<64x384xf32, #tpu.memory_space<vmem>>, vector<8x384xf32>
    %86 = arith.truncf %84 : vector<8x128xf32> to vector<8x128xbf16>
    %c0_30 = arith.constant 0 : index
    %c0_31 = arith.constant 0 : index
    %87 = vector.load %arg4[%c0_30, %c0_31] : memref<128x384xbf16, #tpu.memory_space<vmem>>, vector<128x384xbf16>
    %cst_32 = arith.constant dense<0.000000e+00> : vector<8x384xf32>
    %88 = tpu.matmul %86, %87, %cst_32 {dimension_numbers = #tpu.dot_dimension_numbers<[1], [0], [0], [1], [0, 0, 1, 1], [], []>} : vector<8x128xbf16>, vector<128x384xbf16>, vector<8x384xf32> -> vector<8x384xf32>
    %89 = vector.extract_strided_slice %85 {offsets = [0, 0], sizes = [8, 128], strides = [1, 1]} : vector<8x384xf32> to vector<8x128xf32>
    %90 = vector.extract_strided_slice %88 {offsets = [0, 0], sizes = [8, 128], strides = [1, 1]} : vector<8x384xf32> to vector<8x128xf32>
    %91 = arith.addf %89, %90 : vector<8x128xf32>
    %cst_33 = arith.constant 5.000000e-01 : f32
    %92 = vector.broadcast %cst_33 : f32 to vector<8x128xf32>
    %93 = arith.mulf %92, %91 : vector<8x128xf32>
    %94 = math.tanh %93 : vector<8x128xf32>
    %cst_34 = arith.constant 5.000000e-01 : f32
    %95 = vector.broadcast %cst_34 : f32 to vector<8x128xf32>
    %96 = arith.mulf %95, %94 : vector<8x128xf32>
    %cst_35 = arith.constant 5.000000e-01 : f32
    %97 = vector.broadcast %cst_35 : f32 to vector<8x128xf32>
    %98 = arith.addf %96, %97 : vector<8x128xf32>
    %99 = vector.extract_strided_slice %85 {offsets = [0, 128], sizes = [8, 128], strides = [1, 1]} : vector<8x384xf32> to vector<8x128xf32>
    %100 = vector.extract_strided_slice %88 {offsets = [0, 128], sizes = [8, 128], strides = [1, 1]} : vector<8x384xf32> to vector<8x128xf32>
    %101 = arith.addf %99, %100 : vector<8x128xf32>
    %cst_36 = arith.constant 5.000000e-01 : f32
    %102 = vector.broadcast %cst_36 : f32 to vector<8x128xf32>
    %103 = arith.mulf %102, %101 : vector<8x128xf32>
    %104 = math.tanh %103 : vector<8x128xf32>
    %cst_37 = arith.constant 5.000000e-01 : f32
    %105 = vector.broadcast %cst_37 : f32 to vector<8x128xf32>
    %106 = arith.mulf %105, %104 : vector<8x128xf32>
    %cst_38 = arith.constant 5.000000e-01 : f32
    %107 = vector.broadcast %cst_38 : f32 to vector<8x128xf32>
    %108 = arith.addf %106, %107 : vector<8x128xf32>
    %109 = vector.extract_strided_slice %85 {offsets = [0, 256], sizes = [8, 128], strides = [1, 1]} : vector<8x384xf32> to vector<8x128xf32>
    %110 = vector.extract_strided_slice %88 {offsets = [0, 256], sizes = [8, 128], strides = [1, 1]} : vector<8x384xf32> to vector<8x128xf32>
    %111 = arith.mulf %98, %110 : vector<8x128xf32>
    %112 = arith.addf %109, %111 : vector<8x128xf32>
    %113 = math.tanh %112 : vector<8x128xf32>
    %cst_39 = arith.constant 1.000000e+00 : f32
    %114 = vector.broadcast %cst_39 : f32 to vector<8x128xf32>
    %115 = arith.subf %114, %108 : vector<8x128xf32>
    %116 = arith.mulf %115, %113 : vector<8x128xf32>
    %117 = arith.mulf %108, %84 : vector<8x128xf32>
    %118 = arith.addf %116, %117 : vector<8x128xf32>
    %c24 = arith.constant 24 : index
    %c0_40 = arith.constant 0 : index
    %119 = vector.load %arg21[%c24, %c0_40] : memref<64x384xf32, #tpu.memory_space<vmem>>, vector<8x384xf32>
    %120 = arith.truncf %118 : vector<8x128xf32> to vector<8x128xbf16>
    %c0_41 = arith.constant 0 : index
    %c0_42 = arith.constant 0 : index
    %121 = vector.load %arg4[%c0_41, %c0_42] : memref<128x384xbf16, #tpu.memory_space<vmem>>, vector<128x384xbf16>
    %cst_43 = arith.constant dense<0.000000e+00> : vector<8x384xf32>
    %122 = tpu.matmul %120, %121, %cst_43 {dimension_numbers = #tpu.dot_dimension_numbers<[1], [0], [0], [1], [0, 0, 1, 1], [], []>} : vector<8x128xbf16>, vector<128x384xbf16>, vector<8x384xf32> -> vector<8x384xf32>
    %123 = vector.extract_strided_slice %119 {offsets = [0, 0], sizes = [8, 128], strides = [1, 1]} : vector<8x384xf32> to vector<8x128xf32>
    %124 = vector.extract_strided_slice %122 {offsets = [0, 0], sizes = [8, 128], strides = [1, 1]} : vector<8x384xf32> to vector<8x128xf32>
    %125 = arith.addf %123, %124 : vector<8x128xf32>
    %cst_44 = arith.constant 5.000000e-01 : f32
    %126 = vector.broadcast %cst_44 : f32 to vector<8x128xf32>
    %127 = arith.mulf %126, %125 : vector<8x128xf32>
    %128 = math.tanh %127 : vector<8x128xf32>
    %cst_45 = arith.constant 5.000000e-01 : f32
    %129 = vector.broadcast %cst_45 : f32 to vector<8x128xf32>
    %130 = arith.mulf %129, %128 : vector<8x128xf32>
    %cst_46 = arith.constant 5.000000e-01 : f32
    %131 = vector.broadcast %cst_46 : f32 to vector<8x128xf32>
    %132 = arith.addf %130, %131 : vector<8x128xf32>
    %133 = vector.extract_strided_slice %119 {offsets = [0, 128], sizes = [8, 128], strides = [1, 1]} : vector<8x384xf32> to vector<8x128xf32>
    %134 = vector.extract_strided_slice %122 {offsets = [0, 128], sizes = [8, 128], strides = [1, 1]} : vector<8x384xf32> to vector<8x128xf32>
    %135 = arith.addf %133, %134 : vector<8x128xf32>
    %cst_47 = arith.constant 5.000000e-01 : f32
    %136 = vector.broadcast %cst_47 : f32 to vector<8x128xf32>
    %137 = arith.mulf %136, %135 : vector<8x128xf32>
    %138 = math.tanh %137 : vector<8x128xf32>
    %cst_48 = arith.constant 5.000000e-01 : f32
    %139 = vector.broadcast %cst_48 : f32 to vector<8x128xf32>
    %140 = arith.mulf %139, %138 : vector<8x128xf32>
    %cst_49 = arith.constant 5.000000e-01 : f32
    %141 = vector.broadcast %cst_49 : f32 to vector<8x128xf32>
    %142 = arith.addf %140, %141 : vector<8x128xf32>
    %143 = vector.extract_strided_slice %119 {offsets = [0, 256], sizes = [8, 128], strides = [1, 1]} : vector<8x384xf32> to vector<8x128xf32>
    %144 = vector.extract_strided_slice %122 {offsets = [0, 256], sizes = [8, 128], strides = [1, 1]} : vector<8x384xf32> to vector<8x128xf32>
    %145 = arith.mulf %132, %144 : vector<8x128xf32>
    %146 = arith.addf %143, %145 : vector<8x128xf32>
    %147 = math.tanh %146 : vector<8x128xf32>
    %cst_50 = arith.constant 1.000000e+00 : f32
    %148 = vector.broadcast %cst_50 : f32 to vector<8x128xf32>
    %149 = arith.subf %148, %142 : vector<8x128xf32>
    %150 = arith.mulf %149, %147 : vector<8x128xf32>
    %151 = arith.mulf %142, %118 : vector<8x128xf32>
    %152 = arith.addf %150, %151 : vector<8x128xf32>
    %c32 = arith.constant 32 : index
    %c0_51 = arith.constant 0 : index
    %153 = vector.load %arg21[%c32, %c0_51] : memref<64x384xf32, #tpu.memory_space<vmem>>, vector<8x384xf32>
    %154 = arith.truncf %152 : vector<8x128xf32> to vector<8x128xbf16>
    %c0_52 = arith.constant 0 : index
    %c0_53 = arith.constant 0 : index
    %155 = vector.load %arg4[%c0_52, %c0_53] : memref<128x384xbf16, #tpu.memory_space<vmem>>, vector<128x384xbf16>
    %cst_54 = arith.constant dense<0.000000e+00> : vector<8x384xf32>
    %156 = tpu.matmul %154, %155, %cst_54 {dimension_numbers = #tpu.dot_dimension_numbers<[1], [0], [0], [1], [0, 0, 1, 1], [], []>} : vector<8x128xbf16>, vector<128x384xbf16>, vector<8x384xf32> -> vector<8x384xf32>
    %157 = vector.extract_strided_slice %153 {offsets = [0, 0], sizes = [8, 128], strides = [1, 1]} : vector<8x384xf32> to vector<8x128xf32>
    %158 = vector.extract_strided_slice %156 {offsets = [0, 0], sizes = [8, 128], strides = [1, 1]} : vector<8x384xf32> to vector<8x128xf32>
    %159 = arith.addf %157, %158 : vector<8x128xf32>
    %cst_55 = arith.constant 5.000000e-01 : f32
    %160 = vector.broadcast %cst_55 : f32 to vector<8x128xf32>
    %161 = arith.mulf %160, %159 : vector<8x128xf32>
    %162 = math.tanh %161 : vector<8x128xf32>
    %cst_56 = arith.constant 5.000000e-01 : f32
    %163 = vector.broadcast %cst_56 : f32 to vector<8x128xf32>
    %164 = arith.mulf %163, %162 : vector<8x128xf32>
    %cst_57 = arith.constant 5.000000e-01 : f32
    %165 = vector.broadcast %cst_57 : f32 to vector<8x128xf32>
    %166 = arith.addf %164, %165 : vector<8x128xf32>
    %167 = vector.extract_strided_slice %153 {offsets = [0, 128], sizes = [8, 128], strides = [1, 1]} : vector<8x384xf32> to vector<8x128xf32>
    %168 = vector.extract_strided_slice %156 {offsets = [0, 128], sizes = [8, 128], strides = [1, 1]} : vector<8x384xf32> to vector<8x128xf32>
    %169 = arith.addf %167, %168 : vector<8x128xf32>
    %cst_58 = arith.constant 5.000000e-01 : f32
    %170 = vector.broadcast %cst_58 : f32 to vector<8x128xf32>
    %171 = arith.mulf %170, %169 : vector<8x128xf32>
    %172 = math.tanh %171 : vector<8x128xf32>
    %cst_59 = arith.constant 5.000000e-01 : f32
    %173 = vector.broadcast %cst_59 : f32 to vector<8x128xf32>
    %174 = arith.mulf %173, %172 : vector<8x128xf32>
    %cst_60 = arith.constant 5.000000e-01 : f32
    %175 = vector.broadcast %cst_60 : f32 to vector<8x128xf32>
    %176 = arith.addf %174, %175 : vector<8x128xf32>
    %177 = vector.extract_strided_slice %153 {offsets = [0, 256], sizes = [8, 128], strides = [1, 1]} : vector<8x384xf32> to vector<8x128xf32>
    %178 = vector.extract_strided_slice %156 {offsets = [0, 256], sizes = [8, 128], strides = [1, 1]} : vector<8x384xf32> to vector<8x128xf32>
    %179 = arith.mulf %166, %178 : vector<8x128xf32>
    %180 = arith.addf %177, %179 : vector<8x128xf32>
    %181 = math.tanh %180 : vector<8x128xf32>
    %cst_61 = arith.constant 1.000000e+00 : f32
    %182 = vector.broadcast %cst_61 : f32 to vector<8x128xf32>
    %183 = arith.subf %182, %176 : vector<8x128xf32>
    %184 = arith.mulf %183, %181 : vector<8x128xf32>
    %185 = arith.mulf %176, %152 : vector<8x128xf32>
    %186 = arith.addf %184, %185 : vector<8x128xf32>
    %c40 = arith.constant 40 : index
    %c0_62 = arith.constant 0 : index
    %187 = vector.load %arg21[%c40, %c0_62] : memref<64x384xf32, #tpu.memory_space<vmem>>, vector<8x384xf32>
    %188 = arith.truncf %186 : vector<8x128xf32> to vector<8x128xbf16>
    %c0_63 = arith.constant 0 : index
    %c0_64 = arith.constant 0 : index
    %189 = vector.load %arg4[%c0_63, %c0_64] : memref<128x384xbf16, #tpu.memory_space<vmem>>, vector<128x384xbf16>
    %cst_65 = arith.constant dense<0.000000e+00> : vector<8x384xf32>
    %190 = tpu.matmul %188, %189, %cst_65 {dimension_numbers = #tpu.dot_dimension_numbers<[1], [0], [0], [1], [0, 0, 1, 1], [], []>} : vector<8x128xbf16>, vector<128x384xbf16>, vector<8x384xf32> -> vector<8x384xf32>
    %191 = vector.extract_strided_slice %187 {offsets = [0, 0], sizes = [8, 128], strides = [1, 1]} : vector<8x384xf32> to vector<8x128xf32>
    %192 = vector.extract_strided_slice %190 {offsets = [0, 0], sizes = [8, 128], strides = [1, 1]} : vector<8x384xf32> to vector<8x128xf32>
    %193 = arith.addf %191, %192 : vector<8x128xf32>
    %cst_66 = arith.constant 5.000000e-01 : f32
    %194 = vector.broadcast %cst_66 : f32 to vector<8x128xf32>
    %195 = arith.mulf %194, %193 : vector<8x128xf32>
    %196 = math.tanh %195 : vector<8x128xf32>
    %cst_67 = arith.constant 5.000000e-01 : f32
    %197 = vector.broadcast %cst_67 : f32 to vector<8x128xf32>
    %198 = arith.mulf %197, %196 : vector<8x128xf32>
    %cst_68 = arith.constant 5.000000e-01 : f32
    %199 = vector.broadcast %cst_68 : f32 to vector<8x128xf32>
    %200 = arith.addf %198, %199 : vector<8x128xf32>
    %201 = vector.extract_strided_slice %187 {offsets = [0, 128], sizes = [8, 128], strides = [1, 1]} : vector<8x384xf32> to vector<8x128xf32>
    %202 = vector.extract_strided_slice %190 {offsets = [0, 128], sizes = [8, 128], strides = [1, 1]} : vector<8x384xf32> to vector<8x128xf32>
    %203 = arith.addf %201, %202 : vector<8x128xf32>
    %cst_69 = arith.constant 5.000000e-01 : f32
    %204 = vector.broadcast %cst_69 : f32 to vector<8x128xf32>
    %205 = arith.mulf %204, %203 : vector<8x128xf32>
    %206 = math.tanh %205 : vector<8x128xf32>
    %cst_70 = arith.constant 5.000000e-01 : f32
    %207 = vector.broadcast %cst_70 : f32 to vector<8x128xf32>
    %208 = arith.mulf %207, %206 : vector<8x128xf32>
    %cst_71 = arith.constant 5.000000e-01 : f32
    %209 = vector.broadcast %cst_71 : f32 to vector<8x128xf32>
    %210 = arith.addf %208, %209 : vector<8x128xf32>
    %211 = vector.extract_strided_slice %187 {offsets = [0, 256], sizes = [8, 128], strides = [1, 1]} : vector<8x384xf32> to vector<8x128xf32>
    %212 = vector.extract_strided_slice %190 {offsets = [0, 256], sizes = [8, 128], strides = [1, 1]} : vector<8x384xf32> to vector<8x128xf32>
    %213 = arith.mulf %200, %212 : vector<8x128xf32>
    %214 = arith.addf %211, %213 : vector<8x128xf32>
    %215 = math.tanh %214 : vector<8x128xf32>
    %cst_72 = arith.constant 1.000000e+00 : f32
    %216 = vector.broadcast %cst_72 : f32 to vector<8x128xf32>
    %217 = arith.subf %216, %210 : vector<8x128xf32>
    %218 = arith.mulf %217, %215 : vector<8x128xf32>
    %219 = arith.mulf %210, %186 : vector<8x128xf32>
    %220 = arith.addf %218, %219 : vector<8x128xf32>
    %c48 = arith.constant 48 : index
    %c0_73 = arith.constant 0 : index
    %221 = vector.load %arg21[%c48, %c0_73] : memref<64x384xf32, #tpu.memory_space<vmem>>, vector<8x384xf32>
    %222 = arith.truncf %220 : vector<8x128xf32> to vector<8x128xbf16>
    %c0_74 = arith.constant 0 : index
    %c0_75 = arith.constant 0 : index
    %223 = vector.load %arg4[%c0_74, %c0_75] : memref<128x384xbf16, #tpu.memory_space<vmem>>, vector<128x384xbf16>
    %cst_76 = arith.constant dense<0.000000e+00> : vector<8x384xf32>
    %224 = tpu.matmul %222, %223, %cst_76 {dimension_numbers = #tpu.dot_dimension_numbers<[1], [0], [0], [1], [0, 0, 1, 1], [], []>} : vector<8x128xbf16>, vector<128x384xbf16>, vector<8x384xf32> -> vector<8x384xf32>
    %225 = vector.extract_strided_slice %221 {offsets = [0, 0], sizes = [8, 128], strides = [1, 1]} : vector<8x384xf32> to vector<8x128xf32>
    %226 = vector.extract_strided_slice %224 {offsets = [0, 0], sizes = [8, 128], strides = [1, 1]} : vector<8x384xf32> to vector<8x128xf32>
    %227 = arith.addf %225, %226 : vector<8x128xf32>
    %cst_77 = arith.constant 5.000000e-01 : f32
    %228 = vector.broadcast %cst_77 : f32 to vector<8x128xf32>
    %229 = arith.mulf %228, %227 : vector<8x128xf32>
    %230 = math.tanh %229 : vector<8x128xf32>
    %cst_78 = arith.constant 5.000000e-01 : f32
    %231 = vector.broadcast %cst_78 : f32 to vector<8x128xf32>
    %232 = arith.mulf %231, %230 : vector<8x128xf32>
    %cst_79 = arith.constant 5.000000e-01 : f32
    %233 = vector.broadcast %cst_79 : f32 to vector<8x128xf32>
    %234 = arith.addf %232, %233 : vector<8x128xf32>
    %235 = vector.extract_strided_slice %221 {offsets = [0, 128], sizes = [8, 128], strides = [1, 1]} : vector<8x384xf32> to vector<8x128xf32>
    %236 = vector.extract_strided_slice %224 {offsets = [0, 128], sizes = [8, 128], strides = [1, 1]} : vector<8x384xf32> to vector<8x128xf32>
    %237 = arith.addf %235, %236 : vector<8x128xf32>
    %cst_80 = arith.constant 5.000000e-01 : f32
    %238 = vector.broadcast %cst_80 : f32 to vector<8x128xf32>
    %239 = arith.mulf %238, %237 : vector<8x128xf32>
    %240 = math.tanh %239 : vector<8x128xf32>
    %cst_81 = arith.constant 5.000000e-01 : f32
    %241 = vector.broadcast %cst_81 : f32 to vector<8x128xf32>
    %242 = arith.mulf %241, %240 : vector<8x128xf32>
    %cst_82 = arith.constant 5.000000e-01 : f32
    %243 = vector.broadcast %cst_82 : f32 to vector<8x128xf32>
    %244 = arith.addf %242, %243 : vector<8x128xf32>
    %245 = vector.extract_strided_slice %221 {offsets = [0, 256], sizes = [8, 128], strides = [1, 1]} : vector<8x384xf32> to vector<8x128xf32>
    %246 = vector.extract_strided_slice %224 {offsets = [0, 256], sizes = [8, 128], strides = [1, 1]} : vector<8x384xf32> to vector<8x128xf32>
    %247 = arith.mulf %234, %246 : vector<8x128xf32>
    %248 = arith.addf %245, %247 : vector<8x128xf32>
    %249 = math.tanh %248 : vector<8x128xf32>
    %cst_83 = arith.constant 1.000000e+00 : f32
    %250 = vector.broadcast %cst_83 : f32 to vector<8x128xf32>
    %251 = arith.subf %250, %244 : vector<8x128xf32>
    %252 = arith.mulf %251, %249 : vector<8x128xf32>
    %253 = arith.mulf %244, %220 : vector<8x128xf32>
    %254 = arith.addf %252, %253 : vector<8x128xf32>
    %c56 = arith.constant 56 : index
    %c0_84 = arith.constant 0 : index
    %255 = vector.load %arg21[%c56, %c0_84] : memref<64x384xf32, #tpu.memory_space<vmem>>, vector<8x384xf32>
    %256 = arith.truncf %254 : vector<8x128xf32> to vector<8x128xbf16>
    %c0_85 = arith.constant 0 : index
    %c0_86 = arith.constant 0 : index
    %257 = vector.load %arg4[%c0_85, %c0_86] : memref<128x384xbf16, #tpu.memory_space<vmem>>, vector<128x384xbf16>
    %cst_87 = arith.constant dense<0.000000e+00> : vector<8x384xf32>
    %258 = tpu.matmul %256, %257, %cst_87 {dimension_numbers = #tpu.dot_dimension_numbers<[1], [0], [0], [1], [0, 0, 1, 1], [], []>} : vector<8x128xbf16>, vector<128x384xbf16>, vector<8x384xf32> -> vector<8x384xf32>
    %259 = vector.extract_strided_slice %255 {offsets = [0, 0], sizes = [8, 128], strides = [1, 1]} : vector<8x384xf32> to vector<8x128xf32>
    %260 = vector.extract_strided_slice %258 {offsets = [0, 0], sizes = [8, 128], strides = [1, 1]} : vector<8x384xf32> to vector<8x128xf32>
    %261 = arith.addf %259, %260 : vector<8x128xf32>
    %cst_88 = arith.constant 5.000000e-01 : f32
    %262 = vector.broadcast %cst_88 : f32 to vector<8x128xf32>
    %263 = arith.mulf %262, %261 : vector<8x128xf32>
    %264 = math.tanh %263 : vector<8x128xf32>
    %cst_89 = arith.constant 5.000000e-01 : f32
    %265 = vector.broadcast %cst_89 : f32 to vector<8x128xf32>
    %266 = arith.mulf %265, %264 : vector<8x128xf32>
    %cst_90 = arith.constant 5.000000e-01 : f32
    %267 = vector.broadcast %cst_90 : f32 to vector<8x128xf32>
    %268 = arith.addf %266, %267 : vector<8x128xf32>
    %269 = vector.extract_strided_slice %255 {offsets = [0, 128], sizes = [8, 128], strides = [1, 1]} : vector<8x384xf32> to vector<8x128xf32>
    %270 = vector.extract_strided_slice %258 {offsets = [0, 128], sizes = [8, 128], strides = [1, 1]} : vector<8x384xf32> to vector<8x128xf32>
    %271 = arith.addf %269, %270 : vector<8x128xf32>
    %cst_91 = arith.constant 5.000000e-01 : f32
    %272 = vector.broadcast %cst_91 : f32 to vector<8x128xf32>
    %273 = arith.mulf %272, %271 : vector<8x128xf32>
    %274 = math.tanh %273 : vector<8x128xf32>
    %cst_92 = arith.constant 5.000000e-01 : f32
    %275 = vector.broadcast %cst_92 : f32 to vector<8x128xf32>
    %276 = arith.mulf %275, %274 : vector<8x128xf32>
    %cst_93 = arith.constant 5.000000e-01 : f32
    %277 = vector.broadcast %cst_93 : f32 to vector<8x128xf32>
    %278 = arith.addf %276, %277 : vector<8x128xf32>
    %279 = vector.extract_strided_slice %255 {offsets = [0, 256], sizes = [8, 128], strides = [1, 1]} : vector<8x384xf32> to vector<8x128xf32>
    %280 = vector.extract_strided_slice %258 {offsets = [0, 256], sizes = [8, 128], strides = [1, 1]} : vector<8x384xf32> to vector<8x128xf32>
    %281 = arith.mulf %268, %280 : vector<8x128xf32>
    %282 = arith.addf %279, %281 : vector<8x128xf32>
    %283 = math.tanh %282 : vector<8x128xf32>
    %cst_94 = arith.constant 1.000000e+00 : f32
    %284 = vector.broadcast %cst_94 : f32 to vector<8x128xf32>
    %285 = arith.subf %284, %278 : vector<8x128xf32>
    %286 = arith.mulf %285, %283 : vector<8x128xf32>
    %287 = arith.mulf %278, %254 : vector<8x128xf32>
    %288 = arith.addf %286, %287 : vector<8x128xf32>
    %c0_i32_95 = arith.constant 0 : i32
    %289 = tpu.memref_slice %arg20[%c0_i32_95] : memref<6x!tpu.dma_semaphore, #tpu.memory_space<semaphore_mem>> -> memref<1x!tpu.dma_semaphore, #tpu.memory_space<semaphore_mem>>
    %290 = tpu.memref_squeeze %289 : memref<1x!tpu.dma_semaphore, #tpu.memory_space<semaphore_mem>> -> memref<!tpu.dma_semaphore, #tpu.memory_space<semaphore_mem>>
    tpu.wait_dma2 semaphore(%290 : memref<!tpu.dma_semaphore, #tpu.memory_space<semaphore_mem>>) src(%arg6 : memref<160x1024xbf16, #tpu.memory_space<any>>) dst(%arg14 : memref<160x1024xbf16, #tpu.memory_space<vmem>>)
    %c0_96 = arith.constant 0 : index
    %c0_97 = arith.constant 0 : index
    %291 = vector.load %arg1[%c0_96, %c0_97] : memref<8x160xf32, #tpu.memory_space<vmem>>, vector<8x160xf32>
    %292 = arith.truncf %291 : vector<8x160xf32> to vector<8x160xbf16>
    %c0_98 = arith.constant 0 : index
    %c0_99 = arith.constant 0 : index
    %293 = vector.load %arg14[%c0_98, %c0_99] : memref<160x1024xbf16, #tpu.memory_space<vmem>>, vector<160x1024xbf16>
    %cst_100 = arith.constant dense<0.000000e+00> : vector<8x1024xf32>
    %294 = tpu.matmul %292, %293, %cst_100 {dimension_numbers = #tpu.dot_dimension_numbers<[1], [0], [0], [1], [0, 0, 1, 1], [], []>} : vector<8x160xbf16>, vector<160x1024xbf16>, vector<8x1024xf32> -> vector<8x1024xf32>
    %c0_101 = arith.constant 0 : index
    %c0_102 = arith.constant 0 : index
    %295 = vector.load %arg5[%c0_101, %c0_102] : memref<8x1024xf32, #tpu.memory_space<vmem>>, vector<1x1024xf32>
    %296 = vector.broadcast %295 : vector<1x1024xf32> to vector<8x1024xf32>
    %297 = arith.addf %294, %296 : vector<8x1024xf32>
    %cst_103 = arith.constant 0.000000e+00 : f32
    %298 = vector.broadcast %cst_103 : f32 to vector<8x1024xf32>
    %299 = arith.maximumf %297, %298 : vector<8x1024xf32>
    %300 = vector.extract_strided_slice %299 {offsets = [0, 0], sizes = [8, 256], strides = [1, 1]} : vector<8x1024xf32> to vector<8x256xf32>
    %301 = vector.extract_strided_slice %299 {offsets = [0, 256], sizes = [8, 256], strides = [1, 1]} : vector<8x1024xf32> to vector<8x256xf32>
    %302 = arith.maximumf %300, %301 : vector<8x256xf32>
    %303 = vector.extract_strided_slice %299 {offsets = [0, 512], sizes = [8, 256], strides = [1, 1]} : vector<8x1024xf32> to vector<8x256xf32>
    %304 = vector.extract_strided_slice %299 {offsets = [0, 768], sizes = [8, 256], strides = [1, 1]} : vector<8x1024xf32> to vector<8x256xf32>
    %305 = arith.maximumf %303, %304 : vector<8x256xf32>
    %306 = arith.maximumf %302, %305 : vector<8x256xf32>
    %c1_i32_104 = arith.constant 1 : i32
    %307 = tpu.memref_slice %arg20[%c1_i32_104] : memref<6x!tpu.dma_semaphore, #tpu.memory_space<semaphore_mem>> -> memref<1x!tpu.dma_semaphore, #tpu.memory_space<semaphore_mem>>
    %308 = tpu.memref_squeeze %307 : memref<1x!tpu.dma_semaphore, #tpu.memory_space<semaphore_mem>> -> memref<!tpu.dma_semaphore, #tpu.memory_space<semaphore_mem>>
    tpu.wait_dma2 semaphore(%308 : memref<!tpu.dma_semaphore, #tpu.memory_space<semaphore_mem>>) src(%arg7 : memref<256x128xbf16, #tpu.memory_space<any>>) dst(%arg15 : memref<256x128xbf16, #tpu.memory_space<vmem>>)
    %309 = arith.truncf %306 : vector<8x256xf32> to vector<8x256xbf16>
    %c0_105 = arith.constant 0 : index
    %c0_106 = arith.constant 0 : index
    %310 = vector.load %arg15[%c0_105, %c0_106] : memref<256x128xbf16, #tpu.memory_space<vmem>>, vector<256x128xbf16>
    %cst_107 = arith.constant dense<0.000000e+00> : vector<8x128xf32>
    %311 = tpu.matmul %309, %310, %cst_107 {dimension_numbers = #tpu.dot_dimension_numbers<[1], [0], [0], [1], [0, 0, 1, 1], [], []>} : vector<8x256xbf16>, vector<256x128xbf16>, vector<8x128xf32> -> vector<8x128xf32>
    %c1 = arith.constant 1 : index
    %c0_108 = arith.constant 0 : index
    %312 = vector.load %arg5[%c1, %c0_108] : memref<8x1024xf32, #tpu.memory_space<vmem>>, vector<1x128xf32>
    %313 = vector.broadcast %312 : vector<1x128xf32> to vector<8x128xf32>
    %314 = arith.addf %311, %313 : vector<8x128xf32>
    %cst_109 = arith.constant 0.000000e+00 : f32
    %315 = vector.broadcast %cst_109 : f32 to vector<8x128xf32>
    %316 = arith.maximumf %314, %315 : vector<8x128xf32>
    %c2_i32_110 = arith.constant 2 : i32
    %317 = tpu.memref_slice %arg20[%c2_i32_110] : memref<6x!tpu.dma_semaphore, #tpu.memory_space<semaphore_mem>> -> memref<1x!tpu.dma_semaphore, #tpu.memory_space<semaphore_mem>>
    %318 = tpu.memref_squeeze %317 : memref<1x!tpu.dma_semaphore, #tpu.memory_space<semaphore_mem>> -> memref<!tpu.dma_semaphore, #tpu.memory_space<semaphore_mem>>
    tpu.wait_dma2 semaphore(%318 : memref<!tpu.dma_semaphore, #tpu.memory_space<semaphore_mem>>) src(%arg8 : memref<128x128xbf16, #tpu.memory_space<any>>) dst(%arg16 : memref<128x128xbf16, #tpu.memory_space<vmem>>)
    %319 = arith.truncf %316 : vector<8x128xf32> to vector<8x128xbf16>
    %c0_111 = arith.constant 0 : index
    %c0_112 = arith.constant 0 : index
    %320 = vector.load %arg16[%c0_111, %c0_112] : memref<128x128xbf16, #tpu.memory_space<vmem>>, vector<128x128xbf16>
    %cst_113 = arith.constant dense<0.000000e+00> : vector<8x128xf32>
    %321 = tpu.matmul %319, %320, %cst_113 {dimension_numbers = #tpu.dot_dimension_numbers<[1], [0], [0], [1], [0, 0, 1, 1], [], []>} : vector<8x128xbf16>, vector<128x128xbf16>, vector<8x128xf32> -> vector<8x128xf32>
    %c2 = arith.constant 2 : index
    %c0_114 = arith.constant 0 : index
    %322 = vector.load %arg5[%c2, %c0_114] : memref<8x1024xf32, #tpu.memory_space<vmem>>, vector<1x128xf32>
    %323 = vector.broadcast %322 : vector<1x128xf32> to vector<8x128xf32>
    %324 = arith.addf %321, %323 : vector<8x128xf32>
    %cst_115 = arith.constant 0.000000e+00 : f32
    %325 = vector.broadcast %cst_115 : f32 to vector<8x128xf32>
    %326 = arith.maximumf %324, %325 : vector<8x128xf32>
    %c0_116 = arith.constant 0 : index
    %c0_117 = arith.constant 0 : index
    %327 = vector.load %arg2[%c0_116, %c0_117] : memref<8x256xf32, #tpu.memory_space<vmem>>, vector<8x128xf32>
    %c0_118 = arith.constant 0 : index
    %c128 = arith.constant 128 : index
    %328 = vector.load %arg2[%c0_118, %c128] : memref<8x256xf32, #tpu.memory_space<vmem>>, vector<8x128xf32>
    %c3_i32_119 = arith.constant 3 : i32
    %329 = tpu.memref_slice %arg20[%c3_i32_119] : memref<6x!tpu.dma_semaphore, #tpu.memory_space<semaphore_mem>> -> memref<1x!tpu.dma_semaphore, #tpu.memory_space<semaphore_mem>>
    %330 = tpu.memref_squeeze %329 : memref<1x!tpu.dma_semaphore, #tpu.memory_space<semaphore_mem>> -> memref<!tpu.dma_semaphore, #tpu.memory_space<semaphore_mem>>
    tpu.wait_dma2 semaphore(%330 : memref<!tpu.dma_semaphore, #tpu.memory_space<semaphore_mem>>) src(%arg9 : memref<256x512xbf16, #tpu.memory_space<any>>) dst(%arg17 : memref<256x512xbf16, #tpu.memory_space<vmem>>)
    %331 = tpu.concatenate %326, %327 in 1 : vector<8x128xf32>, vector<8x128xf32> -> vector<8x256xf32>
    %332 = arith.truncf %331 : vector<8x256xf32> to vector<8x256xbf16>
    %c0_120 = arith.constant 0 : index
    %c0_121 = arith.constant 0 : index
    %333 = vector.load %arg17[%c0_120, %c0_121] : memref<256x512xbf16, #tpu.memory_space<vmem>>, vector<256x512xbf16>
    %cst_122 = arith.constant dense<0.000000e+00> : vector<8x512xf32>
    %334 = tpu.matmul %332, %333, %cst_122 {dimension_numbers = #tpu.dot_dimension_numbers<[1], [0], [0], [1], [0, 0, 1, 1], [], []>} : vector<8x256xbf16>, vector<256x512xbf16>, vector<8x512xf32> -> vector<8x512xf32>
    %c3 = arith.constant 3 : index
    %c0_123 = arith.constant 0 : index
    %335 = vector.load %arg5[%c3, %c0_123] : memref<8x1024xf32, #tpu.memory_space<vmem>>, vector<1x512xf32>
    %336 = vector.broadcast %335 : vector<1x512xf32> to vector<8x512xf32>
    %337 = arith.addf %334, %336 : vector<8x512xf32>
    %338 = vector.extract_strided_slice %337 {offsets = [0, 0], sizes = [8, 128], strides = [1, 1]} : vector<8x512xf32> to vector<8x128xf32>
    %cst_124 = arith.constant 5.000000e-01 : f32
    %339 = vector.broadcast %cst_124 : f32 to vector<8x128xf32>
    %340 = arith.mulf %339, %338 : vector<8x128xf32>
    %341 = math.tanh %340 : vector<8x128xf32>
    %cst_125 = arith.constant 5.000000e-01 : f32
    %342 = vector.broadcast %cst_125 : f32 to vector<8x128xf32>
    %343 = arith.mulf %342, %341 : vector<8x128xf32>
    %cst_126 = arith.constant 5.000000e-01 : f32
    %344 = vector.broadcast %cst_126 : f32 to vector<8x128xf32>
    %345 = arith.addf %343, %344 : vector<8x128xf32>
    %346 = vector.extract_strided_slice %337 {offsets = [0, 128], sizes = [8, 128], strides = [1, 1]} : vector<8x512xf32> to vector<8x128xf32>
    %cst_127 = arith.constant 5.000000e-01 : f32
    %347 = vector.broadcast %cst_127 : f32 to vector<8x128xf32>
    %348 = arith.mulf %347, %346 : vector<8x128xf32>
    %349 = math.tanh %348 : vector<8x128xf32>
    %cst_128 = arith.constant 5.000000e-01 : f32
    %350 = vector.broadcast %cst_128 : f32 to vector<8x128xf32>
    %351 = arith.mulf %350, %349 : vector<8x128xf32>
    %cst_129 = arith.constant 5.000000e-01 : f32
    %352 = vector.broadcast %cst_129 : f32 to vector<8x128xf32>
    %353 = arith.addf %351, %352 : vector<8x128xf32>
    %354 = vector.extract_strided_slice %337 {offsets = [0, 256], sizes = [8, 128], strides = [1, 1]} : vector<8x512xf32> to vector<8x128xf32>
    %355 = math.tanh %354 : vector<8x128xf32>
    %356 = vector.extract_strided_slice %337 {offsets = [0, 384], sizes = [8, 128], strides = [1, 1]} : vector<8x512xf32> to vector<8x128xf32>
    %cst_130 = arith.constant 5.000000e-01 : f32
    %357 = vector.broadcast %cst_130 : f32 to vector<8x128xf32>
    %358 = arith.mulf %357, %356 : vector<8x128xf32>
    %359 = math.tanh %358 : vector<8x128xf32>
    %cst_131 = arith.constant 5.000000e-01 : f32
    %360 = vector.broadcast %cst_131 : f32 to vector<8x128xf32>
    %361 = arith.mulf %360, %359 : vector<8x128xf32>
    %cst_132 = arith.constant 5.000000e-01 : f32
    %362 = vector.broadcast %cst_132 : f32 to vector<8x128xf32>
    %363 = arith.addf %361, %362 : vector<8x128xf32>
    %364 = arith.mulf %353, %328 : vector<8x128xf32>
    %365 = arith.mulf %345, %355 : vector<8x128xf32>
    %366 = arith.addf %364, %365 : vector<8x128xf32>
    %367 = math.tanh %366 : vector<8x128xf32>
    %368 = arith.mulf %363, %367 : vector<8x128xf32>
    %369 = tpu.concatenate %368, %366 in 1 : vector<8x128xf32>, vector<8x128xf32> -> vector<8x256xf32>
    %c0_133 = arith.constant 0 : index
    %c0_134 = arith.constant 0 : index
    %370 = vector.load %arg13[%c0_133, %c0_134] : memref<8x256xf32, #tpu.memory_space<vmem>>, vector<8x256xf32>
    tpu.vector_store %arg13[%c0_133, %c0_134], %369 {strides = array<i32>} : memref<8x256xf32, #tpu.memory_space<vmem>>, vector<8x256xf32>,
    %371 = tpu.concatenate %368, %288 in 1 : vector<8x128xf32>, vector<8x128xf32> -> vector<8x256xf32>
    %c4_i32_135 = arith.constant 4 : i32
    %372 = tpu.memref_slice %arg20[%c4_i32_135] : memref<6x!tpu.dma_semaphore, #tpu.memory_space<semaphore_mem>> -> memref<1x!tpu.dma_semaphore, #tpu.memory_space<semaphore_mem>>
    %373 = tpu.memref_squeeze %372 : memref<1x!tpu.dma_semaphore, #tpu.memory_space<semaphore_mem>> -> memref<!tpu.dma_semaphore, #tpu.memory_space<semaphore_mem>>
    tpu.wait_dma2 semaphore(%373 : memref<!tpu.dma_semaphore, #tpu.memory_space<semaphore_mem>>) src(%arg10 : memref<256x128xbf16, #tpu.memory_space<any>>) dst(%arg18 : memref<256x128xbf16, #tpu.memory_space<vmem>>)
    %374 = arith.truncf %371 : vector<8x256xf32> to vector<8x256xbf16>
    %c0_136 = arith.constant 0 : index
    %c0_137 = arith.constant 0 : index
    %375 = vector.load %arg18[%c0_136, %c0_137] : memref<256x128xbf16, #tpu.memory_space<vmem>>, vector<256x128xbf16>
    %cst_138 = arith.constant dense<0.000000e+00> : vector<8x128xf32>
    %376 = tpu.matmul %374, %375, %cst_138 {dimension_numbers = #tpu.dot_dimension_numbers<[1], [0], [0], [1], [0, 0, 1, 1], [], []>} : vector<8x256xbf16>, vector<256x128xbf16>, vector<8x128xf32> -> vector<8x128xf32>
    %c4 = arith.constant 4 : index
    %c0_139 = arith.constant 0 : index
    %377 = vector.load %arg5[%c4, %c0_139] : memref<8x1024xf32, #tpu.memory_space<vmem>>, vector<1x128xf32>
    %378 = vector.broadcast %377 : vector<1x128xf32> to vector<8x128xf32>
    %379 = arith.addf %376, %378 : vector<8x128xf32>
    %380 = math.tanh %379 : vector<8x128xf32>
    %c5_i32_140 = arith.constant 5 : i32
    %381 = tpu.memref_slice %arg20[%c5_i32_140] : memref<6x!tpu.dma_semaphore, #tpu.memory_space<semaphore_mem>> -> memref<1x!tpu.dma_semaphore, #tpu.memory_space<semaphore_mem>>
    %382 = tpu.memref_squeeze %381 : memref<1x!tpu.dma_semaphore, #tpu.memory_space<semaphore_mem>> -> memref<!tpu.dma_semaphore, #tpu.memory_space<semaphore_mem>>
    tpu.wait_dma2 semaphore(%382 : memref<!tpu.dma_semaphore, #tpu.memory_space<semaphore_mem>>) src(%arg11 : memref<128x128xbf16, #tpu.memory_space<any>>) dst(%arg19 : memref<128x128xbf16, #tpu.memory_space<vmem>>)
    %383 = arith.truncf %380 : vector<8x128xf32> to vector<8x128xbf16>
    %c0_141 = arith.constant 0 : index
    %c0_142 = arith.constant 0 : index
    %384 = vector.load %arg19[%c0_141, %c0_142] : memref<128x128xbf16, #tpu.memory_space<vmem>>, vector<128x128xbf16>
    %cst_143 = arith.constant dense<0.000000e+00> : vector<8x128xf32>
    %385 = tpu.matmul %383, %384, %cst_143 {dimension_numbers = #tpu.dot_dimension_numbers<[1], [0], [0], [1], [0, 0, 1, 1], [], []>} : vector<8x128xbf16>, vector<128x128xbf16>, vector<8x128xf32> -> vector<8x128xf32>
    %c5 = arith.constant 5 : index
    %c0_144 = arith.constant 0 : index
    %386 = vector.load %arg5[%c5, %c0_144] : memref<8x1024xf32, #tpu.memory_space<vmem>>, vector<1x128xf32>
    %387 = vector.broadcast %386 : vector<1x128xf32> to vector<8x128xf32>
    %388 = arith.addf %385, %387 : vector<8x128xf32>
    %389 = tpu.iota {dimensions = array<i32: 1>} : vector<8x128xi32>
    %c7_i32 = arith.constant 7 : i32
    %390 = vector.broadcast %c7_i32 : i32 to vector<8x128xi32>
    %391 = arith.cmpi slt, %389, %390 : vector<8x128xi32>
    %cst_145 = arith.constant 0xFF800000 : f32
    %392 = vector.broadcast %cst_145 : f32 to vector<8x128xf32>
    %393 = arith.select %391, %388, %392 : vector<8x128xi1>, vector<8x128xf32>
    %cst_146 = arith.constant dense<0xFF800000> : vector<8xf32>
    %394 = vector.multi_reduction <maximumf>, %393, %cst_146 [1] : vector<8x128xf32> to vector<8xf32>
    %395 = vector.shape_cast %394 : vector<8xf32> to vector<8x1xf32>
    %396 = vector.broadcast %395 : vector<8x1xf32> to vector<8x128xf32>
    %397 = arith.subf %393, %396 : vector<8x128xf32>
    %398 = math.exp %397 : vector<8x128xf32>
    %cst_147 = arith.constant dense<0.000000e+00> : vector<8xf32>
    %399 = vector.multi_reduction <add>, %398, %cst_147 [1] : vector<8x128xf32> to vector<8xf32>
    %400 = vector.shape_cast %399 : vector<8xf32> to vector<8x1xf32>
    %401 = math.log %400 : vector<8x1xf32>
    %402 = arith.addf %395, %401 : vector<8x1xf32>
    %cst_148 = arith.constant 0.000000e+00 : f32
    %403 = vector.shape_cast %402 : vector<8x1xf32> to vector<8x1xf32>
    %404 = vector.broadcast %403 : vector<8x1xf32> to vector<8x128xf32>
    %405 = vector.broadcast %cst_148 : f32 to vector<8x128xf32>
    %406 = arith.select %391, %404, %405 : vector<8x128xi1>, vector<8x128xf32>
    %407 = arith.subf %388, %406 : vector<8x128xf32>
    %c0_149 = arith.constant 0 : index
    %c0_150 = arith.constant 0 : index
    %408 = vector.load %arg12[%c0_149, %c0_150] : memref<8x128xf32, #tpu.memory_space<vmem>>, vector<8x128xf32>
    tpu.vector_store %arg12[%c0_149, %c0_150], %407 {strides = array<i32>} : memref<8x128xf32, #tpu.memory_space<vmem>>, vector<8x128xf32>,
    return
  }
}

</mosaic_0001>

<bundles_post_ra>
// kernel: student_forward.1
= control target key start
LH: loop header
LB: loop body
LE: loop exit
PB: predicated region body
PF: predicated region fallthrough
CT: control target
= control target key end

     0   :  { %s36_s25 = sld [smem:[#allocation0]]   ;;  %s2908_s26 = smov [#allocation2]   ;;  %s3850_s0 = inlined_call_operand.vmem [shape: f32[64,16], index: 0, kind: input, shape index: {}]   ;;  %s3851_s1 = inlined_call_operand.vmem [shape: f32[8,160], index: 1, kind: input, shape index: {}]   ;;  %s3852_s2 = inlined_call_operand.vmem [shape: f32[8,256], index: 2, kind: input, shape index: {}]   ;;  %s3853_s3 = inlined_call_operand.vmem [shape: f32[16,384], index: 3, kind: input, shape index: {}]   ;;  %s3854_s4 = inlined_call_operand.vmem [shape: bf16[128,384], index: 4, kind: input, shape index: {}]   ;;  %s3855_s5 = inlined_call_operand.vmem [shape: f32[8,1024], index: 5, kind: input, shape index: {}]   ;;  %s3856_s6 = inlined_call_operand.hbm [shape: bf16[160,1024], index: 6, kind: input, shape index: {}]   ;;  %s3857_s7 = inlined_call_operand.vmem [shape: bf16[256,128], index: 7, kind: input, shape index: {}]   ;;  %s3858_s8 = inlined_call_operand.hbm [shape: bf16[128,128], index: 8, kind: input, shape index: {}]   ;;  %s3859_s9 = inlined_call_operand.hbm [shape: bf16[256,512], index: 9, kind: input, shape index: {}]   ;;  %s3860_s10 = inlined_call_operand.hbm [shape: bf16[256,128], index: 10, kind: input, shape index: {}]   ;;  %s3861_s11 = inlined_call_operand.hbm [shape: bf16[128,128], index: 11, kind: input, shape index: {}]   ;;  %s3862_s12 = inlined_call_operand.vmem [shape: f32[8,128], index: 12, kind: output, shape index: {0}]   ;;  %s3863_s13 = inlined_call_operand.vmem [shape: f32[8,256], index: 13, kind: output, shape index: {1}]  }
   0x1   :  { %s44_s27 = sshll.u32 %s2908_s26, 4  ;;  %s2909_s28 = smov 1024   ;;  %s45_s27 = int_to_ptr.vmem [resolvable:$true] %s44_s27 }
   0x2   :  { %48 = sst [smem:[#allocation11]] %s2909_s28  ;;  %s2910_s29 = smov 8  }
   0x3   :  { %50 = sst [smem:[#allocation11 + $0x1]] %s2909_s28  ;;  %s2911_s30 = smov 64  }
   0x4   :  { %52 = sst [smem:[#allocation11 + $0x2]] %s2910_s29  ;;  %s3865_s15 = smov 128  }
   0x5   :  { %54 = sst [smem:[#allocation11 + $0x3]] %s2911_s30  ;;  %s3864_s17 = smov 2  }
   0x6   :  { %s2284_s14 = sshll.u32 %s36_s25, 26  ;;  %56 = sst [smem:[#allocation11 + $0x4]] %s3865_s15 }
   0x7   :  { %s3000_s16 = sadd.s32 134217728, %s2284_s14  ;;  %58 = sst [smem:[#allocation11 + $0x5]] %s3864_s17 }
   0x8   :  { %s2914_s18 = smov 512   ;;  %62 = sst [smem:[#allocation11 + $0x7]] %s2911_s30 }
   0x9   :  { %60 = sst [smem:[#allocation11 + $0x6]] %s2914_s18  ;;  %s2915_s19 = smov 4  }
   0xa   :  { %64 = sst [smem:[#allocation11 + $0x8]] %s2915_s19  ;;  %s2916_s20 = smov [#allocation8]  }
   0xb   :  { %s2917_s21 = smov [#allocation10]  }
   0xc   :  { %66 = dma.general %s3856_s6, 10240, %s45_s27, %s2916_s20, %s2917_s21, [#allocation11], %s3000_s16, 0  }
   0xd   :  { %v3013_v0 = vld [vmem:[%s3857_s7] sm:$0xff]  ;;  %v3018_v1 = vld [vmem:[%s3857_s7 + $0x8] sm:$0xff]  ;;  %v3023_v2 = vld [vmem:[%s3857_s7 + $0x10] sm:$0xff] }
   0xe   :  { %3870 = vst [vmem:[#allocation29_spill] sm:$0xff] %v3013_v0  ;;  %3871 = vst [vmem:[#allocation30_spill] sm:$0xff] %v3018_v1  ;;  %v3028_v3 = vld [vmem:[%s3857_s7 + $0x18] sm:$0xff]  ;;  %v3033_v4 = vld [vmem:[%s3857_s7 + $0x20] sm:$0xff] }
   0xf   :  { %3872 = vst [vmem:[#allocation31_spill] sm:$0xff] %v3023_v2  ;;  %3873 = vst [vmem:[#allocation32_spill] sm:$0xff] %v3028_v3  ;;  %v3038_v5 = vld [vmem:[%s3857_s7 + $0x28] sm:$0xff]  ;;  %v3043_v6 = vld [vmem:[%s3857_s7 + $0x30] sm:$0xff] }
  0x10   :  { %3874 = vst [vmem:[#allocation33_spill] sm:$0xff] %v3033_v4  ;;  %3875 = vst [vmem:[#allocation34_spill] sm:$0xff] %v3038_v5  ;;  %v3048_v7 = vld [vmem:[%s3857_s7 + $0x38] sm:$0xff]  ;;  %v3053_v8 = vld [vmem:[%s3857_s7 + $0x40] sm:$0xff] }
  0x11   :  { %3876 = vst [vmem:[#allocation35_spill] sm:$0xff] %v3043_v6  ;;  %3877 = vst [vmem:[#allocation36_spill] sm:$0xff] %v3048_v7  ;;  %v3058_v9 = vld [vmem:[%s3857_s7 + $0x48] sm:$0xff]  ;;  %v3063_v10 = vld [vmem:[%s3857_s7 + $0x50] sm:$0xff] }
  0x12   :  { %3878 = vst [vmem:[#allocation37_spill] sm:$0xff] %v3053_v8  ;;  %3879 = vst [vmem:[#allocation38_spill] sm:$0xff] %v3058_v9  ;;  %v3068_v11 = vld [vmem:[%s3857_s7 + $0x58] sm:$0xff]  ;;  %v3073_v12 = vld [vmem:[%s3857_s7 + $0x60] sm:$0xff] }
  0x13   :  { %3880 = vst [vmem:[#allocation39_spill] sm:$0xff] %v3063_v10  ;;  %3881 = vst [vmem:[#allocation40_spill] sm:$0xff] %v3068_v11  ;;  %v3078_v13 = vld [vmem:[%s3857_s7 + $0x68] sm:$0xff]  ;;  %v3083_v14 = vld [vmem:[%s3857_s7 + $0x70] sm:$0xff] }
  0x14   :  { %3882 = vst [vmem:[#allocation41_spill] sm:$0xff] %v3073_v12  ;;  %3883 = vst [vmem:[#allocation42_spill] sm:$0xff] %v3078_v13  ;;  %v3088_v15 = vld [vmem:[%s3857_s7 + $0x78] sm:$0xff] }
  0x15   :  { %3884 = vst [vmem:[#allocation43_spill] sm:$0xff] %v3083_v14  ;;  %3885 = vst [vmem:[#allocation44_spill] sm:$0xff] %v3088_v15 }
  0x16   :  { %139 = vsyncadd [#allocation8 + $0x1], 2048  ;;  %s2918_s26 = smov [#allocation4]   ;;  %v3868_v16 = vmov 0.0   ;;  %s2830_s6 = scalar_lea.hbm %s3858_s8, 1024 }
  0x17   :  { %s148_s28 = sshll.u32 %s2918_s26, 4  ;;  %314 = vmatprep.mubr.f32.mxu0 %v3868_v16  ;;  %p2831_p0 = scmp.ne.s32.totalorder %s3858_s8, %s2830_s6  ;;  %s149_s28 = int_to_ptr.vmem [resolvable:$true] %s148_s28 }
  0x18   :  { %p2834_p1 = scmp.lt.u32.totalorder %s2830_s6, %s3858_s8 }
  0x1a   :  { %p2836_p2 = pnand %p2834_p1, %p2831_p0 }
  0x1c   :  { %2839 = shalt.err (!%p2836_p2)  }
  0x1d   :  { %s2840_s7 = scalar_lea.vmem %s149_s28, 1024  ;;  %p2845_p4 = scmp.lt.s32.totalorder %s149_s28, %s149_s28 }
  0x1e   :  { %p2841_p3 = scmp.ne.s32.totalorder %s149_s28, %s2840_s7  ;;  %p2846_p5 = scmp.lt.s32.totalorder %s2840_s7, %s2840_s7 }
  0x20   :  { %p2847_p6 = por %p2846_p5, %p2845_p4 }
  0x22   :  { %p2848_p7 = pnand %p2847_p6, %p2841_p3 }
  0x24   :  { %2851 = shalt.err (!%p2848_p7)  }
  0x25   :  { %151 = dma.hbm_to_vmem [thread:$0]  %s3858_s8, 1024, %s149_s28, [#allocation8 + $0x2]  ;;  %vm225_vm0 = vcmask 130048   ;;  %vm2924_vm1 = vmmov 0   ;;  %v3866_v56 = vmov 0  }
  0x26   :  { %168 = sst [smem:[#allocation18]] %s2914_s18  ;;  %s2920_s25 = smov [#allocation5]  }
  0x27   :  { %s164_s15 = sshll.u32 %s2920_s25, 4  ;;  %170 = sst [smem:[#allocation18 + $0x1]] %s2914_s18  ;;  %s165_s15 = int_to_ptr.vmem [resolvable:$true] %s164_s15 }
  0x28   :  { %172 = sst [smem:[#allocation18 + $0x2]] %s2915_s19  ;;  %s3886_s17 = smov 128  }
  0x29   :  { %174 = sst [smem:[#allocation18 + $0x3]] %s2911_s30  ;;  %s3887_s26 = smov 2  }
  0x2a   :  { %176 = sst [smem:[#allocation18 + $0x4]] %s3886_s17  ;;  %s2921_s29 = smov 256  }
  0x2b   :  { %178 = sst [smem:[#allocation18 + $0x5]] %s3887_s26  ;;  %s2922_s8 = smov [#allocation8 + $0x3]  }
  0x2c   :  { %180 = sst [smem:[#allocation18 + $0x6]] %s2921_s29  ;;  %s2923_s28 = smov [#allocation17]  }
  0x2d   :  { %182 = sst [smem:[#allocation18 + $0x7]] %s2911_s30  ;;  %s2852_s30 = scalar_lea.hbm %s3860_s10, 2048 }
  0x2e   :  { %184 = sst [smem:[#allocation18 + $0x8]] %s2915_s19  ;;  %p2853_p8 = scmp.ne.s32.totalorder %s3860_s10, %s2852_s30 }
  0x2f   :  { %186 = dma.general %s3859_s9, 8192, %s165_s15, %s2922_s8, %s2923_s28, [#allocation18], %s3000_s16, 0  }
  0x30   :  { %v220_v17 = vld [vmem:[%s3853_s3 + $0x8] sm:$0xff]  ;;  %v223_v18 = vld [vmem:[%s3853_s3 + $0x20] sm:$0xff]  ;;  %v222_v21 = vld [vmem:[%s3853_s3 + $0x18] sm:$0xff]  ;;  %p2856_p9 = scmp.lt.u32.totalorder %s2852_s30, %s3860_s10 }
  0x31   :  { %v219_v19 = vld [vmem:[%s3853_s3] sm:$0xff]  ;;  %v2699_v20 = vpack.c.bf16 %v223_v18, %v220_v17  ;;  %v3145_v26 = vld [vmem:[%s3854_s4 + $0x1c] ss:$12 sps:$4 sm:$0xff]   ;;  %v221_v27 = vld [vmem:[%s3853_s3 + $0x10] sm:$0xff] }
  0x32   :  { %v211_v22 = vld [vmem:[%s3850_s0] sm:$0xff]  ;;  %v2701_v23 = vpack.c.bf16 %v222_v21, %v219_v19  ;;  %v212_v28 = vld [vmem:[%s3850_s0 + $0x8] sm:$0xff]  ;;  %v213_v33 = vld [vmem:[%s3850_s0 + $0x10] sm:$0xff]  ;;  %p2858_p10 = pnand %p2856_p9, %p2853_p8 }
  0x33   :  { %v3133_v24 = vld [vmem:[%s3854_s4 + $0x4] ss:$12 sps:$4 sm:$0xff]   ;;  %2487 = vmatprep.mubr.msk.f32.mxu1 %vm225_vm0, %v211_v22  ;;  %2700 = vmatprep.subr.bf16.mxu0 %v2699_v20  ;;  %v3139_v25 = vld [vmem:[%s3854_s4] ss:$12 sps:$4 sm:$0xff]   ;;  %v3191_v36 = vld [vmem:[%s3854_s4 + $0x8] ss:$12 sps:$4 sm:$0xff]  }
  0x34   :  { %2702 = vmatpush1.bf16.msra.mxu0 %v2701_v23  ;;  %v3159_v29 = vld [vmem:[%s3854_s4 + $0x18] ss:$12 sps:$4 sm:$0xff]   ;;  %v224_v30 = vld [vmem:[%s3853_s3 + $0x28] sm:$0xff]  ;;  %v3168_v31 = vld [vmem:[%s3854_s4 + $0x34] ss:$12 sps:$4 sm:$0xff]  }
  0x35   :  { %655 = vmatprep.subr.bf16.mxu0 %v3133_v24  ;;  %v2703_v32 = vpack.c.bf16 %v224_v30, %v221_v27  ;;  %v3179_v34 = vld [vmem:[%s3854_s4 + $0x30] ss:$12 sps:$4 sm:$0xff]   ;;  %v3185_v35 = vld [vmem:[%s3854_s4 + $0x4c] ss:$12 sps:$4 sm:$0xff]   ;;  %v3202_v38 = vld [vmem:[%s3854_s4 + $0x48] ss:$12 sps:$4 sm:$0xff]  }
  0x36   :  { %v214_v37 = vld [vmem:[%s3850_s0 + $0x18] sm:$0xff]  ;;  %v3208_v39 = vld [vmem:[%s3854_s4 + $0x64] ss:$12 sps:$4 sm:$0xff]   ;;  %v3215_v40 = vld [vmem:[%s3854_s4 + $0x20] ss:$12 sps:$4 sm:$0xff]  }
  0x37   :  { %2288 = vmatmul.mubr.msk.f32.vlgmr.msra.gmra.mrb[0].mxu0 %vm225_vm0, %v211_v22  ;;  %2704 = vmatprep.subr.bf16.mxu1 %v2703_v32  ;;  %v215_v41 = vld [vmem:[%s3850_s0 + $0x20] sm:$0xff]  ;;  %v3234_v43 = vld [vmem:[%s3854_s4 + $0x7c] ss:$12 sps:$4 sm:$0xff]   ;;  %v217_v47 = vld [vmem:[%s3850_s0 + $0x30] sm:$0xff] }
  0x38   :  { %656 = vmatpush1.bf16.msra.mxu0 %v3139_v25  ;;  %320 = vmatprep.mubr.f32.mxu0 %v3868_v16  ;;  %v3228_v42 = vld [vmem:[%s3854_s4 + $0x60] ss:$12 sps:$4 sm:$0xff]   ;;  %v3241_v44 = vld [vmem:[%s3854_s4 + $0x38] ss:$12 sps:$4 sm:$0xff]   ;;  %v3270_v49 = vld [vmem:[%s3854_s4 + $0x50] ss:$12 sps:$4 sm:$0xff]  }
  0x39   :  { %657 = vmatprep.subr.bf16.mxu0 %v3145_v26  ;;  %2706 = vmatpush3.bf16.msra.mxu1 %v2703_v32  ;;  %v216_v45 = vld [vmem:[%s3850_s0 + $0x28] sm:$0xff]  ;;  %v3254_v46 = vld [vmem:[%s3854_s4 + $0x78] ss:$12 sps:$4 sm:$0xff]   ;;  %v3263_v48 = vld [vmem:[%s3854_s4 + $0x94] ss:$12 sps:$4 sm:$0xff]  }
  0x3a   :  { %2499 = vmatprep.subr.bf16.mxu1 %v3868_v16  ;;  %v3280_v50 = vld [vmem:[%s3854_s4 + $0x90] ss:$12 sps:$4 sm:$0xff]   ;;  %v3289_v52 = vld [vmem:[%s3854_s4 + $0xac] ss:$12 sps:$4 sm:$0xff]   ;;  %v3296_v53 = vld [vmem:[%s3854_s4 + $0x68] ss:$12 sps:$4 sm:$0xff]  }
  0x3b   :  { %2289 = vmatmul.mubr.msk.f32.gmra.mrb[2].mxu0 %vm225_vm0, %v212_v28  ;;  %v218_v51 = vld [vmem:[%s3850_s0 + $0x38] sm:$0xff]  ;;  %v3307_v54 = vld [vmem:[%s3854_s4 + $0xa8] ss:$12 sps:$4 sm:$0xff]   ;;  %v3314_v55 = vld [vmem:[%s3854_s4 + $0x80] ss:$12 sps:$4 sm:$0xff]   ;;  %s2927_s0 = smov [#allocation7]  }
  0x3c   :  { %658 = vmatpush1.bf16.msra.mxu0 %v3159_v29  ;;  %326 = vmatprep.mubr.f32.mxu0 %v3868_v16  ;;  %v3325_v57 = vld [vmem:[%s3854_s4 + $0x98] ss:$12 sps:$4 sm:$0xff]   ;;  %v3336_v58 = vld [vmem:[%s3854_s4 + $0xb0] ss:$12 sps:$4 sm:$0xff]   ;;  %s207_s21 = sshll.u32 %s2927_s0, 4  ;;  %s208_s21 = int_to_ptr.vmem [resolvable:$true] %s207_s21 }
  0x3d   :  { %659 = vmatprep.subr.bf16.mxu0 %v3168_v31  ;;  %2488 = vmatmul.mubr.msk.f32.vlgmr.msra.gmra.mrb[0].mxu1 %vm225_vm0, %v212_v28 }
  0x3e   :  { %2500 = vmatpush3.bf16.msra.mxu1 %v3191_v36  ;;  %2490 = vmatprep.mubr.msk.f32.mxu1 %vm225_vm0, %v213_v33 }
  0x3f   :  { %2290 = vmatmul.mubr.msk.f32.gmra.mrb[4].mxu0 %vm225_vm0, %v213_v33  ;;  %2501 = vmatprep.subr.bf16.mxu1 %v3868_v16 }
  0x40   :  { %660 = vmatpush1.bf16.msra.mxu0 %v3179_v34  ;;  %332 = vmatprep.mubr.f32.mxu0 %v3868_v16 }
  0x41   :  { %661 = vmatprep.subr.bf16.mxu0 %v3185_v35  ;;  %2491 = vmatmul.mubr.msk.f32.gmra.mrb[2].mxu1 %vm225_vm0, %v214_v37 }
  0x42   :  { %2502 = vmatpush3.bf16.msra.mxu1 %v3215_v40  ;;  %2493 = vmatprep.mubr.msk.f32.mxu1 %vm225_vm0, %v215_v41 }
  0x43   :  { %2291 = vmatmul.mubr.msk.f32.gmra.mrb[6].mxu0 %vm225_vm0, %v214_v37  ;;  %2503 = vmatprep.subr.bf16.mxu1 %v3868_v16 }
  0x44   :  { %662 = vmatpush1.bf16.msra.mxu0 %v3202_v38  ;;  %338 = vmatprep.mubr.f32.mxu0 %v3868_v16 }
  0x45   :  { %663 = vmatprep.subr.bf16.mxu0 %v3208_v39  ;;  %2494 = vmatmul.mubr.msk.f32.gmra.mrb[4].mxu1 %vm225_vm0, %v216_v45 }
  0x46   :  { %2504 = vmatpush3.bf16.msra.mxu1 %v3241_v44  ;;  %2496 = vmatprep.mubr.msk.f32.mxu1 %vm225_vm0, %v217_v47 }
  0x47   :  { %2292 = vmatmul.mubr.msk.f32.gmra.mrb[8].mxu0 %vm225_vm0, %v215_v41  ;;  %2505 = vmatprep.subr.bf16.mxu1 %v3868_v16 }
  0x48   :  { %664 = vmatpush1.bf16.msra.mxu0 %v3228_v42  ;;  %344 = vmatprep.mubr.f32.mxu0 %v3868_v16 }
  0x49   :  { %665 = vmatprep.subr.bf16.mxu0 %v3234_v43  ;;  %2497 = vmatmul.mubr.msk.f32.gmra.mrb[6].mxu1 %vm225_vm0, %v218_v51 }
  0x4a   :  { %2506 = vmatpush3.bf16.msra.mxu1 %v3270_v49  ;;  %2515 = vmatprep.mubr.msk.bf16.mxu1 %vm2924_vm1, %v3868_v16 }
  0x4b   :  { %2293 = vmatmul.mubr.msk.f32.gmra.mrb[10].mxu0 %vm225_vm0, %v216_v45  ;;  %2507 = vmatprep.subr.bf16.mxu1 %v3868_v16 }
  0x4c   :  { %666 = vmatpush1.bf16.msra.mxu0 %v3254_v46  ;;  %350 = vmatprep.mubr.f32.mxu0 %v3868_v16 }
  0x4d   :  { %667 = vmatprep.subr.bf16.mxu0 %v3263_v48 }
  0x4e   :  { %2508 = vmatpush3.bf16.msra.mxu1 %v3296_v53 }
  0x4f   :  { %2294 = vmatmul.mubr.msk.f32.gmra.mrb[12].mxu0 %vm225_vm0, %v217_v47  ;;  %2509 = vmatprep.subr.bf16.mxu1 %v3868_v16 }
  0x50   :  { %668 = vmatpush1.bf16.msra.mxu0 %v3280_v50  ;;  %356 = vmatprep.mubr.f32.mxu0 %v3868_v16 }
  0x51   :  { %669 = vmatprep.subr.bf16.mxu0 %v3289_v52 }
  0x52   :  { %2510 = vmatpush3.bf16.msra.mxu1 %v3314_v55 }
  0x53   :  { %2295 = vmatmul.mubr.msk.f32.gmra.mrb[14].mxu0 %vm225_vm0, %v218_v51  ;;  %2511 = vmatprep.subr.bf16.mxu1 %v3868_v16 }
  0x54   :  { %670 = vmatpush1.bf16.msra.mxu0 %v3307_v54  ;;  %687 = vmatprep.mubr.bf16.mxu0 %v3866_v56 }
  0x55   :  { %757 = vmatprep.subr.bf16.mxu0 %v3133_v24 }
  0x56   :  { %2512 = vmatpush3.bf16.msra.mxu1 %v3325_v57 }
  0x57   :  { %688 = vmatmul.mubr.bf16.vlgmr.msra.gmra.mrb[16].mxu0 %v3866_v56  ;;  %2513 = vmatprep.subr.bf16.mxu1 %v3868_v16 }
  0x58   :  { %758 = vmatpush1.bf16.msra.mxu0 %v3139_v25  ;;  %789 = vmatprep.mubr.bf16.mxu0 %v3866_v56 }
  0x59   :  { %759 = vmatprep.subr.bf16.mxu0 %v3145_v26 }
  0x5a   :  { %2514 = vmatpush3.bf16.msra.mxu1 %v3336_v58 }
  0x5b   :  { %2519 = vmatprep.subr.bf16.mxu1 %v3868_v16 }
  0x5c   :  { %760 = vmatpush1.bf16.msra.mxu0 %v3159_v29 }
  0x5d   :  { %761 = vmatprep.subr.bf16.mxu0 %v3168_v31  ;;  %2516 = vmatmul.mubr.bf16.vlgmr.msra.gmra.mrb[8].mxu1 %v3866_v56 }
  0x5e   :  { %2520 = vmatpush3.bf16.msra.mxu1 %v3191_v36  ;;  %2535 = vmatprep.mubr.msk.bf16.mxu1 %vm2924_vm1, %v3868_v16 }
  0x5f   :  { %2521 = vmatprep.subr.bf16.mxu1 %v3868_v16 }
  0x60   :  { %762 = vmatpush1.bf16.msra.mxu0 %v3179_v34 }
  0x61   :  { %763 = vmatprep.subr.bf16.mxu0 %v3185_v35 }
  0x62   :  { %2522 = vmatpush3.bf16.msra.mxu1 %v3215_v40 }
  0x63   :  { %2523 = vmatprep.subr.bf16.mxu1 %v3868_v16 }
  0x64   :  { %764 = vmatpush1.bf16.msra.mxu0 %v3202_v38 }
  0x65   :  { %765 = vmatprep.subr.bf16.mxu0 %v3208_v39 }
  0x66   :  { %2524 = vmatpush3.bf16.msra.mxu1 %v3241_v44 }
  0x67   :  { %2525 = vmatprep.subr.bf16.mxu1 %v3868_v16 }
  0x68   :  { %766 = vmatpush1.bf16.msra.mxu0 %v3228_v42 }
  0x69   :  { %767 = vmatprep.subr.bf16.mxu0 %v3234_v43 }
  0x6a   :  { %2526 = vmatpush3.bf16.msra.mxu1 %v3270_v49 }
  0x6b   :  { %2527 = vmatprep.subr.bf16.mxu1 %v3868_v16 }
  0x6c   :  { %768 = vmatpush1.bf16.msra.mxu0 %v3254_v46 }
  0x6d   :  { %769 = vmatprep.subr.bf16.mxu0 %v3263_v48 }
  0x6e   :  { %2528 = vmatpush3.bf16.msra.mxu1 %v3296_v53 }
  0x6f   :  { %2529 = vmatprep.subr.bf16.mxu1 %v3868_v16 }
  0x70   :  { %770 = vmatpush1.bf16.msra.mxu0 %v3280_v50 }
  0x71   :  { %771 = vmatprep.subr.bf16.mxu0 %v3289_v52 }
  0x72   :  { %2530 = vmatpush3.bf16.msra.mxu1 %v3314_v55 }
  0x73   :  { %2531 = vmatprep.subr.bf16.mxu1 %v3868_v16 }
  0x74   :  { %772 = vmatpush1.bf16.msra.mxu0 %v3307_v54 }
  0x75   :  { %859 = vmatprep.subr.bf16.mxu0 %v3133_v24 }
  0x76   :  { %2532 = vmatpush3.bf16.msra.mxu1 %v3325_v57 }
  0x77   :  { %2533 = vmatprep.subr.bf16.mxu1 %v3868_v16 }
  0x7a   :  { %2534 = vmatpush3.bf16.msra.mxu1 %v3336_v58 }
  0x7b   :  { %2539 = vmatprep.subr.bf16.mxu1 %v3868_v16 }
 0x10a   :  { %v316_v59 = vpop.f32.mrb[0].mxu0 }
 0x10b   :  { %v318_v60 = vpop.f32.mrb[1].mxu0 }
 0x10e   :  { %v3374_v61 = vpop.f32.mrb[2].mxu0 }
 0x10f   :  { %v3376_v62 = vpop.f32.mrb[3].mxu0 }
 0x110   :  { %v3382_v18 = vpop.f32.mrb[0].mxu1 }
 0x111   :  { %v429_v19 = vpop.f32.mrb[1].mxu1 }
 0x112   :  { %v3378_v63 = vpop.f32.mrb[4].mxu0 }
 0x113   :  { %v3380_v17 = vpop.f32.mrb[5].mxu0 }
 0x114   :  { %v3388_v22 = vpop.f32.mrb[2].mxu1 }
 0x115   :  { %v3390_v23 = vpop.f32.mrb[3].mxu1 }
 0x116   :  { %v3384_v20 = vpop.f32.mrb[6].mxu0 }
 0x117   :  { %v3386_v21 = vpop.f32.mrb[7].mxu0 }
 0x118   :  { %v3396_v30 = vpop.f32.mrb[4].mxu1 }
 0x119   :  { %v3398_v32 = vpop.f32.mrb[5].mxu1 }
 0x11a   :  { %v3392_v27 = vpop.f32.mrb[8].mxu0 }
 0x11b   :  { %v3394_v28 = vpop.f32.mrb[9].mxu0 }
 0x11c   :  { %v3404_v41 = vpop.f32.mrb[6].mxu1 }
 0x11d   :  { %3888 = vst [vmem:[#allocation45_spill] sm:$0xff] %v3404_v41  ;;  %v3406_v45 = vpop.f32.mrb[7].mxu1 }
 0x11e   :  { %v3400_v33 = vpop.f32.mrb[10].mxu0 }
 0x11f   :  { %v3402_v37 = vpop.f32.mrb[11].mxu0 }
 0x122   :  { %v3408_v47 = vpop.f32.mrb[12].mxu0 }
 0x123   :  { %v3410_v51 = vpop.f32.mrb[13].mxu0 }
 0x126   :  { %v3412_v56 = vpop.f32.mrb[14].mxu0 }
 0x127   :  { %v3414_v16 = vpop.f32.mrb[15].mxu0 }
 0x128   :  { %3889 = vst [vmem:[#allocation46_spill] sm:$0xff] %v3414_v16 }
 0x12a   :  { %v689_v7 = vpop.f32.mrb[16].mxu0 }
 0x12b   :  { %v736_v15 = vadd.f32 %v689_v7, %v316_v59  ;;  %v691_v6 = vpop.f32.mrb[17].mxu0 }
 0x12c   :  { %v741_v14 = vadd.f32 %v691_v6, %v318_v60  ;;  %v693_v5 = vpop.f32.mrb[18].mxu0 }
 0x12d   :  { %v737_v13 = vmul.f32 0.5, %v736_v15  ;;  %v694_v4 = vpop.f32.mrb[19].mxu0 }
 0x12e   :  { %v742_v12 = vmul.f32 0.5, %v741_v14 }
 0x12f   :  { %2759 = vtanh.f32 %v737_v13 }
 0x130   :  { %v730_v3 = vpop.f32.mrb[8].mxu1  ;;  %2761 = vtanh.f32 %v742_v12 }
 0x131   :  { %v2517_v11 = vpop.f32.mrb[9].mxu1 }
 0x132   :  { %v733_v2 = vpop.f32.mrb[10].mxu1 }
 0x133   :  { %v2518_v10 = vpop.f32.mrb[11].mxu1 }
 0x139   :  { %v2760_v1 = vpop.eup %2759 }
 0x13a   :  { %v739_v9 = vmul.f32 0.5, %v2760_v1  ;;  %v2762_v41 = vpop.eup %2761  ;;  %v3891_v1 = vmov 0  }
 0x13b   :  { %v744_v7 = vmul.f32 0.5, %v2762_v41 }
 0x13c   :  { %v740_v0 = vadd.f32 0.5, %v739_v9 }
 0x13d   :  { %v745_v59 = vadd.f32 0.5, %v744_v7 }
 0x13e   :  { %v746_v8 = vmul.f32 %v740_v0, %v730_v3  ;;  %v3890_v0 = vmov 0.0  }
 0x13f   :  { %v749_v6 = vsub.f32 1.0, %v745_v59  ;;  %v751_v15 = vmul.f32 0.0, %v745_v59 }
 0x140   :  { %v747_v16 = vadd.f32 %v746_v8, %v429_v19 }
 0x142   :  { %2763 = vtanh.f32 %v747_v16 }
 0x14c   :  { %v2764_v5 = vpop.eup %2763 }
 0x14d   :  { %v750_v4 = vmul.f32 %v2764_v5, %v749_v6 }
 0x14f   :  { %v3416_v13 = vadd.f32 %v751_v15, %v750_v4 }
 0x151   :  { %v756_v11 = vpack.c.bf16 %v3416_v13, %v3416_v13 }
 0x153   :  { %790 = vmatmul.mubr.bf16.vlgmr.msra.gmra.mrb[20].mxu0 %v756_v11  ;;  %2536 = vmatmul.mubr.bf16.vlgmr.msra.gmra.mrb[12].mxu1 %v756_v11 }
 0x154   :  { %860 = vmatpush1.bf16.msra.mxu0 %v3139_v25  ;;  %2540 = vmatpush3.bf16.msra.mxu1 %v3191_v36 }
 0x155   :  { %861 = vmatprep.subr.bf16.mxu0 %v3145_v26  ;;  %2541 = vmatprep.subr.bf16.mxu1 %v3890_v0 }
 0x156   :  { %891 = vmatprep.mubr.bf16.mxu0 %v3891_v1  ;;  %2555 = vmatprep.mubr.msk.bf16.mxu1 %vm2924_vm1, %v3890_v0 }
 0x158   :  { %862 = vmatpush1.bf16.msra.mxu0 %v3159_v29  ;;  %2542 = vmatpush3.bf16.msra.mxu1 %v3215_v40 }
 0x159   :  { %863 = vmatprep.subr.bf16.mxu0 %v3168_v31  ;;  %2543 = vmatprep.subr.bf16.mxu1 %v3890_v0 }
 0x15c   :  { %864 = vmatpush1.bf16.msra.mxu0 %v3179_v34  ;;  %2544 = vmatpush3.bf16.msra.mxu1 %v3241_v44 }
 0x15d   :  { %865 = vmatprep.subr.bf16.mxu0 %v3185_v35  ;;  %2545 = vmatprep.subr.bf16.mxu1 %v3890_v0 }
 0x160   :  { %866 = vmatpush1.bf16.msra.mxu0 %v3202_v38  ;;  %2546 = vmatpush3.bf16.msra.mxu1 %v3270_v49 }
 0x161   :  { %867 = vmatprep.subr.bf16.mxu0 %v3208_v39  ;;  %2547 = vmatprep.subr.bf16.mxu1 %v3890_v0 }
 0x164   :  { %868 = vmatpush1.bf16.msra.mxu0 %v3228_v42  ;;  %2548 = vmatpush3.bf16.msra.mxu1 %v3296_v53 }
 0x165   :  { %869 = vmatprep.subr.bf16.mxu0 %v3234_v43  ;;  %2549 = vmatprep.subr.bf16.mxu1 %v3890_v0 }
 0x168   :  { %870 = vmatpush1.bf16.msra.mxu0 %v3254_v46  ;;  %2550 = vmatpush3.bf16.msra.mxu1 %v3314_v55 }
 0x169   :  { %871 = vmatprep.subr.bf16.mxu0 %v3263_v48  ;;  %2551 = vmatprep.subr.bf16.mxu1 %v3890_v0 }
 0x16c   :  { %872 = vmatpush1.bf16.msra.mxu0 %v3280_v50  ;;  %2552 = vmatpush3.bf16.msra.mxu1 %v3325_v57 }
 0x16d   :  { %873 = vmatprep.subr.bf16.mxu0 %v3289_v52  ;;  %2553 = vmatprep.subr.bf16.mxu1 %v3890_v0 }
 0x170   :  { %874 = vmatpush1.bf16.msra.mxu0 %v3307_v54  ;;  %2554 = vmatpush3.bf16.msra.mxu1 %v3336_v58 }
 0x171   :  { %961 = vmatprep.subr.bf16.mxu0 %v3133_v24  ;;  %2559 = vmatprep.subr.bf16.mxu1 %v3890_v0 }
 0x226   :  { %v791_v2 = vpop.f32.mrb[20].mxu0  ;;  %v832_v3 = vpop.f32.mrb[12].mxu1 }
 0x227   :  { %v838_v8 = vadd.f32 %v791_v2, %v3374_v61  ;;  %v793_v9 = vpop.f32.mrb[21].mxu0  ;;  %v2537_v10 = vpop.f32.mrb[13].mxu1 }
 0x228   :  { %v843_v12 = vadd.f32 %v793_v9, %v3376_v62  ;;  %v795_v14 = vpop.f32.mrb[22].mxu0  ;;  %v835_v16 = vpop.f32.mrb[14].mxu1 }
 0x229   :  { %v839_v60 = vmul.f32 0.5, %v838_v8  ;;  %v796_v19 = vpop.f32.mrb[23].mxu0  ;;  %v2538_v41 = vpop.f32.mrb[15].mxu1 }
 0x22a   :  { %v844_v7 = vmul.f32 0.5, %v843_v12 }
 0x22b   :  { %2765 = vtanh.f32 %v839_v60 }
 0x22c   :  { %2767 = vtanh.f32 %v844_v7 }
 0x235   :  { %v2766_v59 = vpop.eup %2765 }
 0x236   :  { %v841_v6 = vmul.f32 0.5, %v2766_v59  ;;  %v2768_v4 = vpop.eup %2767 }
 0x237   :  { %v846_v61 = vmul.f32 0.5, %v2768_v4 }
 0x238   :  { %v842_v5 = vadd.f32 0.5, %v841_v6 }
 0x239   :  { %v847_v2 = vadd.f32 0.5, %v846_v61 }
 0x23a   :  { %v848_v15 = vmul.f32 %v842_v5, %v832_v3 }
 0x23b   :  { %v851_v10 = vsub.f32 1.0, %v847_v2  ;;  %v853_v8 = vmul.f32 %v847_v2, %v3416_v13 }
 0x23c   :  { %v849_v11 = vadd.f32 %v3382_v18, %v848_v15 }
 0x23e   :  { %2769 = vtanh.f32 %v849_v11 }
 0x248   :  { %v2770_v62 = vpop.eup %2769 }
 0x249   :  { %v852_v9 = vmul.f32 %v2770_v62, %v851_v10 }
 0x24b   :  { %v3459_v14 = vadd.f32 %v853_v8, %v852_v9 }
 0x24d   :  { %v858_v12 = vpack.c.bf16 %v3459_v14, %v3459_v14 }
 0x24f   :  { %892 = vmatmul.mubr.bf16.vlgmr.msra.gmra.mrb[24].mxu0 %v858_v12  ;;  %2556 = vmatmul.mubr.bf16.vlgmr.msra.gmra.mrb[16].mxu1 %v858_v12 }
 0x250   :  { %962 = vmatpush1.bf16.msra.mxu0 %v3139_v25  ;;  %2560 = vmatpush3.bf16.msra.mxu1 %v3191_v36 }
 0x251   :  { %963 = vmatprep.subr.bf16.mxu0 %v3145_v26  ;;  %2561 = vmatprep.subr.bf16.mxu1 %v3890_v0 }
 0x252   :  { %993 = vmatprep.mubr.bf16.mxu0 %v3891_v1  ;;  %2575 = vmatprep.mubr.msk.bf16.mxu1 %vm2924_vm1, %v3890_v0 }
 0x254   :  { %964 = vmatpush1.bf16.msra.mxu0 %v3159_v29  ;;  %2562 = vmatpush3.bf16.msra.mxu1 %v3215_v40 }
 0x255   :  { %965 = vmatprep.subr.bf16.mxu0 %v3168_v31  ;;  %2563 = vmatprep.subr.bf16.mxu1 %v3890_v0 }
 0x258   :  { %966 = vmatpush1.bf16.msra.mxu0 %v3179_v34  ;;  %2564 = vmatpush3.bf16.msra.mxu1 %v3241_v44 }
 0x259   :  { %967 = vmatprep.subr.bf16.mxu0 %v3185_v35  ;;  %2565 = vmatprep.subr.bf16.mxu1 %v3890_v0 }
 0x25c   :  { %968 = vmatpush1.bf16.msra.mxu0 %v3202_v38  ;;  %2566 = vmatpush3.bf16.msra.mxu1 %v3270_v49 }
 0x25d   :  { %969 = vmatprep.subr.bf16.mxu0 %v3208_v39  ;;  %2567 = vmatprep.subr.bf16.mxu1 %v3890_v0 }
 0x260   :  { %970 = vmatpush1.bf16.msra.mxu0 %v3228_v42  ;;  %2568 = vmatpush3.bf16.msra.mxu1 %v3296_v53 }
 0x261   :  { %971 = vmatprep.subr.bf16.mxu0 %v3234_v43  ;;  %2569 = vmatprep.subr.bf16.mxu1 %v3890_v0 }
 0x264   :  { %972 = vmatpush1.bf16.msra.mxu0 %v3254_v46  ;;  %2570 = vmatpush3.bf16.msra.mxu1 %v3314_v55 }
 0x265   :  { %973 = vmatprep.subr.bf16.mxu0 %v3263_v48  ;;  %2571 = vmatprep.subr.bf16.mxu1 %v3890_v0 }
 0x268   :  { %974 = vmatpush1.bf16.msra.mxu0 %v3280_v50  ;;  %2572 = vmatpush3.bf16.msra.mxu1 %v3325_v57 }
 0x269   :  { %975 = vmatprep.subr.bf16.mxu0 %v3289_v52  ;;  %2573 = vmatprep.subr.bf16.mxu1 %v3890_v0 }
 0x26c   :  { %976 = vmatpush1.bf16.msra.mxu0 %v3307_v54  ;;  %2574 = vmatpush3.bf16.msra.mxu1 %v3336_v58 }
 0x26d   :  { %1063 = vmatprep.subr.bf16.mxu0 %v3133_v24  ;;  %2579 = vmatprep.subr.bf16.mxu1 %v3890_v0 }
 0x322   :  { %v893_v18 = vpop.f32.mrb[24].mxu0  ;;  %v934_v13 = vpop.f32.mrb[16].mxu1 }
 0x323   :  { %v940_v3 = vadd.f32 %v893_v18, %v3378_v63  ;;  %v895_v16 = vpop.f32.mrb[25].mxu0  ;;  %v2557_v60 = vpop.f32.mrb[17].mxu1 }
 0x324   :  { %v945_v19 = vadd.f32 %v895_v16, %v3380_v17  ;;  %v897_v41 = vpop.f32.mrb[26].mxu0  ;;  %v937_v7 = vpop.f32.mrb[18].mxu1 }
 0x325   :  { %v941_v59 = vmul.f32 0.5, %v940_v3  ;;  %v898_v6 = vpop.f32.mrb[27].mxu0  ;;  %v2558_v5 = vpop.f32.mrb[19].mxu1 }
 0x326   :  { %v946_v15 = vmul.f32 0.5, %v945_v19 }
 0x327   :  { %2771 = vtanh.f32 %v941_v59 }
 0x328   :  { %2773 = vtanh.f32 %v946_v15 }
 0x331   :  { %v2772_v4 = vpop.eup %2771 }
 0x332   :  { %v943_v11 = vmul.f32 0.5, %v2772_v4  ;;  %v2774_v10 = vpop.eup %2773 }
 0x333   :  { %v948_v63 = vmul.f32 0.5, %v2774_v10 }
 0x334   :  { %v944_v61 = vadd.f32 0.5, %v943_v11 }
 0x335   :  { %v949_v9 = vadd.f32 0.5, %v948_v63 }
 0x336   :  { %v950_v2 = vmul.f32 %v944_v61, %v934_v13 }
 0x337   :  { %v953_v8 = vsub.f32 1.0, %v949_v9  ;;  %v955_v18 = vmul.f32 %v949_v9, %v3459_v14 }
 0x338   :  { %v951_v62 = vadd.f32 %v950_v2, %v3390_v23 }
 0x33a   :  { %2775 = vtanh.f32 %v951_v62 }
 0x344   :  { %v2776_v17 = vpop.eup %2775 }
 0x345   :  { %v954_v12 = vmul.f32 %v2776_v17, %v953_v8 }
 0x347   :  { %v3502_v3 = vadd.f32 %v955_v18, %v954_v12 }
 0x349   :  { %v960_v16 = vpack.c.bf16 %v3502_v3, %v3502_v3 }
 0x34b   :  { %994 = vmatmul.mubr.bf16.vlgmr.msra.gmra.mrb[28].mxu0 %v960_v16  ;;  %2576 = vmatmul.mubr.bf16.vlgmr.msra.gmra.mrb[20].mxu1 %v960_v16 }
 0x34c   :  { %1064 = vmatpush1.bf16.msra.mxu0 %v3139_v25  ;;  %2580 = vmatpush3.bf16.msra.mxu1 %v3191_v36 }
 0x34d   :  { %1065 = vmatprep.subr.bf16.mxu0 %v3145_v26  ;;  %2581 = vmatprep.subr.bf16.mxu1 %v3890_v0 }
 0x34e   :  { %1095 = vmatprep.mubr.bf16.mxu0 %v3891_v1  ;;  %2595 = vmatprep.mubr.msk.bf16.mxu1 %vm2924_vm1, %v3890_v0 }
 0x350   :  { %1066 = vmatpush1.bf16.msra.mxu0 %v3159_v29  ;;  %2582 = vmatpush3.bf16.msra.mxu1 %v3215_v40 }
 0x351   :  { %1067 = vmatprep.subr.bf16.mxu0 %v3168_v31  ;;  %2583 = vmatprep.subr.bf16.mxu1 %v3890_v0 }
 0x354   :  { %1068 = vmatpush1.bf16.msra.mxu0 %v3179_v34  ;;  %2584 = vmatpush3.bf16.msra.mxu1 %v3241_v44 }
 0x355   :  { %1069 = vmatprep.subr.bf16.mxu0 %v3185_v35  ;;  %2585 = vmatprep.subr.bf16.mxu1 %v3890_v0 }
 0x358   :  { %1070 = vmatpush1.bf16.msra.mxu0 %v3202_v38  ;;  %2586 = vmatpush3.bf16.msra.mxu1 %v3270_v49 }
 0x359   :  { %1071 = vmatprep.subr.bf16.mxu0 %v3208_v39  ;;  %2587 = vmatprep.subr.bf16.mxu1 %v3890_v0 }
 0x35c   :  { %1072 = vmatpush1.bf16.msra.mxu0 %v3228_v42  ;;  %2588 = vmatpush3.bf16.msra.mxu1 %v3296_v53 }
 0x35d   :  { %1073 = vmatprep.subr.bf16.mxu0 %v3234_v43  ;;  %2589 = vmatprep.subr.bf16.mxu1 %v3890_v0 }
 0x360   :  { %1074 = vmatpush1.bf16.msra.mxu0 %v3254_v46  ;;  %2590 = vmatpush3.bf16.msra.mxu1 %v3314_v55 }
 0x361   :  { %1075 = vmatprep.subr.bf16.mxu0 %v3263_v48  ;;  %2591 = vmatprep.subr.bf16.mxu1 %v3890_v0 }
 0x364   :  { %1076 = vmatpush1.bf16.msra.mxu0 %v3280_v50  ;;  %2592 = vmatpush3.bf16.msra.mxu1 %v3325_v57 }
 0x365   :  { %1077 = vmatprep.subr.bf16.mxu0 %v3289_v52  ;;  %2593 = vmatprep.subr.bf16.mxu1 %v3890_v0 }
 0x368   :  { %1078 = vmatpush1.bf16.msra.mxu0 %v3307_v54  ;;  %2594 = vmatpush3.bf16.msra.mxu1 %v3336_v58 }
 0x369   :  { %1165 = vmatprep.subr.bf16.mxu0 %v3133_v24  ;;  %2599 = vmatprep.subr.bf16.mxu1 %v3890_v0 }
 0x41e   :  { %v995_v23 = vpop.f32.mrb[28].mxu0  ;;  %v1036_v14 = vpop.f32.mrb[20].mxu1 }
 0x41f   :  { %v1042_v13 = vadd.f32 %v995_v23, %v3384_v20  ;;  %v997_v60 = vpop.f32.mrb[29].mxu0  ;;  %v2577_v19 = vpop.f32.mrb[21].mxu1 }
 0x420   :  { %v1047_v41 = vadd.f32 %v997_v60, %v3386_v21  ;;  %v999_v7 = vpop.f32.mrb[30].mxu0  ;;  %v1039_v59 = vpop.f32.mrb[22].mxu1 }
 0x421   :  { %v1043_v6 = vmul.f32 0.5, %v1042_v13  ;;  %v1000_v5 = vpop.f32.mrb[31].mxu0  ;;  %v2578_v15 = vpop.f32.mrb[23].mxu1 }
 0x422   :  { %v1048_v4 = vmul.f32 0.5, %v1047_v41 }
 0x423   :  { %2777 = vtanh.f32 %v1043_v6 }
 0x424   :  { %2779 = vtanh.f32 %v1048_v4 }
 0x42d   :  { %v2778_v11 = vpop.eup %2777 }
 0x42e   :  { %v1045_v61 = vmul.f32 0.5, %v2778_v11  ;;  %v2780_v62 = vpop.eup %2779 }
 0x42f   :  { %v1050_v20 = vmul.f32 0.5, %v2780_v62 }
 0x430   :  { %v1046_v2 = vadd.f32 0.5, %v1045_v61 }
 0x431   :  { %v1051_v9 = vadd.f32 0.5, %v1050_v20 }
 0x432   :  { %v1052_v10 = vmul.f32 %v1046_v2, %v1036_v14 }
 0x433   :  { %v1055_v8 = vsub.f32 1.0, %v1051_v9  ;;  %v1057_v12 = vmul.f32 %v1051_v9, %v3502_v3 }
 0x434   :  { %v1053_v63 = vadd.f32 %v3388_v22, %v1052_v10 }
 0x436   :  { %2781 = vtanh.f32 %v1053_v63 }
 0x440   :  { %v2782_v21 = vpop.eup %2781 }
 0x441   :  { %v1056_v17 = vmul.f32 %v2782_v21, %v1055_v8 }
 0x443   :  { %v3545_v18 = vadd.f32 %v1057_v12, %v1056_v17 }
 0x445   :  { %v1062_v16 = vpack.c.bf16 %v3545_v18, %v3545_v18 }
 0x447   :  { %1096 = vmatmul.mubr.bf16.vlgmr.msra.gmra.mrb[32].mxu0 %v1062_v16  ;;  %2596 = vmatmul.mubr.bf16.vlgmr.msra.gmra.mrb[24].mxu1 %v1062_v16 }
 0x448   :  { %1166 = vmatpush1.bf16.msra.mxu0 %v3139_v25  ;;  %2600 = vmatpush3.bf16.msra.mxu1 %v3191_v36 }
 0x449   :  { %1167 = vmatprep.subr.bf16.mxu0 %v3145_v26  ;;  %2601 = vmatprep.subr.bf16.mxu1 %v3890_v0 }
 0x44a   :  { %1197 = vmatprep.mubr.bf16.mxu0 %v3891_v1  ;;  %2615 = vmatprep.mubr.msk.bf16.mxu1 %vm2924_vm1, %v3890_v0 }
 0x44c   :  { %1168 = vmatpush1.bf16.msra.mxu0 %v3159_v29  ;;  %2602 = vmatpush3.bf16.msra.mxu1 %v3215_v40 }
 0x44d   :  { %1169 = vmatprep.subr.bf16.mxu0 %v3168_v31  ;;  %2603 = vmatprep.subr.bf16.mxu1 %v3890_v0 }
 0x450   :  { %1170 = vmatpush1.bf16.msra.mxu0 %v3179_v34  ;;  %2604 = vmatpush3.bf16.msra.mxu1 %v3241_v44 }
 0x451   :  { %1171 = vmatprep.subr.bf16.mxu0 %v3185_v35  ;;  %2605 = vmatprep.subr.bf16.mxu1 %v3890_v0 }
 0x454   :  { %1172 = vmatpush1.bf16.msra.mxu0 %v3202_v38  ;;  %2606 = vmatpush3.bf16.msra.mxu1 %v3270_v49 }
 0x455   :  { %1173 = vmatprep.subr.bf16.mxu0 %v3208_v39  ;;  %2607 = vmatprep.subr.bf16.mxu1 %v3890_v0 }
 0x458   :  { %1174 = vmatpush1.bf16.msra.mxu0 %v3228_v42  ;;  %2608 = vmatpush3.bf16.msra.mxu1 %v3296_v53 }
 0x459   :  { %1175 = vmatprep.subr.bf16.mxu0 %v3234_v43  ;;  %2609 = vmatprep.subr.bf16.mxu1 %v3890_v0 }
 0x45c   :  { %1176 = vmatpush1.bf16.msra.mxu0 %v3254_v46  ;;  %2610 = vmatpush3.bf16.msra.mxu1 %v3314_v55 }
 0x45d   :  { %1177 = vmatprep.subr.bf16.mxu0 %v3263_v48  ;;  %2611 = vmatprep.subr.bf16.mxu1 %v3890_v0 }
 0x460   :  { %1178 = vmatpush1.bf16.msra.mxu0 %v3280_v50  ;;  %2612 = vmatpush3.bf16.msra.mxu1 %v3325_v57 }
 0x461   :  { %1179 = vmatprep.subr.bf16.mxu0 %v3289_v52  ;;  %2613 = vmatprep.subr.bf16.mxu1 %v3890_v0 }
 0x464   :  { %1180 = vmatpush1.bf16.msra.mxu0 %v3307_v54  ;;  %2614 = vmatpush3.bf16.msra.mxu1 %v3336_v58 }
 0x465   :  { %1267 = vmatprep.subr.bf16.mxu0 %v3133_v24  ;;  %2619 = vmatprep.subr.bf16.mxu1 %v3890_v0 }
 0x51a   :  { %v1097_v22 = vpop.f32.mrb[32].mxu0  ;;  %v1138_v3 = vpop.f32.mrb[24].mxu1 }
 0x51b   :  { %v1144_v23 = vadd.f32 %v1097_v22, %v3392_v27  ;;  %v1099_v14 = vpop.f32.mrb[33].mxu0  ;;  %v2597_v13 = vpop.f32.mrb[25].mxu1 }
 0x51c   :  { %v1149_v60 = vadd.f32 %v1099_v14, %v3394_v28  ;;  %v1101_v19 = vpop.f32.mrb[34].mxu0  ;;  %v1141_v41 = vpop.f32.mrb[26].mxu1 }
 0x51d   :  { %v1145_v7 = vmul.f32 0.5, %v1144_v23  ;;  %v1102_v59 = vpop.f32.mrb[35].mxu0  ;;  %v2598_v6 = vpop.f32.mrb[27].mxu1 }
 0x51e   :  { %v1150_v5 = vmul.f32 0.5, %v1149_v60 }
 0x51f   :  { %2783 = vtanh.f32 %v1145_v7 }
 0x520   :  { %2785 = vtanh.f32 %v1150_v5 }
 0x529   :  { %v2784_v15 = vpop.eup %2783 }
 0x52a   :  { %v1147_v24 = vmul.f32 0.5, %v2784_v15  ;;  %v2786_v61 = vpop.eup %2785 }
 0x52b   :  { %v1152_v27 = vmul.f32 0.5, %v2786_v61 }
 0x52c   :  { %v1148_v4 = vadd.f32 0.5, %v1147_v24  ;;  %v2808_v24 = vld [vmem:[%s3854_s4] ss:$12 sps:$4 sm:$0xff]  }
 0x52d   :  { %v1153_v10 = vadd.f32 0.5, %v1152_v27 }
 0x52e   :  { %v1154_v11 = vmul.f32 %v1148_v4, %v1138_v3  ;;  %v2810_v4 = vld [vmem:[%s3854_s4 + $0x18] ss:$12 sps:$4 sm:$0xff]  }
 0x52f   :  { %v1157_v62 = vsub.f32 1.0, %v1153_v10  ;;  %v1159_v20 = vmul.f32 %v1153_v10, %v3545_v18 }
 0x530   :  { %v1155_v2 = vadd.f32 %v1154_v11, %v3398_v32  ;;  %v2813_v11 = vld [vmem:[%s3854_s4 + $0x4c] ss:$12 sps:$4 sm:$0xff]  }
 0x532   :  { %2787 = vtanh.f32 %v1155_v2 }
 0x53c   :  { %v2788_v28 = vpop.eup %2787 }
 0x53d   :  { %v1158_v63 = vmul.f32 %v2788_v28, %v1157_v62 }
 0x53f   :  { %v3588_v9 = vadd.f32 %v1159_v20, %v1158_v63 }
 0x541   :  { %v1164_v8 = vpack.c.bf16 %v3588_v9, %v3588_v9 }
 0x543   :  { %1198 = vmatmul.mubr.bf16.vlgmr.msra.gmra.mrb[36].mxu0 %v1164_v8  ;;  %2616 = vmatmul.mubr.bf16.vlgmr.msra.gmra.mrb[28].mxu1 %v1164_v8 }
 0x544   :  { %1268 = vmatpush1.bf16.msra.mxu0 %v3139_v25  ;;  %2620 = vmatpush3.bf16.msra.mxu1 %v3191_v36  ;;  %v2807_v25 = vld [vmem:[%s3854_s4 + $0x4] ss:$12 sps:$4 sm:$0xff]  }
 0x545   :  { %1269 = vmatprep.subr.bf16.mxu0 %v3145_v26  ;;  %2621 = vmatprep.subr.bf16.mxu1 %v3890_v0 }
 0x546   :  { %1299 = vmatprep.mubr.bf16.mxu0 %v3891_v1  ;;  %2635 = vmatprep.mubr.msk.bf16.mxu1 %vm2924_vm1, %v3890_v0 }
 0x548   :  { %1270 = vmatpush1.bf16.msra.mxu0 %v3159_v29  ;;  %2622 = vmatpush3.bf16.msra.mxu1 %v3215_v40 }
 0x549   :  { %1271 = vmatprep.subr.bf16.mxu0 %v3168_v31  ;;  %2623 = vmatprep.subr.bf16.mxu1 %v3890_v0 }
 0x54c   :  { %1272 = vmatpush1.bf16.msra.mxu0 %v3179_v34  ;;  %2624 = vmatpush3.bf16.msra.mxu1 %v3241_v44 }
 0x54d   :  { %1273 = vmatprep.subr.bf16.mxu0 %v3185_v35  ;;  %2625 = vmatprep.subr.bf16.mxu1 %v3890_v0 }
 0x550   :  { %1274 = vmatpush1.bf16.msra.mxu0 %v3202_v38  ;;  %2626 = vmatpush3.bf16.msra.mxu1 %v3270_v49 }
 0x551   :  { %1275 = vmatprep.subr.bf16.mxu0 %v3208_v39  ;;  %2627 = vmatprep.subr.bf16.mxu1 %v3890_v0 }
 0x554   :  { %1276 = vmatpush1.bf16.msra.mxu0 %v3228_v42  ;;  %2628 = vmatpush3.bf16.msra.mxu1 %v3296_v53 }
 0x555   :  { %1277 = vmatprep.subr.bf16.mxu0 %v3234_v43  ;;  %2629 = vmatprep.subr.bf16.mxu1 %v3890_v0 }
 0x558   :  { %1278 = vmatpush1.bf16.msra.mxu0 %v3254_v46  ;;  %2630 = vmatpush3.bf16.msra.mxu1 %v3314_v55 }
 0x559   :  { %1279 = vmatprep.subr.bf16.mxu0 %v3263_v48  ;;  %2631 = vmatprep.subr.bf16.mxu1 %v3890_v0 }
 0x55c   :  { %1280 = vmatpush1.bf16.msra.mxu0 %v3280_v50  ;;  %2632 = vmatpush3.bf16.msra.mxu1 %v3325_v57 }
 0x55d   :  { %1281 = vmatprep.subr.bf16.mxu0 %v3289_v52  ;;  %2633 = vmatprep.subr.bf16.mxu1 %v3890_v0 }
 0x560   :  { %1282 = vmatpush1.bf16.msra.mxu0 %v3307_v54  ;;  %2634 = vmatpush3.bf16.msra.mxu1 %v3336_v58 }
 0x561   :  { %1369 = vmatprep.subr.bf16.mxu0 %v2807_v25  ;;  %2639 = vmatprep.subr.bf16.mxu1 %v3890_v0 }
 0x616   :  { %v1199_v26 = vpop.f32.mrb[36].mxu0  ;;  %v1240_v29 = vpop.f32.mrb[28].mxu1 }
 0x617   :  { %v1246_v31 = vadd.f32 %v1199_v26, %v3400_v33  ;;  %v1201_v34 = vpop.f32.mrb[37].mxu0  ;;  %v2617_v35 = vpop.f32.mrb[29].mxu1 }
 0x618   :  { %v1251_v32 = vadd.f32 %v1201_v34, %v3402_v37  ;;  %v1203_v21 = vpop.f32.mrb[38].mxu0  ;;  %v1243_v17 = vpop.f32.mrb[30].mxu1 }
 0x619   :  { %v1247_v12 = vmul.f32 0.5, %v1246_v31  ;;  %v1204_v18 = vpop.f32.mrb[39].mxu0  ;;  %v2618_v16 = vpop.f32.mrb[31].mxu1 }
 0x61a   :  { %v1252_v22 = vmul.f32 0.5, %v1251_v32 }
 0x61b   :  { %2789 = vtanh.f32 %v1247_v12 }
 0x61c   :  { %2791 = vtanh.f32 %v1252_v22 }
 0x625   :  { %v2790_v3 = vpop.eup %2789 }
 0x626   :  { %v1249_v23 = vmul.f32 0.5, %v2790_v3  ;;  %v2792_v60 = vpop.eup %2791 }
 0x627   :  { %v1254_v33 = vmul.f32 0.5, %v2792_v60 }
 0x628   :  { %v1250_v14 = vadd.f32 0.5, %v1249_v23 }
 0x629   :  { %v1255_v41 = vadd.f32 0.5, %v1254_v33 }
 0x62a   :  { %v1256_v13 = vmul.f32 %v1250_v14, %v1240_v29 }
 0x62b   :  { %v1259_v7 = vsub.f32 1.0, %v1255_v41  ;;  %v1261_v6 = vmul.f32 %v1255_v41, %v3588_v9 }
 0x62c   :  { %v1257_v19 = vadd.f32 %v3396_v30, %v1256_v13  ;;  %v2809_v30 = vld [vmem:[%s3854_s4 + $0x1c] ss:$12 sps:$4 sm:$0xff]  }
 0x62e   :  { %2793 = vtanh.f32 %v1257_v19 }
 0x638   :  { %v2794_v37 = vpop.eup %2793 }
 0x639   :  { %v1260_v59 = vmul.f32 %v2794_v37, %v1259_v7 }
 0x63b   :  { %v3633_v5 = vadd.f32 %v1261_v6, %v1260_v59 }
 0x63d   :  { %v1266_v15 = vpack.c.bf16 %v3633_v5, %v3633_v5 }
 0x63f   :  { %1300 = vmatmul.mubr.bf16.vlgmr.msra.gmra.mrb[40].mxu0 %v1266_v15  ;;  %2636 = vmatmul.mubr.bf16.vlgmr.msra.gmra.mrb[32].mxu1 %v1266_v15 }
 0x640   :  { %1370 = vmatpush1.bf16.msra.mxu0 %v2808_v24  ;;  %2640 = vmatpush3.bf16.msra.mxu1 %v3191_v36  ;;  %v2811_v36 = vld [vmem:[%s3854_s4 + $0x34] ss:$12 sps:$4 sm:$0xff]  }
 0x641   :  { %1371 = vmatprep.subr.bf16.mxu0 %v2809_v30  ;;  %2641 = vmatprep.subr.bf16.mxu1 %v3890_v0 }
 0x642   :  { %1401 = vmatprep.mubr.bf16.mxu0 %v3891_v1  ;;  %2655 = vmatprep.mubr.msk.bf16.mxu1 %vm2924_vm1, %v3890_v0  ;;  %v2812_v1 = vld [vmem:[%s3854_s4 + $0x30] ss:$12 sps:$4 sm:$0xff]   ;;  %s2926_s4 = smov [#allocation6]  }
 0x643   :  { %s195_s20 = sshll.u32 %s2926_s4, 4  ;;  %s196_s20 = int_to_ptr.vmem [resolvable:$true] %s195_s20 }
 0x644   :  { %1372 = vmatpush1.bf16.msra.mxu0 %v2810_v4  ;;  %2642 = vmatpush3.bf16.msra.mxu1 %v3215_v40 }
 0x645   :  { %1373 = vmatprep.subr.bf16.mxu0 %v2811_v36  ;;  %2643 = vmatprep.subr.bf16.mxu1 %v3890_v0 }
 0x648   :  { %1374 = vmatpush1.bf16.msra.mxu0 %v2812_v1  ;;  %2644 = vmatpush3.bf16.msra.mxu1 %v3241_v44 }
 0x649   :  { %1375 = vmatprep.subr.bf16.mxu0 %v2813_v11  ;;  %2645 = vmatprep.subr.bf16.mxu1 %v3890_v0 }
 0x64c   :  { %1376 = vmatpush1.bf16.msra.mxu0 %v3202_v38  ;;  %2646 = vmatpush3.bf16.msra.mxu1 %v3270_v49 }
 0x64d   :  { %1377 = vmatprep.subr.bf16.mxu0 %v3208_v39  ;;  %2647 = vmatprep.subr.bf16.mxu1 %v3890_v0 }
 0x650   :  { %1378 = vmatpush1.bf16.msra.mxu0 %v3228_v42  ;;  %2648 = vmatpush3.bf16.msra.mxu1 %v3296_v53 }
 0x651   :  { %1379 = vmatprep.subr.bf16.mxu0 %v3234_v43  ;;  %2649 = vmatprep.subr.bf16.mxu1 %v3890_v0 }
 0x654   :  { %1380 = vmatpush1.bf16.msra.mxu0 %v3254_v46  ;;  %2650 = vmatpush3.bf16.msra.mxu1 %v3314_v55 }
 0x655   :  { %1381 = vmatprep.subr.bf16.mxu0 %v3263_v48  ;;  %2651 = vmatprep.subr.bf16.mxu1 %v3890_v0 }
 0x658   :  { %1382 = vmatpush1.bf16.msra.mxu0 %v3280_v50  ;;  %2652 = vmatpush3.bf16.msra.mxu1 %v3325_v57 }
 0x659   :  { %1383 = vmatprep.subr.bf16.mxu0 %v3289_v52  ;;  %2653 = vmatprep.subr.bf16.mxu1 %v3890_v0 }
 0x65c   :  { %1384 = vmatpush1.bf16.msra.mxu0 %v3307_v54  ;;  %2654 = vmatpush3.bf16.msra.mxu1 %v3336_v58 }
 0x712   :  { %v1301_v38 = vpop.f32.mrb[40].mxu0  ;;  %v1342_v39 = vpop.f32.mrb[32].mxu1 }
 0x713   :  { %v1348_v40 = vadd.f32 %v1301_v38, %v3408_v47  ;;  %v1303_v42 = vpop.f32.mrb[41].mxu0  ;;  %v2637_v43 = vpop.f32.mrb[33].mxu1 }
 0x714   :  { %v1353_v44 = vadd.f32 %v1303_v42, %v3410_v51  ;;  %v1305_v46 = vpop.f32.mrb[42].mxu0  ;;  %v1345_v48 = vpop.f32.mrb[34].mxu1 }
 0x715   :  { %v1349_v49 = vmul.f32 0.5, %v1348_v40  ;;  %v1306_v50 = vpop.f32.mrb[43].mxu0  ;;  %v2638_v53 = vpop.f32.mrb[35].mxu1 }
 0x716   :  { %v1354_v52 = vmul.f32 0.5, %v1353_v44 }
 0x717   :  { %2795 = vtanh.f32 %v1349_v49 }
 0x718   :  { %2797 = vtanh.f32 %v1354_v52 }
 0x721   :  { %v2796_v55 = vpop.eup %2795 }
 0x722   :  { %v1351_v54 = vmul.f32 0.5, %v2796_v55  ;;  %v2798_v61 = vpop.eup %2797 }
 0x723   :  { %v1356_v47 = vmul.f32 0.5, %v2798_v61 }
 0x724   :  { %v1352_v57 = vadd.f32 0.5, %v1351_v54 }
 0x725   :  { %v1357_v27 = vadd.f32 0.5, %v1356_v47 }
 0x726   :  { %v1358_v58 = vmul.f32 %v1352_v57, %v1342_v39 }
 0x727   :  { %v1361_v10 = vsub.f32 1.0, %v1357_v27  ;;  %v1363_v28 = vmul.f32 %v1357_v27, %v3633_v5 }
 0x728   :  { %v1359_v2 = vadd.f32 %v1358_v58, %v3406_v45 }
 0x72a   :  { %2799 = vtanh.f32 %v1359_v2 }
 0x734   :  { %v2800_v51 = vpop.eup %2799 }
 0x735   :  { %v1362_v62 = vmul.f32 %v2800_v51, %v1361_v10 }
 0x737   :  { %v1364_v63 = vadd.f32 %v1363_v28, %v1362_v62 }
 0x739   :  { %v1368_v20 = vpack.c.bf16 %v1364_v63, %v1364_v63 }
 0x73b   :  { %1402 = vmatmul.mubr.bf16.vlgmr.msra.gmra.mrb[44].mxu0 %v1368_v20  ;;  %2656 = vmatmul.mubr.bf16.vlgmr.msra.gmra.mrb[36].mxu1 %v1368_v20 }
 0x73c   :  { %2861 = shalt.err (!%p2858_p10)  }
 0x73d   :  { %s2862_s9 = scalar_lea.vmem %s196_s20, 2048  ;;  %p2867_p12 = scmp.lt.s32.totalorder %s196_s20, %s196_s20 }
 0x73e   :  { %p2863_p11 = scmp.ne.s32.totalorder %s196_s20, %s2862_s9  ;;  %p2868_p13 = scmp.lt.s32.totalorder %s2862_s9, %s2862_s9 }
 0x740   :  { %p2869_p0 = por %p2868_p13, %p2867_p12 }
 0x742   :  { %p2870_p1 = pnand %p2869_p0, %p2863_p11 }
 0x744   :  { %2873 = shalt.err (!%p2870_p1)  }
 0x745   :  { %198 = dma.hbm_to_vmem [thread:$0]  %s3860_s10, 2048, %s196_s20, [#allocation8 + $0x4] }
 0x746   :  { %s2874_s26 = scalar_lea.hbm %s3861_s11, 1024 }
 0x747   :  { %p2875_p2 = scmp.ne.s32.totalorder %s3861_s11, %s2874_s26  ;;  %p2878_p3 = scmp.lt.u32.totalorder %s2874_s26, %s3861_s11 }
 0x749   :  { %p2880_p4 = pnand %p2878_p3, %p2875_p2 }
 0x74b   :  { %2883 = shalt.err (!%p2880_p4)  }
 0x74c   :  { %s2884_s6 = scalar_lea.vmem %s208_s21, 1024  ;;  %p2889_p6 = scmp.lt.s32.totalorder %s208_s21, %s208_s21 }
 0x74d   :  { %p2885_p5 = scmp.ne.s32.totalorder %s208_s21, %s2884_s6  ;;  %p2890_p7 = scmp.lt.s32.totalorder %s2884_s6, %s2884_s6 }
 0x74f   :  { %p2891_p8 = por %p2890_p7, %p2889_p6 }
 0x751   :  { %p2892_p9 = pnand %p2891_p8, %p2885_p5 }
 0x753   :  { %2895 = shalt.err (!%p2892_p9)  }
 0x754   :  { %210 = dma.hbm_to_vmem [thread:$0]  %s3861_s11, 1024, %s208_s21, [#allocation8 + $0x5]  ;;  %v3892_v29 = vld [vmem:[#allocation46_spill] sm:$0xff]  ;;  %v3893_v14 = vld [vmem:[#allocation45_spill] sm:$0xff] }
 0x80e   :  { %v1403_v45 = vpop.f32.mrb[44].mxu0  ;;  %v1444_v9 = vpop.f32.mrb[36].mxu1 }
 0x80f   :  { %v1450_v8 = vadd.f32 %v1403_v45, %v3412_v56  ;;  %v1405_v25 = vpop.f32.mrb[45].mxu0  ;;  %v2657_v26 = vpop.f32.mrb[37].mxu1 }
 0x810   :  { %v1455_v31 = vadd.f32 %v1405_v25, %v3892_v29  ;;  %v1407_v34 = vpop.f32.mrb[46].mxu0  ;;  %v1447_v35 = vpop.f32.mrb[38].mxu1 }
 0x811   :  { %v1451_v32 = vmul.f32 0.5, %v1450_v8  ;;  %v1408_v21 = vpop.f32.mrb[47].mxu0  ;;  %v2658_v17 = vpop.f32.mrb[39].mxu1 }
 0x812   :  { %v1456_v12 = vmul.f32 0.5, %v1455_v31 }
 0x813   :  { %2801 = vtanh.f32 %v1451_v32 }
 0x814   :  { %2803 = vtanh.f32 %v1456_v12 }
 0x81d   :  { %v2802_v18 = vpop.eup %2801 }
 0x81e   :  { %v1453_v16 = vmul.f32 0.5, %v2802_v18  ;;  %v2804_v23 = vpop.eup %2803 }
 0x81f   :  { %v1458_v56 = vmul.f32 0.5, %v2804_v23 }
 0x820   :  { %v1454_v22 = vadd.f32 0.5, %v1453_v16 }
 0x821   :  { %v1459_v60 = vadd.f32 0.5, %v1458_v56 }
 0x822   :  { %v1460_v3 = vmul.f32 %v1454_v22, %v1444_v9 }
 0x823   :  { %v1463_v19 = vsub.f32 1.0, %v1459_v60  ;;  %v1465_v7 = vmul.f32 %v1459_v60, %v1364_v63 }
 0x824   :  { %v1461_v13 = vadd.f32 %v3893_v14, %v1460_v3 }
 0x826   :  { %2805 = vtanh.f32 %v1461_v13 }
 0x830   :  { %v2806_v33 = vpop.eup %2805 }
 0x831   :  { %v1464_v41 = vmul.f32 %v2806_v33, %v1463_v19 }
 0x833   :  { %v3713_v37 = vadd.f32 %v1465_v7, %v1464_v41 }
 0x834   :  { %2896 = dma.done.wait [#allocation8], 10240 }
 0x835   :  { %2897 = vsyncadd [#allocation8], 4294957056  ;;  %v1476_v59 = vld [vmem:[#allocation2 + $0x8] sm:$0xff]  ;;  %v1478_v6 = vld [vmem:[#allocation2 + $0x18] sm:$0xff]  ;;  %vm1599_vm2 = vcmask 261120  }
 0x836   :  { %v1475_v5 = vld [vmem:[#allocation2] sm:$0xff]  ;;  %1603 = vmatprep.subr.bf16.mxu0 %v1476_v59  ;;  %1644 = vmatprep.subr.bf16.mxu1 %v1478_v6  ;;  %v1477_v15 = vld [vmem:[#allocation2 + $0x10] sm:$0xff]  ;;  %v1484_v24 = vld [vmem:[#allocation2 + $0x48] sm:$0xff] }
 0x837   :  { %v1486_v30 = vld [vmem:[#allocation2 + $0x58] sm:$0xff]  ;;  %1604 = vmatpush1.bf16.msra.mxu0 %v1475_v5  ;;  %1645 = vmatpush1.bf16.msra.mxu1 %v1477_v15  ;;  %v1483_v4 = vld [vmem:[#allocation2 + $0x40] sm:$0xff]  ;;  %v1485_v36 = vld [vmem:[#allocation2 + $0x50] sm:$0xff] }
 0x838   :  { %1605 = vmatprep.subr.bf16.mxu0 %v1484_v24  ;;  %1646 = vmatprep.subr.bf16.mxu1 %v1486_v30  ;;  %v1492_v1 = vld [vmem:[#allocation2 + $0x88] sm:$0xff]  ;;  %v1494_v11 = vld [vmem:[#allocation2 + $0x98] sm:$0xff]  ;;  %v1491_v38 = vld [vmem:[#allocation2 + $0x80] sm:$0xff] }
 0x839   :  { %v1493_v39 = vld [vmem:[#allocation2 + $0x90] sm:$0xff]  ;;  %v1500_v40 = vld [vmem:[#allocation2 + $0xc8] sm:$0xff]  ;;  %v1502_v42 = vld [vmem:[#allocation2 + $0xd8] sm:$0xff] }
 0x83a   :  { %v1499_v43 = vld [vmem:[#allocation2 + $0xc0] sm:$0xff]  ;;  %v1501_v44 = vld [vmem:[#allocation2 + $0xd0] sm:$0xff]  ;;  %v1508_v46 = vld [vmem:[#allocation2 + $0x108] sm:$0xff] }
 0x83b   :  { %1606 = vmatpush1.bf16.msra.mxu0 %v1483_v4  ;;  %1647 = vmatpush1.bf16.msra.mxu1 %v1485_v36  ;;  %v1510_v48 = vld [vmem:[#allocation2 + $0x118] sm:$0xff]  ;;  %v1472_v49 = vld [vmem:[%s3851_s1 + $0x8] sm:$0xff]  ;;  %v1507_v53 = vld [vmem:[#allocation2 + $0x100] sm:$0xff] }
 0x83c   :  { %1607 = vmatprep.subr.bf16.mxu0 %v1492_v1  ;;  %1648 = vmatprep.subr.bf16.mxu1 %v1494_v11  ;;  %v3718_v50 = vpack.c.bf16 %v1472_v49, %v1472_v49  ;;  %v1509_v52 = vld [vmem:[#allocation2 + $0x110] sm:$0xff]  ;;  %v1516_v55 = vld [vmem:[#allocation2 + $0x148] sm:$0xff]  ;;  %v1518_v54 = vld [vmem:[#allocation2 + $0x158] sm:$0xff] }
 0x83d   :  { %v1515_v57 = vld [vmem:[#allocation2 + $0x140] sm:$0xff]  ;;  %v1517_v58 = vld [vmem:[#allocation2 + $0x150] sm:$0xff]  ;;  %v1524_v61 = vld [vmem:[#allocation2 + $0x188] sm:$0xff] }
 0x83e   :  { %2328 = vmatprep.mubr.msk.bf16.mxu0 %vm1599_vm2, %v3718_v50  ;;  %2329 = vmatprep.mubr.msk.bf16.mxu1 %vm1599_vm2, %v3718_v50  ;;  %v1526_v2 = vld [vmem:[#allocation2 + $0x198] sm:$0xff]  ;;  %v1523_v47 = vld [vmem:[#allocation2 + $0x180] sm:$0xff]  ;;  %v1525_v27 = vld [vmem:[#allocation2 + $0x190] sm:$0xff] }
 0x83f   :  { %1608 = vmatpush1.bf16.msra.mxu0 %v1491_v38  ;;  %1649 = vmatpush1.bf16.msra.mxu1 %v1493_v39  ;;  %v1532_v10 = vld [vmem:[#allocation2 + $0x1c8] sm:$0xff]  ;;  %v1534_v51 = vld [vmem:[#allocation2 + $0x1d8] sm:$0xff]  ;;  %v1531_v62 = vld [vmem:[#allocation2 + $0x1c0] sm:$0xff] }
 0x840   :  { %1609 = vmatprep.subr.bf16.mxu0 %v1500_v40  ;;  %1650 = vmatprep.subr.bf16.mxu1 %v1502_v42  ;;  %v1533_v28 = vld [vmem:[#allocation2 + $0x1d0] sm:$0xff]  ;;  %v1540_v63 = vld [vmem:[#allocation2 + $0x208] sm:$0xff]  ;;  %v1542_v20 = vld [vmem:[#allocation2 + $0x218] sm:$0xff] }
 0x841   :  { %v1539_v45 = vld [vmem:[#allocation2 + $0x200] sm:$0xff]  ;;  %v1541_v9 = vld [vmem:[#allocation2 + $0x210] sm:$0xff]  ;;  %v1548_v8 = vld [vmem:[#allocation2 + $0x248] sm:$0xff] }
 0x842   :  { %v1550_v25 = vld [vmem:[#allocation2 + $0x258] sm:$0xff]  ;;  %v1471_v26 = vld [vmem:[%s3851_s1] sm:$0xff]  ;;  %v1549_v31 = vld [vmem:[#allocation2 + $0x250] sm:$0xff] }
 0x843   :  { %1610 = vmatpush1.bf16.msra.mxu0 %v1499_v43  ;;  %1651 = vmatpush1.bf16.msra.mxu1 %v1501_v44  ;;  %v1547_v29 = vld [vmem:[#allocation2 + $0x240] sm:$0xff]  ;;  %v1480_v34 = vld [vmem:[#allocation2 + $0x28] sm:$0xff]  ;;  %v1482_v35 = vld [vmem:[#allocation2 + $0x38] sm:$0xff]  ;;  %v3727_v32 = vpack.c.bf16 %v1471_v26, %v1471_v26 }
 0x844   :  { %1611 = vmatprep.subr.bf16.mxu0 %v1508_v46  ;;  %1652 = vmatprep.subr.bf16.mxu1 %v1510_v48  ;;  %v1479_v21 = vld [vmem:[#allocation2 + $0x20] sm:$0xff]  ;;  %v1481_v17 = vld [vmem:[#allocation2 + $0x30] sm:$0xff]  ;;  %v1488_v12 = vld [vmem:[#allocation2 + $0x68] sm:$0xff] }
 0x845   :  { %v1490_v18 = vld [vmem:[#allocation2 + $0x78] sm:$0xff]  ;;  %v1487_v16 = vld [vmem:[#allocation2 + $0x60] sm:$0xff]  ;;  %v1489_v22 = vld [vmem:[#allocation2 + $0x70] sm:$0xff] }
 0x846   :  { %v1496_v3 = vld [vmem:[#allocation2 + $0xa8] sm:$0xff]  ;;  %v1498_v23 = vld [vmem:[#allocation2 + $0xb8] sm:$0xff]  ;;  %v1495_v14 = vld [vmem:[#allocation2 + $0xa0] sm:$0xff] }
 0x847   :  { %1612 = vmatpush1.bf16.msra.mxu0 %v1507_v53  ;;  %1653 = vmatpush1.bf16.msra.mxu1 %v1509_v52  ;;  %v1497_v13 = vld [vmem:[#allocation2 + $0xb0] sm:$0xff]  ;;  %v1504_v56 = vld [vmem:[#allocation2 + $0xe8] sm:$0xff]  ;;  %v1506_v60 = vld [vmem:[#allocation2 + $0xf8] sm:$0xff] }
 0x848   :  { %1613 = vmatprep.subr.bf16.mxu0 %v1516_v55  ;;  %1654 = vmatprep.subr.bf16.mxu1 %v1518_v54  ;;  %v1503_v19 = vld [vmem:[#allocation2 + $0xe0] sm:$0xff]  ;;  %v1505_v33 = vld [vmem:[#allocation2 + $0xf0] sm:$0xff]  ;;  %v1512_v41 = vld [vmem:[#allocation2 + $0x128] sm:$0xff]  ;;  %v1559_v55 = vlaneseq }
 0x849   :  { %v1514_v7 = vld [vmem:[#allocation2 + $0x138] sm:$0xff]  ;;  %v1511_v59 = vld [vmem:[#allocation2 + $0x120] sm:$0xff]  ;;  %v1513_v6 = vld [vmem:[#allocation2 + $0x130] sm:$0xff] }
 0x84a   :  { %v1520_v5 = vld [vmem:[#allocation2 + $0x168] sm:$0xff]  ;;  %v1522_v15 = vld [vmem:[#allocation2 + $0x178] sm:$0xff]  ;;  %v1519_v24 = vld [vmem:[#allocation2 + $0x160] sm:$0xff]  ;;  %v3738_v54 = vshrl.u32 %v1559_v55, 7 }
 0x84b   :  { %1614 = vmatpush1.bf16.msra.mxu0 %v1515_v57  ;;  %1655 = vmatpush1.bf16.msra.mxu1 %v1517_v58  ;;  %v1521_v30 = vld [vmem:[#allocation2 + $0x170] sm:$0xff]  ;;  %v1528_v4 = vld [vmem:[#allocation2 + $0x1a8] sm:$0xff]  ;;  %v1530_v36 = vld [vmem:[#allocation2 + $0x1b8] sm:$0xff] }
 0x84c   :  { %1615 = vmatprep.subr.bf16.mxu0 %v1524_v61  ;;  %1656 = vmatprep.subr.bf16.mxu1 %v1526_v2  ;;  %v1527_v1 = vld [vmem:[#allocation2 + $0x1a0] sm:$0xff]  ;;  %v1529_v11 = vld [vmem:[#allocation2 + $0x1b0] sm:$0xff]  ;;  %v1536_v38 = vld [vmem:[#allocation2 + $0x1e8] sm:$0xff]  ;;  %v1561_v2 = vsub.s32 0, %v3738_v54 }
 0x84d   :  { %v1538_v39 = vld [vmem:[#allocation2 + $0x1f8] sm:$0xff]  ;;  %v1535_v40 = vld [vmem:[#allocation2 + $0x1e0] sm:$0xff]  ;;  %v1537_v42 = vld [vmem:[#allocation2 + $0x1f0] sm:$0xff] }
 0x84e   :  { %v1544_v43 = vld [vmem:[#allocation2 + $0x228] sm:$0xff]  ;;  %v1546_v44 = vld [vmem:[#allocation2 + $0x238] sm:$0xff]  ;;  %v1543_v46 = vld [vmem:[#allocation2 + $0x220] sm:$0xff] }
 0x84f   :  { %1616 = vmatpush1.bf16.msra.mxu0 %v1523_v47  ;;  %1657 = vmatpush1.bf16.msra.mxu1 %v1525_v27  ;;  %v1545_v48 = vld [vmem:[#allocation2 + $0x230] sm:$0xff]  ;;  %v1552_v49 = vld [vmem:[#allocation2 + $0x268] sm:$0xff]  ;;  %v1551_v53 = vld [vmem:[#allocation2 + $0x260] sm:$0xff]  ;;  %v1569_v47 = vsub.s32 2, %v3738_v54  ;;  %v1565_v27 = vsub.s32 1, %v3738_v54 }
 0x850   :  { %1617 = vmatprep.subr.bf16.mxu0 %v1532_v10  ;;  %1658 = vmatprep.subr.bf16.mxu1 %v1534_v51  ;;  %v1553_v52 = vld [vmem:[#allocation2 + $0x270] sm:$0xff]  ;;  %v1573_v10 = vsub.s32 3, %v3738_v54 }
 0x851   :  { %v1555_v57 = vld [vmem:[%s3855_s5] ss:$8 sm:$0xf] }
 0x852   :  { %v1556_v58 = vld [vmem:[%s3855_s5] ss:$8 sm:$0xf0] }
 0x853   :  { %1618 = vmatpush1.bf16.msra.mxu0 %v1531_v62  ;;  %1659 = vmatpush1.bf16.msra.mxu1 %v1533_v28  ;;  %v1557_v61 = vor.u32 %v1556_v58, %v1555_v57 }
 0x854   :  { %1619 = vmatprep.subr.bf16.mxu0 %v1540_v63  ;;  %1660 = vmatprep.subr.bf16.mxu1 %v1542_v20 }
 0x855   :  { %v1562_v51 = vrot.slane %v1557_v61, %v1561_v2  ;;  %v1570_v62 = vrot.slane %v1557_v61, %v1569_v47  ;;  %v1566_v28 = vrot.slane %v1557_v61, %v1565_v27  ;;  %v1574_v63 = vrot.slane %v1557_v61, %v1573_v10 }
 0x857   :  { %1620 = vmatpush1.bf16.msra.mxu0 %v1539_v45  ;;  %1661 = vmatpush1.bf16.msra.mxu1 %v1541_v9 }
 0x858   :  { %1621 = vmatprep.subr.bf16.mxu0 %v1548_v8  ;;  %1662 = vmatprep.subr.bf16.mxu1 %v1550_v25 }
 0x85b   :  { %1622 = vmatpush1.bf16.msra.mxu0 %v1547_v29  ;;  %1663 = vmatpush1.bf16.msra.mxu1 %v1549_v31 }
 0x85c   :  { %1685 = vmatprep.subr.bf16.mxu0 %v1480_v34  ;;  %1726 = vmatprep.subr.bf16.mxu1 %v1482_v35 }
 0x85e   :  { %1636 = vmatmul.mubr.bf16.vlgmr.msra.gmra.mrb[48].mxu0 %v3727_v32  ;;  %1677 = vmatmul.mubr.bf16.vlgmr.msra.gmra.mrb[40].mxu1 %v3727_v32 }
 0x85f   :  { %1686 = vmatpush1.bf16.msra.mxu0 %v1479_v21  ;;  %1727 = vmatpush1.bf16.msra.mxu1 %v1481_v17 }
 0x860   :  { %1687 = vmatprep.subr.bf16.mxu0 %v1488_v12  ;;  %1728 = vmatprep.subr.bf16.mxu1 %v1490_v18 }
 0x861   :  { %2330 = vmatprep.mubr.msk.bf16.mxu0 %vm1599_vm2, %v3718_v50  ;;  %2331 = vmatprep.mubr.msk.bf16.mxu1 %vm1599_vm2, %v3718_v50  ;;  %v1554_v50 = vld [vmem:[#allocation2 + $0x278] sm:$0xff] }
 0x863   :  { %1688 = vmatpush1.bf16.msra.mxu0 %v1487_v16  ;;  %1729 = vmatpush1.bf16.msra.mxu1 %v1489_v22 }
 0x864   :  { %1689 = vmatprep.subr.bf16.mxu0 %v1496_v3  ;;  %1730 = vmatprep.subr.bf16.mxu1 %v1498_v23  ;;  %v1577_v23 = vsub.s32 4, %v3738_v54 }
 0x867   :  { %1690 = vmatpush1.bf16.msra.mxu0 %v1495_v14  ;;  %1731 = vmatpush1.bf16.msra.mxu1 %v1497_v13  ;;  %v1585_v14 = vsub.s32 6, %v3738_v54  ;;  %v1581_v13 = vsub.s32 5, %v3738_v54 }
 0x868   :  { %1691 = vmatprep.subr.bf16.mxu0 %v1504_v56  ;;  %1732 = vmatprep.subr.bf16.mxu1 %v1506_v60  ;;  %v1589_v56 = vsub.s32 7, %v3738_v54  ;;  %v1578_v60 = vrot.slane %v1557_v61, %v1577_v23 }
 0x86b   :  { %1692 = vmatpush1.bf16.msra.mxu0 %v1503_v19  ;;  %1733 = vmatpush1.bf16.msra.mxu1 %v1505_v33  ;;  %v1586_v19 = vrot.slane %v1557_v61, %v1585_v14  ;;  %v1582_v33 = vrot.slane %v1557_v61, %v1581_v13 }
 0x86c   :  { %1693 = vmatprep.subr.bf16.mxu0 %v1512_v41  ;;  %1734 = vmatprep.subr.bf16.mxu1 %v1514_v7  ;;  %v1590_v41 = vrot.slane %v1557_v61, %v1589_v56 }
 0x86f   :  { %1694 = vmatpush1.bf16.msra.mxu0 %v1511_v59  ;;  %1735 = vmatpush1.bf16.msra.mxu1 %v1513_v6 }
 0x870   :  { %1695 = vmatprep.subr.bf16.mxu0 %v1520_v5  ;;  %1736 = vmatprep.subr.bf16.mxu1 %v1522_v15 }
 0x873   :  { %1696 = vmatpush1.bf16.msra.mxu0 %v1519_v24  ;;  %1737 = vmatpush1.bf16.msra.mxu1 %v1521_v30 }
 0x874   :  { %1697 = vmatprep.subr.bf16.mxu0 %v1528_v4  ;;  %1738 = vmatprep.subr.bf16.mxu1 %v1530_v36 }
 0x877   :  { %1698 = vmatpush1.bf16.msra.mxu0 %v1527_v1  ;;  %1739 = vmatpush1.bf16.msra.mxu1 %v1529_v11 }
 0x878   :  { %1699 = vmatprep.subr.bf16.mxu0 %v1536_v38  ;;  %1740 = vmatprep.subr.bf16.mxu1 %v1538_v39 }
 0x87b   :  { %1700 = vmatpush1.bf16.msra.mxu0 %v1535_v40  ;;  %1741 = vmatpush1.bf16.msra.mxu1 %v1537_v42 }
 0x87c   :  { %1701 = vmatprep.subr.bf16.mxu0 %v1544_v43  ;;  %1742 = vmatprep.subr.bf16.mxu1 %v1546_v44 }
 0x87f   :  { %1702 = vmatpush1.bf16.msra.mxu0 %v1543_v46  ;;  %1743 = vmatpush1.bf16.msra.mxu1 %v1545_v48 }
 0x880   :  { %1703 = vmatprep.subr.bf16.mxu0 %v1552_v49  ;;  %1744 = vmatprep.subr.bf16.mxu1 %v1554_v50  ;;  %v3894_v50 = vld [vmem:[#allocation37_spill] sm:$0xff] }
 0x883   :  { %1704 = vmatpush1.bf16.msra.mxu0 %v1551_v53  ;;  %1745 = vmatpush1.bf16.msra.mxu1 %v1553_v52 }
 0x884   :  { %2421 = vmatprep.subr.bf16.mxu0 %v3894_v50 }
 0x886   :  { %1718 = vmatmul.mubr.bf16.vlgmr.msra.gmra.mrb[52].mxu0 %v3727_v32  ;;  %1759 = vmatmul.mubr.bf16.vlgmr.msra.gmra.mrb[44].mxu1 %v3727_v32 }
 0x931   :  { %v1637_v20 = vpop.f32.mrb[48].mxu0  ;;  %v1678_v45 = vpop.f32.mrb[40].mxu1 }
 0x932   :  { %v1638_v9 = vadd.f32 %v1637_v20, %v1562_v51  ;;  %v1679_v8 = vadd.f32 %v1678_v45, %v1570_v62  ;;  %v1639_v25 = vpop.f32.mrb[49].mxu0  ;;  %v1680_v26 = vpop.f32.mrb[41].mxu1 }
 0x933   :  { %v1640_v29 = vadd.f32 %v1639_v25, %v1566_v28  ;;  %v1681_v31 = vadd.f32 %v1680_v26, %v1574_v63  ;;  %v1641_v34 = vpop.f32.mrb[50].mxu0  ;;  %v1682_v35 = vpop.f32.mrb[42].mxu1 }
 0x934   :  { %v1767_v32 = vmax.f32 %v1638_v9, 0.0  ;;  %v1769_v21 = vmax.f32 %v1679_v8, 0.0  ;;  %v1642_v17 = vpop.f32.mrb[51].mxu0  ;;  %v1683_v12 = vpop.f32.mrb[43].mxu1 }
 0x935   :  { %v1768_v18 = vmax.f32 %v1640_v29, 0.0  ;;  %v1770_v16 = vmax.f32 %v1681_v31, 0.0 }
 0x936   :  { %v1775_v22 = vmax.f32 %v1767_v32, %v1769_v21 }
 0x937   :  { %v1776_v3 = vmax.f32 %v1768_v18, %v1770_v16 }
 0x959   :  { %v1719_v7 = vpop.f32.mrb[52].mxu0  ;;  %v1760_v59 = vpop.f32.mrb[44].mxu1 }
 0x95a   :  { %v1720_v6 = vadd.f32 %v1719_v7, %v1578_v60  ;;  %v1761_v5 = vadd.f32 %v1760_v59, %v1586_v19  ;;  %v1721_v15 = vpop.f32.mrb[53].mxu0  ;;  %v1762_v24 = vpop.f32.mrb[45].mxu1 }
 0x95b   :  { %v1722_v30 = vadd.f32 %v1721_v15, %v1582_v33  ;;  %v1763_v4 = vadd.f32 %v1762_v24, %v1590_v41  ;;  %v1723_v36 = vpop.f32.mrb[54].mxu0  ;;  %v1764_v1 = vpop.f32.mrb[46].mxu1 }
 0x95c   :  { %v1771_v11 = vmax.f32 %v1720_v6, 0.0  ;;  %v1773_v38 = vmax.f32 %v1761_v5, 0.0  ;;  %v1724_v39 = vpop.f32.mrb[55].mxu0  ;;  %v1765_v40 = vpop.f32.mrb[47].mxu1 }
 0x95d   :  { %v1772_v42 = vmax.f32 %v1722_v30, 0.0  ;;  %v1774_v43 = vmax.f32 %v1763_v4, 0.0 }
 0x95e   :  { %v1777_v44 = vmax.f32 %v1771_v11, %v1773_v38 }
 0x95f   :  { %v1778_v46 = vmax.f32 %v1772_v42, %v1774_v43 }
 0x960   :  { %v1779_v48 = vmax.f32 %v1775_v22, %v1777_v44 }
 0x961   :  { %v1780_v49 = vmax.f32 %v1776_v3, %v1778_v46 }
 0x963   :  { %v1786_v53 = vpack.c.bf16 %v1780_v49, %v1780_v49 }
 0x964   :  { %2898 = dma.done.wait [#allocation8 + $0x1], 2048 }
 0x965   :  { %2899 = vsyncadd [#allocation8 + $0x1], 4294965248  ;;  %v3895_v52 = vld [vmem:[#allocation29_spill] sm:$0xff]  ;;  %v3896_v57 = vld [vmem:[#allocation38_spill] sm:$0xff]  ;;  %1836 = vmatprep.mubr.bf16.mxu0 %v1786_v53  ;;  %v1785_v29 = vpack.c.bf16 %v1779_v48, %v1779_v48 }
 0x966   :  { %2422 = vmatpush3.bf16.msra.mxu0 %v3895_v52  ;;  %v3897_v58 = vld [vmem:[#allocation30_spill] sm:$0xff]  ;;  %v3898_v61 = vld [vmem:[#allocation39_spill] sm:$0xff]  ;;  %v3900_v62 = vld [vmem:[#allocation40_spill] sm:$0xff] }
 0x967   :  { %2423 = vmatprep.subr.bf16.mxu0 %v3896_v57  ;;  %v3899_v51 = vld [vmem:[#allocation31_spill] sm:$0xff]  ;;  %v3901_v28 = vld [vmem:[#allocation32_spill] sm:$0xff]  ;;  %v3902_v63 = vld [vmem:[#allocation41_spill] sm:$0xff] }
 0x968   :  { %v3903_v20 = vld [vmem:[#allocation33_spill] sm:$0xff]  ;;  %v3904_v45 = vld [vmem:[#allocation42_spill] sm:$0xff]  ;;  %v3906_v8 = vld [vmem:[#allocation43_spill] sm:$0xff] }
 0x969   :  { %v3905_v9 = vld [vmem:[#allocation34_spill] sm:$0xff]  ;;  %v3907_v25 = vld [vmem:[#allocation35_spill] sm:$0xff]  ;;  %v3908_v26 = vld [vmem:[#allocation44_spill] sm:$0xff] }
 0x96a   :  { %2424 = vmatpush3.bf16.msra.mxu0 %v3897_v58  ;;  %v3909_v31 = vld [vmem:[#allocation36_spill] sm:$0xff]  ;;  %v1803_v35 = vld [vmem:[%s3855_s5 + $0x1] ss:$0 sm:$0xff] }
 0x96b   :  { %2425 = vmatprep.subr.bf16.mxu0 %v3898_v61 }
 0x96e   :  { %2426 = vmatpush3.bf16.msra.mxu0 %v3899_v51 }
 0x96f   :  { %2427 = vmatprep.subr.bf16.mxu0 %v3900_v62 }
 0x972   :  { %2428 = vmatpush3.bf16.msra.mxu0 %v3901_v28 }
 0x973   :  { %2429 = vmatprep.subr.bf16.mxu0 %v3902_v63 }
 0x976   :  { %2430 = vmatpush3.bf16.msra.mxu0 %v3903_v20 }
 0x977   :  { %2431 = vmatprep.subr.bf16.mxu0 %v3904_v45 }
 0x97a   :  { %2432 = vmatpush3.bf16.msra.mxu0 %v3905_v9 }
 0x97b   :  { %2433 = vmatprep.subr.bf16.mxu0 %v3906_v8 }
 0x97e   :  { %2434 = vmatpush3.bf16.msra.mxu0 %v3907_v25 }
 0x97f   :  { %2435 = vmatprep.subr.bf16.mxu0 %v3908_v26 }
 0x982   :  { %2436 = vmatpush3.bf16.msra.mxu0 %v3909_v31 }
 0x985   :  { %1837 = vmatmul.mubr.bf16.vlgmr.msra.gmra.mrb[56].mxu0 %v1785_v29 }
 0xa58   :  { %v2437_v34 = vpop.f32.mrb[56].mxu0 }
 0xa59   :  { %v2438_v32 = vpop.f32.mrb[57].mxu0 }
 0xa5a   :  { %v2439_v21 = vadd.f32 %v2438_v32, %v2437_v34  ;;  %v2440_v17 = vpop.f32.mrb[58].mxu0 }
 0xa5b   :  { %v2441_v12 = vpop.f32.mrb[59].mxu0 }
 0xa5c   :  { %v1839_v18 = vadd.f32 %v2439_v21, %v1803_v35 }
 0xa5e   :  { %v1844_v16 = vmax.f32 %v1839_v18, 0.0 }
 0xa5f   :  { %2900 = dma.done.wait [#allocation8 + $0x2], 1024 }
 0xa60   :  { %2901 = vsyncadd [#allocation8 + $0x2], 4294966272  ;;  %2659 = vmatprep.subr.bf16.mxu1 %v3890_v0  ;;  %2675 = vmatprep.mubr.msk.bf16.mxu1 %vm2924_vm1, %v3890_v0  ;;  %v1900_v22 = vld [vmem:[%s3852_s2] sm:$0xff]  ;;  %v3790_v3 = vld [vmem:[%s3852_s2 + $0x8] sm:$0xff]  ;;  %v1849_v7 = vpack.c.bf16 %v1844_v16, %v1844_v16 }
 0xa61   :  { %v1850_v23 = vld [vmem:[#allocation4] sm:$0xff]  ;;  %v1851_v14 = vld [vmem:[#allocation4 + $0x8] sm:$0xff]  ;;  %v1852_v13 = vld [vmem:[#allocation4 + $0x10] sm:$0xff] }
 0xa62   :  { %2660 = vmatpush3.bf16.msra.mxu1 %v1850_v23  ;;  %v1853_v56 = vld [vmem:[#allocation4 + $0x18] sm:$0xff]  ;;  %v1854_v60 = vld [vmem:[#allocation4 + $0x20] sm:$0xff]  ;;  %v1855_v19 = vld [vmem:[#allocation4 + $0x28] sm:$0xff] }
 0xa63   :  { %2661 = vmatprep.subr.bf16.mxu1 %v3890_v0  ;;  %v1856_v33 = vld [vmem:[#allocation4 + $0x30] sm:$0xff]  ;;  %v1857_v41 = vld [vmem:[#allocation4 + $0x38] sm:$0xff]  ;;  %v1858_v59 = vld [vmem:[%s3855_s5 + $0x2] ss:$0 sm:$0xff] }
 0xa66   :  { %2662 = vmatpush3.bf16.msra.mxu1 %v1851_v14 }
 0xa67   :  { %2663 = vmatprep.subr.bf16.mxu1 %v3890_v0 }
 0xa6a   :  { %2664 = vmatpush3.bf16.msra.mxu1 %v1852_v13 }
 0xa6b   :  { %2665 = vmatprep.subr.bf16.mxu1 %v3890_v0 }
 0xa6e   :  { %2666 = vmatpush3.bf16.msra.mxu1 %v1853_v56 }
 0xa6f   :  { %2667 = vmatprep.subr.bf16.mxu1 %v3890_v0 }
 0xa72   :  { %2668 = vmatpush3.bf16.msra.mxu1 %v1854_v60 }
 0xa73   :  { %2669 = vmatprep.subr.bf16.mxu1 %v3890_v0 }
 0xa76   :  { %2670 = vmatpush3.bf16.msra.mxu1 %v1855_v19 }
 0xa77   :  { %2671 = vmatprep.subr.bf16.mxu1 %v3890_v0 }
 0xa7a   :  { %2672 = vmatpush3.bf16.msra.mxu1 %v1856_v33 }
 0xa7b   :  { %2673 = vmatprep.subr.bf16.mxu1 %v3890_v0 }
 0xa7e   :  { %2674 = vmatpush3.bf16.msra.mxu1 %v1857_v41 }
 0xa81   :  { %2676 = vmatmul.mubr.bf16.vlgmr.msra.gmra.mrb[48].mxu1 %v1849_v7 }
 0xb54   :  { %v1893_v6 = vpop.f32.mrb[48].mxu1 }
 0xb55   :  { %v3802_v5 = vadd.f32 %v1893_v6, %v1858_v59  ;;  %v2677_v15 = vpop.f32.mrb[49].mxu1 }
 0xb56   :  { %v1896_v24 = vpop.f32.mrb[50].mxu1 }
 0xb57   :  { %v1899_v30 = vmax.f32 %v3802_v5, 0.0  ;;  %v2678_v4 = vpop.f32.mrb[51].mxu1 }
 0xb58   :  { %2902 = dma.done.wait [#allocation8 + $0x3], 8192 }
 0xb59   :  { %2903 = vsyncadd [#allocation8 + $0x3], 4294959104  ;;  %v1906_v36 = vpack.c.bf16 %v1900_v22, %v1900_v22  ;;  %v1908_v1 = vld [vmem:[#allocation5 + $0x8] sm:$0xff]  ;;  %v1907_v11 = vld [vmem:[#allocation5] sm:$0xff] }
 0xb5a   :  { %v1912_v38 = vld [vmem:[#allocation5 + $0x28] sm:$0xff]  ;;  %1994 = vmatprep.subr.bf16.mxu0 %v1908_v1  ;;  %v1910_v39 = vld [vmem:[#allocation5 + $0x18] sm:$0xff]  ;;  %v1909_v40 = vld [vmem:[#allocation5 + $0x10] sm:$0xff] }
 0xb5b   :  { %2026 = vmatprep.mubr.bf16.mxu0 %v1906_v36  ;;  %2067 = vmatprep.mubr.bf16.mxu1 %v1906_v36  ;;  %v1914_v42 = vld [vmem:[#allocation5 + $0x38] sm:$0xff]  ;;  %v1911_v43 = vld [vmem:[#allocation5 + $0x20] sm:$0xff]  ;;  %v1916_v44 = vld [vmem:[#allocation5 + $0x48] sm:$0xff] }
 0xb5c   :  { %1995 = vmatpush1.bf16.msra.mxu0 %v1907_v11  ;;  %2035 = vmatprep.subr.bf16.mxu1 %v1910_v39  ;;  %v1913_v46 = vld [vmem:[#allocation5 + $0x30] sm:$0xff]  ;;  %v1918_v48 = vld [vmem:[#allocation5 + $0x58] sm:$0xff]  ;;  %v1915_v49 = vld [vmem:[#allocation5 + $0x40] sm:$0xff] }
 0xb5d   :  { %1996 = vmatprep.subr.bf16.mxu0 %v1912_v38  ;;  %2036 = vmatpush1.bf16.msra.mxu1 %v1909_v40  ;;  %v1920_v50 = vld [vmem:[#allocation5 + $0x68] sm:$0xff]  ;;  %v1917_v53 = vld [vmem:[#allocation5 + $0x50] sm:$0xff]  ;;  %v1922_v52 = vld [vmem:[#allocation5 + $0x78] sm:$0xff] }
 0xb5e   :  { %2037 = vmatprep.subr.bf16.mxu1 %v1914_v42  ;;  %v1919_v57 = vld [vmem:[#allocation5 + $0x60] sm:$0xff]  ;;  %v1924_v58 = vld [vmem:[#allocation5 + $0x88] sm:$0xff]  ;;  %v1921_v61 = vld [vmem:[#allocation5 + $0x70] sm:$0xff] }
 0xb5f   :  { %v1926_v51 = vld [vmem:[#allocation5 + $0x98] sm:$0xff]  ;;  %v1923_v62 = vld [vmem:[#allocation5 + $0x80] sm:$0xff]  ;;  %v1928_v28 = vld [vmem:[#allocation5 + $0xa8] sm:$0xff] }
 0xb60   :  { %1997 = vmatpush1.bf16.msra.mxu0 %v1911_v43  ;;  %v1925_v63 = vld [vmem:[#allocation5 + $0x90] sm:$0xff]  ;;  %v1930_v20 = vld [vmem:[#allocation5 + $0xb8] sm:$0xff]  ;;  %v1927_v45 = vld [vmem:[#allocation5 + $0xa0] sm:$0xff] }
 0xb61   :  { %1998 = vmatprep.subr.bf16.mxu0 %v1916_v44  ;;  %2038 = vmatpush1.bf16.msra.mxu1 %v1913_v46  ;;  %v1932_v9 = vld [vmem:[#allocation5 + $0xc8] sm:$0xff]  ;;  %v1929_v8 = vld [vmem:[#allocation5 + $0xb0] sm:$0xff]  ;;  %v1934_v25 = vld [vmem:[#allocation5 + $0xd8] sm:$0xff] }
 0xb62   :  { %2039 = vmatprep.subr.bf16.mxu1 %v1918_v48  ;;  %v1931_v26 = vld [vmem:[#allocation5 + $0xc0] sm:$0xff]  ;;  %v1936_v29 = vld [vmem:[#allocation5 + $0xe8] sm:$0xff]  ;;  %v1933_v31 = vld [vmem:[#allocation5 + $0xd0] sm:$0xff] }
 0xb63   :  { %v1938_v34 = vld [vmem:[#allocation5 + $0xf8] sm:$0xff]  ;;  %v1935_v35 = vld [vmem:[#allocation5 + $0xe0] sm:$0xff]  ;;  %v1940_v32 = vld [vmem:[#allocation5 + $0x108] sm:$0xff] }
 0xb64   :  { %1999 = vmatpush1.bf16.msra.mxu0 %v1915_v49  ;;  %v1937_v21 = vld [vmem:[#allocation5 + $0xf0] sm:$0xff]  ;;  %v1942_v17 = vld [vmem:[#allocation5 + $0x118] sm:$0xff]  ;;  %v1939_v12 = vld [vmem:[#allocation5 + $0x100] sm:$0xff] }
 0xb65   :  { %2000 = vmatprep.subr.bf16.mxu0 %v1920_v50  ;;  %2040 = vmatpush1.bf16.msra.mxu1 %v1917_v53  ;;  %v1944_v18 = vld [vmem:[#allocation5 + $0x128] sm:$0xff]  ;;  %v1941_v16 = vld [vmem:[#allocation5 + $0x110] sm:$0xff]  ;;  %v1946_v22 = vld [vmem:[#allocation5 + $0x138] sm:$0xff]  ;;  %v1905_v50 = vpack.c.bf16 %v1899_v30, %v1899_v30 }
 0xb66   :  { %2041 = vmatprep.subr.bf16.mxu1 %v1922_v52  ;;  %v1943_v23 = vld [vmem:[#allocation5 + $0x120] sm:$0xff]  ;;  %v1948_v14 = vld [vmem:[#allocation5 + $0x148] sm:$0xff]  ;;  %v1945_v13 = vld [vmem:[#allocation5 + $0x130] sm:$0xff] }
 0xb67   :  { %v1950_v56 = vld [vmem:[#allocation5 + $0x158] sm:$0xff]  ;;  %v1947_v60 = vld [vmem:[#allocation5 + $0x140] sm:$0xff]  ;;  %v1952_v19 = vld [vmem:[#allocation5 + $0x168] sm:$0xff] }
 0xb68   :  { %2001 = vmatpush1.bf16.msra.mxu0 %v1919_v57  ;;  %v1949_v33 = vld [vmem:[#allocation5 + $0x150] sm:$0xff]  ;;  %v1954_v41 = vld [vmem:[#allocation5 + $0x178] sm:$0xff]  ;;  %v1951_v7 = vld [vmem:[#allocation5 + $0x160] sm:$0xff] }
 0xb69   :  { %2002 = vmatprep.subr.bf16.mxu0 %v1924_v58  ;;  %2042 = vmatpush1.bf16.msra.mxu1 %v1921_v61  ;;  %v1956_v59 = vld [vmem:[#allocation5 + $0x188] sm:$0xff]  ;;  %v1953_v6 = vld [vmem:[#allocation5 + $0x170] sm:$0xff]  ;;  %v1958_v15 = vld [vmem:[#allocation5 + $0x198] sm:$0xff] }
 0xb6a   :  { %2043 = vmatprep.subr.bf16.mxu1 %v1926_v51  ;;  %v1955_v24 = vld [vmem:[#allocation5 + $0x180] sm:$0xff]  ;;  %v1960_v4 = vld [vmem:[#allocation5 + $0x1a8] sm:$0xff]  ;;  %v1957_v36 = vld [vmem:[#allocation5 + $0x190] sm:$0xff] }
 0xb6b   :  { %v1962_v1 = vld [vmem:[#allocation5 + $0x1b8] sm:$0xff]  ;;  %v1959_v11 = vld [vmem:[#allocation5 + $0x1a0] sm:$0xff]  ;;  %v1964_v38 = vld [vmem:[#allocation5 + $0x1c8] sm:$0xff] }
 0xb6c   :  { %2003 = vmatpush1.bf16.msra.mxu0 %v1923_v62  ;;  %v1961_v39 = vld [vmem:[#allocation5 + $0x1b0] sm:$0xff]  ;;  %v1966_v40 = vld [vmem:[#allocation5 + $0x1d8] sm:$0xff]  ;;  %v1963_v42 = vld [vmem:[#allocation5 + $0x1c0] sm:$0xff] }
 0xb6d   :  { %2004 = vmatprep.subr.bf16.mxu0 %v1928_v28  ;;  %2044 = vmatpush1.bf16.msra.mxu1 %v1925_v63  ;;  %v1968_v43 = vld [vmem:[#allocation5 + $0x1e8] sm:$0xff]  ;;  %v1965_v44 = vld [vmem:[#allocation5 + $0x1d0] sm:$0xff]  ;;  %v1970_v46 = vld [vmem:[#allocation5 + $0x1f8] sm:$0xff] }
 0xb6e   :  { %2045 = vmatprep.subr.bf16.mxu1 %v1930_v20  ;;  %v1967_v48 = vld [vmem:[#allocation5 + $0x1e0] sm:$0xff]  ;;  %v1969_v49 = vld [vmem:[#allocation5 + $0x1f0] sm:$0xff] }
 0xb6f   :  { %v2332_v53 = vld [vmem:[%s3855_s5 + $0x3] ss:$8 sm:$0xf] }
 0xb70   :  { %2005 = vmatpush1.bf16.msra.mxu0 %v1927_v45  ;;  %v1977_v52 = vrot.slane %v2332_v53, %v1561_v2  ;;  %v1981_v57 = vrot.slane %v2332_v53, %v1565_v27  ;;  %v1985_v58 = vrot.slane %v2332_v53, %v1569_v47  ;;  %v1989_v2 = vrot.slane %v2332_v53, %v1573_v10 }
 0xb71   :  { %2006 = vmatprep.subr.bf16.mxu0 %v1932_v9  ;;  %2046 = vmatpush1.bf16.msra.mxu1 %v1929_v8 }
 0xb72   :  { %2047 = vmatprep.subr.bf16.mxu1 %v1934_v25 }
 0xb74   :  { %2007 = vmatpush1.bf16.msra.mxu0 %v1931_v26 }
 0xb75   :  { %2008 = vmatprep.subr.bf16.mxu0 %v1936_v29  ;;  %2048 = vmatpush1.bf16.msra.mxu1 %v1933_v31 }
 0xb76   :  { %2049 = vmatprep.subr.bf16.mxu1 %v1938_v34 }
 0xb78   :  { %2009 = vmatpush1.bf16.msra.mxu0 %v1935_v35 }
 0xb79   :  { %2010 = vmatprep.subr.bf16.mxu0 %v1940_v32  ;;  %2050 = vmatpush1.bf16.msra.mxu1 %v1937_v21 }
 0xb7a   :  { %2051 = vmatprep.subr.bf16.mxu1 %v1942_v17 }
 0xb7c   :  { %2011 = vmatpush1.bf16.msra.mxu0 %v1939_v12 }
 0xb7d   :  { %2012 = vmatprep.subr.bf16.mxu0 %v1944_v18  ;;  %2052 = vmatpush1.bf16.msra.mxu1 %v1941_v16 }
 0xb7e   :  { %2053 = vmatprep.subr.bf16.mxu1 %v1946_v22 }
 0xb80   :  { %2013 = vmatpush1.bf16.msra.mxu0 %v1943_v23 }
 0xb81   :  { %2014 = vmatprep.subr.bf16.mxu0 %v1948_v14  ;;  %2054 = vmatpush1.bf16.msra.mxu1 %v1945_v13 }
 0xb82   :  { %2055 = vmatprep.subr.bf16.mxu1 %v1950_v56 }
 0xb84   :  { %2015 = vmatpush1.bf16.msra.mxu0 %v1947_v60 }
 0xb85   :  { %2016 = vmatprep.subr.bf16.mxu0 %v1952_v19  ;;  %2056 = vmatpush1.bf16.msra.mxu1 %v1949_v33 }
 0xb86   :  { %2057 = vmatprep.subr.bf16.mxu1 %v1954_v41 }
 0xb88   :  { %2017 = vmatpush1.bf16.msra.mxu0 %v1951_v7 }
 0xb89   :  { %2018 = vmatprep.subr.bf16.mxu0 %v1956_v59  ;;  %2058 = vmatpush1.bf16.msra.mxu1 %v1953_v6 }
 0xb8a   :  { %2059 = vmatprep.subr.bf16.mxu1 %v1958_v15 }
 0xb8c   :  { %2019 = vmatpush1.bf16.msra.mxu0 %v1955_v24 }
 0xb8d   :  { %2020 = vmatprep.subr.bf16.mxu0 %v1960_v4  ;;  %2060 = vmatpush1.bf16.msra.mxu1 %v1957_v36 }
 0xb8e   :  { %2061 = vmatprep.subr.bf16.mxu1 %v1962_v1 }
 0xb90   :  { %2021 = vmatpush1.bf16.msra.mxu0 %v1959_v11 }
 0xb91   :  { %2022 = vmatprep.subr.bf16.mxu0 %v1964_v38  ;;  %2062 = vmatpush1.bf16.msra.mxu1 %v1961_v39 }
 0xb92   :  { %2063 = vmatprep.subr.bf16.mxu1 %v1966_v40 }
 0xb94   :  { %2023 = vmatpush1.bf16.msra.mxu0 %v1963_v42 }
 0xb95   :  { %2024 = vmatprep.subr.bf16.mxu0 %v1968_v43  ;;  %2064 = vmatpush1.bf16.msra.mxu1 %v1965_v44 }
 0xb96   :  { %2065 = vmatprep.subr.bf16.mxu1 %v1970_v46 }
 0xb98   :  { %2025 = vmatpush1.bf16.msra.mxu0 %v1967_v48 }
 0xb99   :  { %2066 = vmatpush1.bf16.msra.mxu1 %v1969_v49 }
 0xb9b   :  { %2027 = vmatmul.mubr.bf16.vlgmr.msra.gmra.mrb[60].mxu0 %v1905_v50 }
 0xb9c   :  { %2068 = vmatmul.mubr.bf16.vlgmr.msra.gmra.mrb[52].mxu1 %v1905_v50 }
 0xc6e   :  { %v2028_v5 = vpop.f32.mrb[60].mxu0 }
 0xc6f   :  { %v2029_v61 = vadd.f32 %v2028_v5, %v1977_v52  ;;  %v2030_v30 = vpop.f32.mrb[61].mxu0  ;;  %v2069_v51 = vpop.f32.mrb[52].mxu1 }
 0xc70   :  { %v2031_v62 = vadd.f32 %v2030_v30, %v1981_v57  ;;  %v2032_v28 = vpop.f32.mrb[62].mxu0  ;;  %v2071_v63 = vpop.f32.mrb[53].mxu1  ;;  %v2070_v9 = vadd.f32 %v2069_v51, %v1985_v58 }
 0xc71   :  { %v2076_v20 = vmul.f32 0.5, %v2029_v61  ;;  %v2033_v45 = vpop.f32.mrb[63].mxu0  ;;  %v2073_v8 = vpop.f32.mrb[54].mxu1  ;;  %v2072_v47 = vadd.f32 %v2071_v63, %v1989_v2 }
 0xc72   :  { %v2080_v25 = vmul.f32 0.5, %v2031_v62  ;;  %v2074_v26 = vpop.f32.mrb[55].mxu1 }
 0xc73   :  { %2814 = vtanh.f32 %v2076_v20  ;;  %v2085_v27 = vmul.f32 0.5, %v2072_v47 }
 0xc74   :  { %2816 = vtanh.f32 %v2080_v25 }
 0xc75   :  { %2818 = vtanh.f32 %v2070_v9 }
 0xc76   :  { %2820 = vtanh.f32 %v2085_v27 }
 0xc7d   :  { %v2815_v29 = vpop.eup %2814 }
 0xc7e   :  { %v2817_v31 = vpop.eup %2816  ;;  %v2078_v34 = vmul.f32 0.5, %v2815_v29 }
 0xc7f   :  { %v2819_v35 = vpop.eup %2818  ;;  %v2082_v32 = vmul.f32 0.5, %v2817_v31 }
 0xc80   :  { %v2079_v21 = vadd.f32 0.5, %v2078_v34  ;;  %v2821_v54 = vpop.eup %2820 }
 0xc81   :  { %v2083_v17 = vadd.f32 0.5, %v2082_v32  ;;  %v2087_v10 = vmul.f32 0.5, %v2821_v54 }
 0xc82   :  { %v2090_v12 = vmul.f32 %v2819_v35, %v2079_v21 }
 0xc83   :  { %v2089_v18 = vmul.f32 %v2083_v17, %v3790_v3  ;;  %v2088_v22 = vadd.f32 0.5, %v2087_v10 }
 0xc85   :  { %v2091_v16 = vadd.f32 %v2090_v12, %v2089_v18 }
 0xc87   :  { %2822 = vtanh.f32 %v2091_v16  ;;  %2095 = vst [vmem:[%s3863_s13 + $0x8] sm:$0xff] %v2091_v16 }
 0xc91   :  { %v2823_v23 = vpop.eup %2822 }
 0xc92   :  { %v2093_v14 = vmul.f32 %v2823_v23, %v2088_v22 }
 0xc94   :  { %2094 = vst [vmem:[%s3863_s13] sm:$0xff] %v2093_v14 }
 0xc95   :  { %2904 = dma.done.wait [#allocation8 + $0x4], 2048 }
 0xc96   :  { %2905 = vsyncadd [#allocation8 + $0x4], 4294965248  ;;  %v2099_v3 = vpack.c.bf16 %v3713_v37, %v3713_v37  ;;  %v2108_v13 = vld [vmem:[#allocation6 + $0x40] sm:$0xff]  ;;  %v2109_v60 = vld [vmem:[#allocation6 + $0x48] sm:$0xff]  ;;  %v2098_v38 = vpack.c.bf16 %v2093_v14, %v2093_v14 }
 0xc97   :  { %v2100_v56 = vld [vmem:[#allocation6] sm:$0xff]  ;;  %2452 = vmatprep.subr.bf16.mxu0 %v2108_v13  ;;  %v2101_v19 = vld [vmem:[#allocation6 + $0x8] sm:$0xff]  ;;  %v2110_v33 = vld [vmem:[#allocation6 + $0x50] sm:$0xff] }
 0xc98   :  { %2149 = vmatprep.mubr.bf16.mxu0 %v2099_v3  ;;  %2453 = vmatpush3.bf16.msra.mxu0 %v2100_v56  ;;  %v2102_v41 = vld [vmem:[#allocation6 + $0x10] sm:$0xff]  ;;  %v2111_v7 = vld [vmem:[#allocation6 + $0x58] sm:$0xff]  ;;  %v2112_v6 = vld [vmem:[#allocation6 + $0x60] sm:$0xff] }
 0xc99   :  { %2454 = vmatprep.subr.bf16.mxu0 %v2109_v60  ;;  %v2103_v59 = vld [vmem:[#allocation6 + $0x18] sm:$0xff]  ;;  %v2104_v37 = vld [vmem:[#allocation6 + $0x20] sm:$0xff]  ;;  %v2113_v15 = vld [vmem:[#allocation6 + $0x68] sm:$0xff] }
 0xc9a   :  { %v2105_v24 = vld [vmem:[#allocation6 + $0x28] sm:$0xff]  ;;  %v2114_v4 = vld [vmem:[#allocation6 + $0x70] sm:$0xff]  ;;  %v2115_v1 = vld [vmem:[#allocation6 + $0x78] sm:$0xff] }
 0xc9b   :  { %v2106_v36 = vld [vmem:[#allocation6 + $0x30] sm:$0xff]  ;;  %v2107_v11 = vld [vmem:[#allocation6 + $0x38] sm:$0xff]  ;;  %v2116_v40 = vld [vmem:[%s3855_s5 + $0x4] ss:$0 sm:$0xff] }
 0xc9c   :  { %2455 = vmatpush3.bf16.msra.mxu0 %v2101_v19 }
 0xc9d   :  { %2456 = vmatprep.subr.bf16.mxu0 %v2110_v33 }
 0xca0   :  { %2457 = vmatpush3.bf16.msra.mxu0 %v2102_v41 }
 0xca1   :  { %2458 = vmatprep.subr.bf16.mxu0 %v2111_v7 }
 0xca4   :  { %2459 = vmatpush3.bf16.msra.mxu0 %v2103_v59 }
 0xca5   :  { %2460 = vmatprep.subr.bf16.mxu0 %v2112_v6 }
 0xca8   :  { %2461 = vmatpush3.bf16.msra.mxu0 %v2104_v37 }
 0xca9   :  { %2462 = vmatprep.subr.bf16.mxu0 %v2113_v15 }
 0xcac   :  { %2463 = vmatpush3.bf16.msra.mxu0 %v2105_v24 }
 0xcad   :  { %2464 = vmatprep.subr.bf16.mxu0 %v2114_v4 }
 0xcb0   :  { %2465 = vmatpush3.bf16.msra.mxu0 %v2106_v36 }
 0xcb1   :  { %2466 = vmatprep.subr.bf16.mxu0 %v2115_v1 }
 0xcb4   :  { %2467 = vmatpush3.bf16.msra.mxu0 %v2107_v11 }
 0xcb7   :  { %2150 = vmatmul.mubr.bf16.vlgmr.msra.gmra.mrb[64].mxu0 %v2098_v38 }
 0xd8a   :  { %v2468_v39 = vpop.f32.mrb[64].mxu0 }
 0xd8b   :  { %v2469_v42 = vpop.f32.mrb[65].mxu0 }
 0xd8c   :  { %v2470_v43 = vadd.f32 %v2469_v42, %v2468_v39  ;;  %v2471_v44 = vpop.f32.mrb[66].mxu0 }
 0xd8d   :  { %v2472_v46 = vpop.f32.mrb[67].mxu0 }
 0xd8e   :  { %v2152_v48 = vadd.f32 %v2470_v43, %v2116_v40 }
 0xd90   :  { %2824 = vtanh.f32 %v2152_v48 }
 0xd9a   :  { %v2825_v49 = vpop.eup %2824 }
 0xd9b   :  { %2906 = dma.done.wait [#allocation8 + $0x5], 1024 }
 0xd9c   :  { %2907 = vsyncadd [#allocation8 + $0x5], 4294966272  ;;  %2679 = vmatprep.subr.bf16.mxu1 %v3890_v0  ;;  %2695 = vmatprep.mubr.msk.bf16.mxu1 %vm2924_vm1, %v3890_v0  ;;  %v2161_v50 = vld [vmem:[#allocation7] sm:$0xff]  ;;  %v2162_v53 = vld [vmem:[#allocation7 + $0x8] sm:$0xff]  ;;  %v2160_v51 = vpack.c.bf16 %v2825_v49, %v2825_v49  ;;  %v2211_v62 = vand.u32 127, %v1559_v55 }
 0xd9d   :  { %2680 = vmatpush3.bf16.msra.mxu1 %v2161_v50  ;;  %v2163_v52 = vld [vmem:[#allocation7 + $0x10] sm:$0xff]  ;;  %v2164_v57 = vld [vmem:[#allocation7 + $0x18] sm:$0xff]  ;;  %v2165_v58 = vld [vmem:[#allocation7 + $0x20] sm:$0xff] }
 0xd9e   :  { %2681 = vmatprep.subr.bf16.mxu1 %v3890_v0  ;;  %v2166_v5 = vld [vmem:[#allocation7 + $0x28] sm:$0xff]  ;;  %v2167_v61 = vld [vmem:[#allocation7 + $0x30] sm:$0xff]  ;;  %v2168_v30 = vld [vmem:[#allocation7 + $0x38] sm:$0xff]  ;;  %vm2212_vm3 = vcmp.lt.s32.totalorder %v2211_v62, 7 }
 0xd9f   :  { %v2169_v28 = vld [vmem:[%s3855_s5 + $0x5] ss:$0 sm:$0xff] }
 0xda1   :  { %2682 = vmatpush3.bf16.msra.mxu1 %v2162_v53 }
 0xda2   :  { %2683 = vmatprep.subr.bf16.mxu1 %v3890_v0 }
 0xda5   :  { %2684 = vmatpush3.bf16.msra.mxu1 %v2163_v52 }
 0xda6   :  { %2685 = vmatprep.subr.bf16.mxu1 %v3890_v0 }
 0xda9   :  { %2686 = vmatpush3.bf16.msra.mxu1 %v2164_v57 }
 0xdaa   :  { %2687 = vmatprep.subr.bf16.mxu1 %v3890_v0 }
 0xdad   :  { %2688 = vmatpush3.bf16.msra.mxu1 %v2165_v58 }
 0xdae   :  { %2689 = vmatprep.subr.bf16.mxu1 %v3890_v0 }
 0xdb1   :  { %2690 = vmatpush3.bf16.msra.mxu1 %v2166_v5 }
 0xdb2   :  { %2691 = vmatprep.subr.bf16.mxu1 %v3890_v0 }
 0xdb5   :  { %2692 = vmatpush3.bf16.msra.mxu1 %v2167_v61 }
 0xdb6   :  { %2693 = vmatprep.subr.bf16.mxu1 %v3890_v0 }
 0xdb9   :  { %2694 = vmatpush3.bf16.msra.mxu1 %v2168_v30 }
 0xdbc   :  { %2696 = vmatmul.mubr.bf16.vlgmr.msra.gmra.mrb[56].mxu1 %v2160_v51 }
 0xe8f   :  { %v2204_v63 = vpop.f32.mrb[56].mxu1 }
 0xe90   :  { %v2205_v20 = vadd.f32 %v2204_v63, %v2169_v28  ;;  %v2697_v45 = vpop.f32.mrb[57].mxu1 }
 0xe91   :  { %v2207_v9 = vpop.f32.mrb[58].mxu1 }
 0xe92   :  { %v2698_v8 = vpop.f32.mrb[59].mxu1  ;;  %v2213_v25 = vsel %vm2212_vm3, %v2205_v20, -inf }
 0xe93   :  { %2214 = vmax.xlane.f32.xlu0 %v2213_v25 }
 0xf20   :  { %v2215_v0 = vpop.xlane.xlu0 %2214 }
 0xf21   :  { %v2216_v26 = vsub.f32 %v2213_v25, %v2215_v0 }
 0xf23   :  { %v2217_v2 = vmul.f32 1.442695, %v2216_v26 }
 0xf25   :  { %2826 = vpow2.f32 %v2217_v2 }
 0xf2f   :  { %v2827_v47 = vpop.eup %2826 }
 0xf30   :  { %2219 = vadd.xlane.f32.xlu0 %v2827_v47 }
 0xfbd   :  { %v2220_v55 = vpop.xlane.xlu0 %2219 }
 0xfbe   :  { %2828 = vlog2.f32 %v2220_v55 }
 0xfc8   :  { %v2829_v27 = vpop.eup %2828 }
 0xfc9   :  { %v2222_v29 = vmul.f32 0.6931472, %v2829_v27 }
 0xfcb   :  { %v2223_v31 = vadd.f32 %v2222_v29, %v2215_v0 }
 0xfcd   :  { %v2224_v34 = vsel %vm2212_vm3, %v2223_v31, 0.0 }
 0xfce   :  { %v2225_v35 = vsub.f32 %v2205_v20, %v2224_v34 }
 0xfd0   :  { %2226 = vst [vmem:[%s3862_s12] sm:$0xff] %v2225_v35 }
 0xfd1   :  { %2235 = vsyncmov [#allocation8] }
 0xfd4   :  { %s2236_s10 = vpop.sfrf %2235 }
 0xfd5   :  { %p2333_p10 = scmp.ne.s32.totalorder %s2236_s10, 0 }
 0xfd7   :  { %2240 = shalt.err (%p2333_p10)  }
 0xfd8   :  { %2242 = vsyncmov [#allocation8 + $0x1] }
 0xfdb   :  { %s2243_s18 = vpop.sfrf %2242 }
 0xfdc   :  { %p2334_p11 = scmp.ne.s32.totalorder %s2243_s18, 0 }
 0xfde   :  { %2247 = shalt.err (%p2334_p11)  }
 0xfdf   :  { %2249 = vsyncmov [#allocation8 + $0x2] }
 0xfe2   :  { %s2250_s11 = vpop.sfrf %2249 }
 0xfe3   :  { %p2335_p12 = scmp.ne.s32.totalorder %s2250_s11, 0 }
 0xfe5   :  { %2254 = shalt.err (%p2335_p12)  }
 0xfe6   :  { %2256 = vsyncmov [#allocation8 + $0x3] }
 0xfe9   :  { %s2257_s27 = vpop.sfrf %2256 }
 0xfea   :  { %p2336_p13 = scmp.ne.s32.totalorder %s2257_s27, 0 }
 0xfec   :  { %2261 = shalt.err (%p2336_p13)  }
 0xfed   :  { %2263 = vsyncmov [#allocation8 + $0x4] }
 0xff0   :  { %s2264_s4 = vpop.sfrf %2263 }
 0xff1   :  { %p2337_p0 = scmp.ne.s32.totalorder %s2264_s4, 0 }
 0xff3   :  { %2268 = shalt.err (%p2337_p0)  }
 0xff4   :  { %2270 = vsyncmov [#allocation8 + $0x5] }
 0xff7   :  { %s2271_s12 = vpop.sfrf %2270 }
 0xff8   :  { %p2338_p1 = scmp.ne.s32.totalorder %s2271_s12, 0 }
 0xffa   :  { %2275 = shalt.err (%p2338_p1)  }

</bundles_post_ra>
